<compile_context>
chip_gen: v5e
topology: v5e:2x2
jax: 0.10.0
libtpu: 0.0.40
codegen_flags: <defaults>
</compile_context>

<pallas_src>
import functools

import jax
import jax.numpy as jnp
from jax import lax
from jax.experimental import pallas as pl
from jax.experimental.pallas import tpu as pltpu


NUM_LAYERS = 4
LANE = 128
SUBLANE = 8


# ------------------------------ Fused kernel ---------------------------------
def _fused_lm_kernel(ids_ref, fused0_ref, wih_ref, whh_ref, b_ref,
                     wout_ref, bout_ref, out_ref, gi_s, x_s, *, batch_pad):
  """Embedding -> L-layer LSTM -> Linear, fully fused in one kernel call.

  ids_ref   : (T*Bp, 1)     int32 token ids, time-major, batch padded to Bp
  fused0_ref: (OHW, 4H)     emb @ W_ih[0] (gate-scaled), rows >= C are zero
  wih_ref   : (L-1, H, 4H)  gate-scaled input projections, layers 1..L-1
  whh_ref   : (L, H, 4H)    gate-scaled hidden projections (one 128-lane block)
  b_ref     : (L, 1, 4H)    gate-scaled combined bias (b_ih + b_hh)
  wout_ref  : (H, Cpad)     output projection weight, zero padded to 128 lanes
  bout_ref  : (1, Cpad)     output projection bias, zero padded
  out_ref   : (T*Bp, Cpad)  lane-dense logits (wrapper slices rows/cols)
  gi_s      : (T*Bp, 4H)    VMEM scratch: hoisted input projection of one layer
  x_s       : (T*Bp, H)     VMEM scratch: inter-layer activations
  """
  Bp = batch_pad
  TB = ids_ref.shape[0]
  T = TB // Bp
  L, H, G = whh_ref.shape                       # G = 4H = 128 lanes
  OHW = fused0_ref.shape[0]

  # Gate post-activation constants (hoisted; built once).  i/f/o gate columns
  # were pre-scaled by 0.5 at pack time, so every gate needs only ONE tanh:
  #   sigmoid(z) = 0.5 * tanh(z/2) + 0.5 ,   tanh(z) = tanh(z).
  lane = lax.broadcasted_iota(jnp.int32, (Bp, G), 1)
  is_g = jnp.logical_and(lane >= 2 * H, lane < 3 * H)
  post_scale = jnp.where(is_g, 1.0, 0.5).astype(jnp.float32)
  post_bias = jnp.where(is_g, 0.0, 0.5).astype(jnp.float32)

  # One-hot(ids) as a lane-dense (TB, OHW) f32 matrix (columns >= num_classes
  # are all zero): the embedding gather becomes one tiny MXU matmul, folded
  # into layer 0's input projection below.
  ids = ids_ref[...]                                            # (TB, 1) int32
  col = lax.broadcasted_iota(jnp.int32, (TB, OHW), 1)
  onehot = jnp.where(col == ids, 1.0, 0.0).astype(jnp.float32)  # (TB, OHW)

  for layer in range(L):                        # static unroll, L = 4
    bias = b_ref[layer]                         # (1, 4H)
    whh = whh_ref[layer]                        # (H, 4H) -- loaded once / layer

    # Hoisted input projection for the whole sequence: one matmul per layer,
    # staged in VMEM scratch so per-step reads are 8-sublane aligned loads.
    if layer == 0:
      gi_s[...] = (jnp.dot(onehot, fused0_ref[...],
                           preferred_element_type=jnp.float32) + bias)
    else:
      gi_s[...] = (jnp.dot(x_s[...], wih_ref[layer - 1],
                           preferred_element_type=jnp.float32) + bias)

    h = jnp.zeros((Bp, H), jnp.float32)
    c = jnp.zeros((Bp, H), jnp.float32)
    for t in range(T):                          # static unroll, T = 8 (serial)
      r0 = t * Bp                               # 8-sublane aligned row block
      # Single 128-lane hidden matmul: 1 MXU push per step (was 4).
      pre = gi_s[r0:r0 + Bp, :] + jnp.dot(h, whh,
                                          preferred_element_type=jnp.float32)
      act = jnp.tanh(pre) * post_scale + post_bias   # i,f,o -> sigmoid; g -> tanh
      i_g = act[:, 0 * H:1 * H]
      f_g = act[:, 1 * H:2 * H]
      g_g = act[:, 2 * H:3 * H]
      o_g = act[:, 3 * H:4 * H]
      c = f_g * c + i_g * g_g
      h = o_g * jnp.tanh(c)                     # 2nd (and last) EUP call / step
      x_s[r0:r0 + Bp, :] = h                    # tile-aligned scratch store
    # TODO(synk): nn.LSTM inter-layer dropout (p=0.2) is training-only; this is
    # the eval/inference forward (dropout = identity).

  # Output projection, lane-dense (unmasked) store.
  out_ref[...] = (jnp.dot(x_s[...], wout_ref[...],
                          preferred_element_type=jnp.float32)
                  + bout_ref[...]).astype(out_ref.dtype)
  # TODO(synk): if H is scaled up, switch to grid=(L,) with per-layer streamed
  # weight BlockSpecs so only one layer's weights are VMEM-resident at a time.


def _fused_forward(ids_tm, packed, *, batch_pad):
  TB = ids_tm.shape[0]
  ohw, G = packed["fused0"].shape
  L, H, _ = packed["w_hh"].shape
  c_pad = packed["w_out"].shape[1]
  kernel = functools.partial(_fused_lm_kernel, batch_pad=batch_pad)
  return pl.pallas_call(
      kernel,
      out_shape=jax.ShapeDtypeStruct((TB, c_pad), jnp.float32),
      in_specs=[
          pl.BlockSpec((TB, 1), lambda: (0, 0)),
          pl.BlockSpec((ohw, G), lambda: (0, 0)),
          pl.BlockSpec((L - 1, H, G), lambda: (0, 0, 0)),
          pl.BlockSpec((L, H, G), lambda: (0, 0, 0)),
          pl.BlockSpec((L, 1, G), lambda: (0, 0, 0)),
          pl.BlockSpec((H, c_pad), lambda: (0, 0)),
          pl.BlockSpec((1, c_pad), lambda: (0, 0)),
      ],
      out_specs=pl.BlockSpec((TB, c_pad), lambda: (0, 0)),
      scratch_shapes=[
          pltpu.VMEM((TB, G), jnp.float32),   # hoisted input projection staging
          pltpu.VMEM((TB, H), jnp.float32),   # inter-layer activations
      ],
  )(ids_tm, packed["fused0"], packed["w_ih"], packed["w_hh"],
    packed["bias"], packed["w_out"], packed["b_out"])


# ------------------------------- Parameters ----------------------------------
def init_params(key, num_classes, num_hidden):
  """Deterministic init matching the PyTorch module's parameter shapes."""
  H = num_hidden
  keys = jax.random.split(key, 2 + 4 * NUM_LAYERS + 2)
  k_iter = iter(keys)
  bound = 1.0 / jnp.sqrt(H)

  params = {}
  # nn.Embedding(num_classes, H)
  params["embedding"] = jax.random.normal(next(k_iter), (num_classes, H), jnp.float32)

  lstm_layers = []
  for _ in range(NUM_LAYERS):
    w_ih = jax.random.uniform(next(k_iter), (4 * H, H), jnp.float32, -bound, bound)
    w_hh = jax.random.uniform(next(k_iter), (4 * H, H), jnp.float32, -bound, bound)
    b_ih = jax.random.uniform(next(k_iter), (4 * H,), jnp.float32, -bound, bound)
    b_hh = jax.random.uniform(next(k_iter), (4 * H,), jnp.float32, -bound, bound)
    lstm_layers.append({
        "w_ih_t": w_ih.T,                      # (H, 4H), gate order i,f,g,o
        "w_hh_t": w_hh.T,                      # (H, 4H)
        "bias": (b_ih + b_hh).reshape(1, 4 * H),
    })
  params["lstm"] = lstm_layers

  w_out = jax.random.uniform(next(k_iter), (num_classes, H), jnp.float32, -bound, bound)
  b_out = jax.random.uniform(next(k_iter), (num_classes,), jnp.float32, -bound, bound)
  params["linear_w_t"] = w_out.T                        # (H, C)
  params["linear_b"] = b_out.reshape(1, num_classes)    # (1, C)
  return params


def pack_params(params):
  """Stack / pad / pre-scale the PyTorch-shaped params into the fused layout."""
  emb = params["embedding"]                     # (C, H)
  C, H = emb.shape
  G = 4 * H

  # Fold the 0.5 "sigmoid-as-tanh" prescale into the i/f/o gate columns.
  gate_scale = jnp.concatenate([
      jnp.full((H,), 0.5, jnp.float32),         # i
      jnp.full((H,), 0.5, jnp.float32),         # f
      jnp.ones((H,), jnp.float32),              # g
      jnp.full((H,), 0.5, jnp.float32),         # o
  ])

  wih_scaled = [layer["w_ih_t"] * gate_scale for layer in params["lstm"]]
  w_hh = jnp.stack([layer["w_hh_t"] * gate_scale for layer in params["lstm"]])
  bias = jnp.stack([layer["bias"] * gate_scale for layer in params["lstm"]])

  # Layer-0 fold: embedding @ W_ih[0], zero padded to the 128-lane one-hot width.
  ohw = pl.cdiv(C, LANE) * LANE
  fused0 = jnp.zeros((ohw, G), jnp.float32).at[:C, :].set(emb @ wih_scaled[0])
  w_ih = jnp.stack(wih_scaled[1:])              # (L-1, H, 4H), layers 1..L-1

  c_pad = pl.cdiv(C, LANE) * LANE               # lane-dense output columns
  w_out = jnp.zeros((H, c_pad), jnp.float32).at[:, :C].set(params["linear_w_t"])
  b_out = jnp.zeros((1, c_pad), jnp.float32).at[:, :C].set(params["linear_b"])

  return {"fused0": fused0, "w_ih": w_ih, "w_hh": w_hh, "bias": bias,
          "w_out": w_out, "b_out": b_out}


# ------------------------------- Full model -----------------------------------
@functools.partial(jax.jit, static_argnames=("num_classes",))
def model_lm_forward(packed, token_ids, *, num_classes):
  """token_ids: int32 [B, T] -> logits f32 [B, T, num_classes]."""
  B, T = token_ids.shape
  Bp = ((B + SUBLANE - 1) // SUBLANE) * SUBLANE          # pad batch to 8 sublanes
  ids = jnp.zeros((T, Bp), jnp.int32).at[:, :B].set(token_ids.astype(jnp.int32).T)
  ids_tm = ids.reshape(T * Bp, 1)                        # row = t*Bp + b
  out = _fused_forward(ids_tm, packed, batch_pad=Bp)     # (T*Bp, Cpad)
  logits = out.reshape(T, Bp, -1)[:, :B, :num_classes].transpose(1, 0, 2)
  return logits                                          # (B, T, C)


# ------------------------------ Pure-JAX reference ----------------------------
def _reference_forward(params, token_ids):
  embeds = jnp.take(params["embedding"], token_ids, axis=0)  # (B, T, H)
  x = embeds.astype(jnp.float32)
  B, T, H = x.shape
  for layer in params["lstm"]:
    h = jnp.zeros((B, H), jnp.float32)
    c = jnp.zeros((B, H), jnp.float32)
    outs = []
    for t in range(T):
      gates = x[:, t, :] @ layer["w_ih_t"] + h @ layer["w_hh_t"] + layer["bias"]
      i_g = jax.nn.sigmoid(gates[:, 0 * H:1 * H])
      f_g = jax.nn.sigmoid(gates[:, 1 * H:2 * H])
      g_g = jnp.tanh(gates[:, 2 * H:3 * H])
      o_g = jax.nn.sigmoid(gates[:, 3 * H:4 * H])
      c = f_g * c + i_g * g_g
      h = o_g * jnp.tanh(c)
      outs.append(h)
    x = jnp.stack(outs, axis=1)
  return x @ params["linear_w_t"] + params["linear_b"]


if __name__ == "__main__":
  # Small hyperparameters consistent with the module (hp_LM).
  NUM_CLASSES = 16   # hp_LM.num_classes
  NUM_HIDDEN = 32    # hp_LM.num_hidden_LM
  BATCH, SEQ = 2, 8

  key = jax.random.PRNGKey(0)
  k_in, k_par = jax.random.split(key)

  token_ids = jax.random.randint(k_in, (BATCH, SEQ), 0, NUM_CLASSES, dtype=jnp.int32)
  params = init_params(k_par, NUM_CLASSES, NUM_HIDDEN)
  packed = pack_params(params)

  logits = model_lm_forward(packed, token_ids, num_classes=NUM_CLASSES)
  logits = jax.block_until_ready(logits)

  ref = _reference_forward(params, token_ids)
  assert logits.shape == (BATCH, SEQ, NUM_CLASSES), logits.shape
  assert bool(jnp.all(jnp.isfinite(logits)))
  err = float(jnp.max(jnp.abs(logits - ref)))
  assert err < 1e-3, err

  print("KERNEL_OK")
</pallas_src>

<mosaic_0001>
module attributes {stable_mosaic.version = 11 : i64} {
  func.func @_fused_lm_kernel(%arg0: memref<64x1xi32, #tpu.memory_space<vmem>>, %arg1: memref<128x128xf32, #tpu.memory_space<vmem>>, %arg2: memref<3x32x128xf32, #tpu.memory_space<vmem>>, %arg3: memref<4x32x128xf32, #tpu.memory_space<vmem>>, %arg4: memref<4x1x128xf32, #tpu.memory_space<vmem>>, %arg5: memref<32x128xf32, #tpu.memory_space<vmem>>, %arg6: memref<1x128xf32, #tpu.memory_space<vmem>>, %arg7: memref<64x128xf32, #tpu.memory_space<vmem>>, %arg8: memref<64x128xf32, #tpu.memory_space<vmem>>, %arg9: memref<64x32xf32, #tpu.memory_space<vmem>>) attributes {dimension_semantics = [], scalar_prefetch = 0 : i64, scratch_operands = 2 : i64, tpu.core_type = #tpu.core_type<tc>} {
    %0 = tpu.iota {dimensions = array<i32: 1>} : vector<8x128xi32>
    %c64_i32 = arith.constant 64 : i32
    %1 = vector.broadcast %c64_i32 : i32 to vector<8x128xi32>
    %2 = arith.cmpi sge, %0, %1 : vector<8x128xi32>
    %c96_i32 = arith.constant 96 : i32
    %3 = vector.broadcast %c96_i32 : i32 to vector<8x128xi32>
    %4 = arith.cmpi slt, %0, %3 : vector<8x128xi32>
    %5 = arith.andi %2, %4 : vector<8x128xi1>
    %cst = arith.constant 1.000000e+00 : f32
    %cst_0 = arith.constant 5.000000e-01 : f32
    %6 = vector.broadcast %cst : f32 to vector<8x128xf32>
    %7 = vector.broadcast %cst_0 : f32 to vector<8x128xf32>
    %8 = arith.select %5, %6, %7 : vector<8x128xi1>, vector<8x128xf32>
    %cst_1 = arith.constant 0.000000e+00 : f32
    %cst_2 = arith.constant 5.000000e-01 : f32
    %9 = vector.broadcast %cst_1 : f32 to vector<8x128xf32>
    %10 = vector.broadcast %cst_2 : f32 to vector<8x128xf32>
    %11 = arith.select %5, %9, %10 : vector<8x128xi1>, vector<8x128xf32>
    %c0 = arith.constant 0 : index
    %c0_3 = arith.constant 0 : index
    %12 = vector.load %arg0[%c0, %c0_3] : memref<64x1xi32, #tpu.memory_space<vmem>>, vector<64x1xi32>
    %13 = tpu.iota {dimensions = array<i32: 1>} : vector<64x128xi32>
    %14 = vector.broadcast %12 : vector<64x1xi32> to vector<64x128xi32>
    %15 = arith.cmpi eq, %13, %14 : vector<64x128xi32>
    %cst_4 = arith.constant 1.000000e+00 : f32
    %cst_5 = arith.constant 0.000000e+00 : f32
    %16 = vector.broadcast %cst_4 : f32 to vector<64x128xf32>
    %17 = vector.broadcast %cst_5 : f32 to vector<64x128xf32>
    %18 = arith.select %15, %16, %17 : vector<64x128xi1>, vector<64x128xf32>
    %c0_6 = arith.constant 0 : index
    %c0_7 = arith.constant 0 : index
    %c0_8 = arith.constant 0 : index
    %19 = vector.load %arg4[%c0_6, %c0_7, %c0_8] : memref<4x1x128xf32, #tpu.memory_space<vmem>>, vector<1x1x128xf32>
    %20 = vector.shape_cast %19 : vector<1x1x128xf32> to vector<1x128xf32>
    %c0_9 = arith.constant 0 : index
    %c0_10 = arith.constant 0 : index
    %c0_11 = arith.constant 0 : index
    %21 = vector.load %arg3[%c0_9, %c0_10, %c0_11] : memref<4x32x128xf32, #tpu.memory_space<vmem>>, vector<1x32x128xf32>
    %22 = vector.shape_cast %21 : vector<1x32x128xf32> to vector<32x128xf32>
    %c0_12 = arith.constant 0 : index
    %c0_13 = arith.constant 0 : index
    %23 = vector.load %arg1[%c0_12, %c0_13] : memref<128x128xf32, #tpu.memory_space<vmem>>, vector<128x128xf32>
    %cst_14 = arith.constant dense<0.000000e+00> : vector<64x128xf32>
    %24 = tpu.matmul %18, %23, %cst_14 {dimension_numbers = #tpu.dot_dimension_numbers<[1], [0], [0], [1], [0, 0, 1, 1], [], []>} : vector<64x128xf32>, vector<128x128xf32>, vector<64x128xf32> -> vector<64x128xf32>
    %25 = vector.broadcast %20 : vector<1x128xf32> to vector<64x128xf32>
    %26 = arith.addf %24, %25 : vector<64x128xf32>
    %c0_15 = arith.constant 0 : index
    %c0_16 = arith.constant 0 : index
    %27 = vector.load %arg8[%c0_15, %c0_16] : memref<64x128xf32, #tpu.memory_space<vmem>>, vector<64x128xf32>
    tpu.vector_store %arg8[%c0_15, %c0_16], %26 {strides = array<i32>} : memref<64x128xf32, #tpu.memory_space<vmem>>, vector<64x128xf32>,
    %cst_17 = arith.constant 0.000000e+00 : f32
    %28 = vector.broadcast %cst_17 : f32 to vector<8x32xf32>
    %cst_18 = arith.constant 0.000000e+00 : f32
    %29 = vector.broadcast %cst_18 : f32 to vector<8x32xf32>
    %c0_19 = arith.constant 0 : index
    %c0_20 = arith.constant 0 : index
    %30 = vector.load %arg8[%c0_19, %c0_20] : memref<64x128xf32, #tpu.memory_space<vmem>>, vector<8x128xf32>
    %cst_21 = arith.constant dense<0.000000e+00> : vector<8x128xf32>
    %31 = tpu.matmul %28, %22, %cst_21 {dimension_numbers = #tpu.dot_dimension_numbers<[1], [0], [0], [1], [0, 0, 1, 1], [], []>} : vector<8x32xf32>, vector<32x128xf32>, vector<8x128xf32> -> vector<8x128xf32>
    %32 = arith.addf %30, %31 : vector<8x128xf32>
    %33 = math.tanh %32 : vector<8x128xf32>
    %34 = arith.mulf %33, %8 : vector<8x128xf32>
    %35 = arith.addf %34, %11 : vector<8x128xf32>
    %36 = vector.extract_strided_slice %35 {offsets = [0, 0], sizes = [8, 32], strides = [1, 1]} : vector<8x128xf32> to vector<8x32xf32>
    %37 = vector.extract_strided_slice %35 {offsets = [0, 32], sizes = [8, 32], strides = [1, 1]} : vector<8x128xf32> to vector<8x32xf32>
    %38 = vector.extract_strided_slice %35 {offsets = [0, 64], sizes = [8, 32], strides = [1, 1]} : vector<8x128xf32> to vector<8x32xf32>
    %39 = vector.extract_strided_slice %35 {offsets = [0, 96], sizes = [8, 32], strides = [1, 1]} : vector<8x128xf32> to vector<8x32xf32>
    %40 = arith.mulf %37, %29 : vector<8x32xf32>
    %41 = arith.mulf %36, %38 : vector<8x32xf32>
    %42 = arith.addf %40, %41 : vector<8x32xf32>
    %43 = math.tanh %42 : vector<8x32xf32>
    %44 = arith.mulf %39, %43 : vector<8x32xf32>
    %c0_22 = arith.constant 0 : index
    %c0_23 = arith.constant 0 : index
    %45 = vector.load %arg9[%c0_22, %c0_23] : memref<64x32xf32, #tpu.memory_space<vmem>>, vector<8x32xf32>
    tpu.vector_store %arg9[%c0_22, %c0_23], %44 {strides = array<i32>} : memref<64x32xf32, #tpu.memory_space<vmem>>, vector<8x32xf32>,
    %c8 = arith.constant 8 : index
    %c0_24 = arith.constant 0 : index
    %46 = vector.load %arg8[%c8, %c0_24] : memref<64x128xf32, #tpu.memory_space<vmem>>, vector<8x128xf32>
    %cst_25 = arith.constant dense<0.000000e+00> : vector<8x128xf32>
    %47 = tpu.matmul %44, %22, %cst_25 {dimension_numbers = #tpu.dot_dimension_numbers<[1], [0], [0], [1], [0, 0, 1, 1], [], []>} : vector<8x32xf32>, vector<32x128xf32>, vector<8x128xf32> -> vector<8x128xf32>
    %48 = arith.addf %46, %47 : vector<8x128xf32>
    %49 = math.tanh %48 : vector<8x128xf32>
    %50 = arith.mulf %49, %8 : vector<8x128xf32>
    %51 = arith.addf %50, %11 : vector<8x128xf32>
    %52 = vector.extract_strided_slice %51 {offsets = [0, 0], sizes = [8, 32], strides = [1, 1]} : vector<8x128xf32> to vector<8x32xf32>
    %53 = vector.extract_strided_slice %51 {offsets = [0, 32], sizes = [8, 32], strides = [1, 1]} : vector<8x128xf32> to vector<8x32xf32>
    %54 = vector.extract_strided_slice %51 {offsets = [0, 64], sizes = [8, 32], strides = [1, 1]} : vector<8x128xf32> to vector<8x32xf32>
    %55 = vector.extract_strided_slice %51 {offsets = [0, 96], sizes = [8, 32], strides = [1, 1]} : vector<8x128xf32> to vector<8x32xf32>
    %56 = arith.mulf %53, %42 : vector<8x32xf32>
    %57 = arith.mulf %52, %54 : vector<8x32xf32>
    %58 = arith.addf %56, %57 : vector<8x32xf32>
    %59 = math.tanh %58 : vector<8x32xf32>
    %60 = arith.mulf %55, %59 : vector<8x32xf32>
    %c8_26 = arith.constant 8 : index
    %c0_27 = arith.constant 0 : index
    %61 = vector.load %arg9[%c8_26, %c0_27] : memref<64x32xf32, #tpu.memory_space<vmem>>, vector<8x32xf32>
    tpu.vector_store %arg9[%c8_26, %c0_27], %60 {strides = array<i32>} : memref<64x32xf32, #tpu.memory_space<vmem>>, vector<8x32xf32>,
    %c16 = arith.constant 16 : index
    %c0_28 = arith.constant 0 : index
    %62 = vector.load %arg8[%c16, %c0_28] : memref<64x128xf32, #tpu.memory_space<vmem>>, vector<8x128xf32>
    %cst_29 = arith.constant dense<0.000000e+00> : vector<8x128xf32>
    %63 = tpu.matmul %60, %22, %cst_29 {dimension_numbers = #tpu.dot_dimension_numbers<[1], [0], [0], [1], [0, 0, 1, 1], [], []>} : vector<8x32xf32>, vector<32x128xf32>, vector<8x128xf32> -> vector<8x128xf32>
    %64 = arith.addf %62, %63 : vector<8x128xf32>
    %65 = math.tanh %64 : vector<8x128xf32>
    %66 = arith.mulf %65, %8 : vector<8x128xf32>
    %67 = arith.addf %66, %11 : vector<8x128xf32>
    %68 = vector.extract_strided_slice %67 {offsets = [0, 0], sizes = [8, 32], strides = [1, 1]} : vector<8x128xf32> to vector<8x32xf32>
    %69 = vector.extract_strided_slice %67 {offsets = [0, 32], sizes = [8, 32], strides = [1, 1]} : vector<8x128xf32> to vector<8x32xf32>
    %70 = vector.extract_strided_slice %67 {offsets = [0, 64], sizes = [8, 32], strides = [1, 1]} : vector<8x128xf32> to vector<8x32xf32>
    %71 = vector.extract_strided_slice %67 {offsets = [0, 96], sizes = [8, 32], strides = [1, 1]} : vector<8x128xf32> to vector<8x32xf32>
    %72 = arith.mulf %69, %58 : vector<8x32xf32>
    %73 = arith.mulf %68, %70 : vector<8x32xf32>
    %74 = arith.addf %72, %73 : vector<8x32xf32>
    %75 = math.tanh %74 : vector<8x32xf32>
    %76 = arith.mulf %71, %75 : vector<8x32xf32>
    %c16_30 = arith.constant 16 : index
    %c0_31 = arith.constant 0 : index
    %77 = vector.load %arg9[%c16_30, %c0_31] : memref<64x32xf32, #tpu.memory_space<vmem>>, vector<8x32xf32>
    tpu.vector_store %arg9[%c16_30, %c0_31], %76 {strides = array<i32>} : memref<64x32xf32, #tpu.memory_space<vmem>>, vector<8x32xf32>,
    %c24 = arith.constant 24 : index
    %c0_32 = arith.constant 0 : index
    %78 = vector.load %arg8[%c24, %c0_32] : memref<64x128xf32, #tpu.memory_space<vmem>>, vector<8x128xf32>
    %cst_33 = arith.constant dense<0.000000e+00> : vector<8x128xf32>
    %79 = tpu.matmul %76, %22, %cst_33 {dimension_numbers = #tpu.dot_dimension_numbers<[1], [0], [0], [1], [0, 0, 1, 1], [], []>} : vector<8x32xf32>, vector<32x128xf32>, vector<8x128xf32> -> vector<8x128xf32>
    %80 = arith.addf %78, %79 : vector<8x128xf32>
    %81 = math.tanh %80 : vector<8x128xf32>
    %82 = arith.mulf %81, %8 : vector<8x128xf32>
    %83 = arith.addf %82, %11 : vector<8x128xf32>
    %84 = vector.extract_strided_slice %83 {offsets = [0, 0], sizes = [8, 32], strides = [1, 1]} : vector<8x128xf32> to vector<8x32xf32>
    %85 = vector.extract_strided_slice %83 {offsets = [0, 32], sizes = [8, 32], strides = [1, 1]} : vector<8x128xf32> to vector<8x32xf32>
    %86 = vector.extract_strided_slice %83 {offsets = [0, 64], sizes = [8, 32], strides = [1, 1]} : vector<8x128xf32> to vector<8x32xf32>
    %87 = vector.extract_strided_slice %83 {offsets = [0, 96], sizes = [8, 32], strides = [1, 1]} : vector<8x128xf32> to vector<8x32xf32>
    %88 = arith.mulf %85, %74 : vector<8x32xf32>
    %89 = arith.mulf %84, %86 : vector<8x32xf32>
    %90 = arith.addf %88, %89 : vector<8x32xf32>
    %91 = math.tanh %90 : vector<8x32xf32>
    %92 = arith.mulf %87, %91 : vector<8x32xf32>
    %c24_34 = arith.constant 24 : index
    %c0_35 = arith.constant 0 : index
    %93 = vector.load %arg9[%c24_34, %c0_35] : memref<64x32xf32, #tpu.memory_space<vmem>>, vector<8x32xf32>
    tpu.vector_store %arg9[%c24_34, %c0_35], %92 {strides = array<i32>} : memref<64x32xf32, #tpu.memory_space<vmem>>, vector<8x32xf32>,
    %c32 = arith.constant 32 : index
    %c0_36 = arith.constant 0 : index
    %94 = vector.load %arg8[%c32, %c0_36] : memref<64x128xf32, #tpu.memory_space<vmem>>, vector<8x128xf32>
    %cst_37 = arith.constant dense<0.000000e+00> : vector<8x128xf32>
    %95 = tpu.matmul %92, %22, %cst_37 {dimension_numbers = #tpu.dot_dimension_numbers<[1], [0], [0], [1], [0, 0, 1, 1], [], []>} : vector<8x32xf32>, vector<32x128xf32>, vector<8x128xf32> -> vector<8x128xf32>
    %96 = arith.addf %94, %95 : vector<8x128xf32>
    %97 = math.tanh %96 : vector<8x128xf32>
    %98 = arith.mulf %97, %8 : vector<8x128xf32>
    %99 = arith.addf %98, %11 : vector<8x128xf32>
    %100 = vector.extract_strided_slice %99 {offsets = [0, 0], sizes = [8, 32], strides = [1, 1]} : vector<8x128xf32> to vector<8x32xf32>
    %101 = vector.extract_strided_slice %99 {offsets = [0, 32], sizes = [8, 32], strides = [1, 1]} : vector<8x128xf32> to vector<8x32xf32>
    %102 = vector.extract_strided_slice %99 {offsets = [0, 64], sizes = [8, 32], strides = [1, 1]} : vector<8x128xf32> to vector<8x32xf32>
    %103 = vector.extract_strided_slice %99 {offsets = [0, 96], sizes = [8, 32], strides = [1, 1]} : vector<8x128xf32> to vector<8x32xf32>
    %104 = arith.mulf %101, %90 : vector<8x32xf32>
    %105 = arith.mulf %100, %102 : vector<8x32xf32>
    %106 = arith.addf %104, %105 : vector<8x32xf32>
    %107 = math.tanh %106 : vector<8x32xf32>
    %108 = arith.mulf %103, %107 : vector<8x32xf32>
    %c32_38 = arith.constant 32 : index
    %c0_39 = arith.constant 0 : index
    %109 = vector.load %arg9[%c32_38, %c0_39] : memref<64x32xf32, #tpu.memory_space<vmem>>, vector<8x32xf32>
    tpu.vector_store %arg9[%c32_38, %c0_39], %108 {strides = array<i32>} : memref<64x32xf32, #tpu.memory_space<vmem>>, vector<8x32xf32>,
    %c40 = arith.constant 40 : index
    %c0_40 = arith.constant 0 : index
    %110 = vector.load %arg8[%c40, %c0_40] : memref<64x128xf32, #tpu.memory_space<vmem>>, vector<8x128xf32>
    %cst_41 = arith.constant dense<0.000000e+00> : vector<8x128xf32>
    %111 = tpu.matmul %108, %22, %cst_41 {dimension_numbers = #tpu.dot_dimension_numbers<[1], [0], [0], [1], [0, 0, 1, 1], [], []>} : vector<8x32xf32>, vector<32x128xf32>, vector<8x128xf32> -> vector<8x128xf32>
    %112 = arith.addf %110, %111 : vector<8x128xf32>
    %113 = math.tanh %112 : vector<8x128xf32>
    %114 = arith.mulf %113, %8 : vector<8x128xf32>
    %115 = arith.addf %114, %11 : vector<8x128xf32>
    %116 = vector.extract_strided_slice %115 {offsets = [0, 0], sizes = [8, 32], strides = [1, 1]} : vector<8x128xf32> to vector<8x32xf32>
    %117 = vector.extract_strided_slice %115 {offsets = [0, 32], sizes = [8, 32], strides = [1, 1]} : vector<8x128xf32> to vector<8x32xf32>
    %118 = vector.extract_strided_slice %115 {offsets = [0, 64], sizes = [8, 32], strides = [1, 1]} : vector<8x128xf32> to vector<8x32xf32>
    %119 = vector.extract_strided_slice %115 {offsets = [0, 96], sizes = [8, 32], strides = [1, 1]} : vector<8x128xf32> to vector<8x32xf32>
    %120 = arith.mulf %117, %106 : vector<8x32xf32>
    %121 = arith.mulf %116, %118 : vector<8x32xf32>
    %122 = arith.addf %120, %121 : vector<8x32xf32>
    %123 = math.tanh %122 : vector<8x32xf32>
    %124 = arith.mulf %119, %123 : vector<8x32xf32>
    %c40_42 = arith.constant 40 : index
    %c0_43 = arith.constant 0 : index
    %125 = vector.load %arg9[%c40_42, %c0_43] : memref<64x32xf32, #tpu.memory_space<vmem>>, vector<8x32xf32>
    tpu.vector_store %arg9[%c40_42, %c0_43], %124 {strides = array<i32>} : memref<64x32xf32, #tpu.memory_space<vmem>>, vector<8x32xf32>,
    %c48 = arith.constant 48 : index
    %c0_44 = arith.constant 0 : index
    %126 = vector.load %arg8[%c48, %c0_44] : memref<64x128xf32, #tpu.memory_space<vmem>>, vector<8x128xf32>
    %cst_45 = arith.constant dense<0.000000e+00> : vector<8x128xf32>
    %127 = tpu.matmul %124, %22, %cst_45 {dimension_numbers = #tpu.dot_dimension_numbers<[1], [0], [0], [1], [0, 0, 1, 1], [], []>} : vector<8x32xf32>, vector<32x128xf32>, vector<8x128xf32> -> vector<8x128xf32>
    %128 = arith.addf %126, %127 : vector<8x128xf32>
    %129 = math.tanh %128 : vector<8x128xf32>
    %130 = arith.mulf %129, %8 : vector<8x128xf32>
    %131 = arith.addf %130, %11 : vector<8x128xf32>
    %132 = vector.extract_strided_slice %131 {offsets = [0, 0], sizes = [8, 32], strides = [1, 1]} : vector<8x128xf32> to vector<8x32xf32>
    %133 = vector.extract_strided_slice %131 {offsets = [0, 32], sizes = [8, 32], strides = [1, 1]} : vector<8x128xf32> to vector<8x32xf32>
    %134 = vector.extract_strided_slice %131 {offsets = [0, 64], sizes = [8, 32], strides = [1, 1]} : vector<8x128xf32> to vector<8x32xf32>
    %135 = vector.extract_strided_slice %131 {offsets = [0, 96], sizes = [8, 32], strides = [1, 1]} : vector<8x128xf32> to vector<8x32xf32>
    %136 = arith.mulf %133, %122 : vector<8x32xf32>
    %137 = arith.mulf %132, %134 : vector<8x32xf32>
    %138 = arith.addf %136, %137 : vector<8x32xf32>
    %139 = math.tanh %138 : vector<8x32xf32>
    %140 = arith.mulf %135, %139 : vector<8x32xf32>
    %c48_46 = arith.constant 48 : index
    %c0_47 = arith.constant 0 : index
    %141 = vector.load %arg9[%c48_46, %c0_47] : memref<64x32xf32, #tpu.memory_space<vmem>>, vector<8x32xf32>
    tpu.vector_store %arg9[%c48_46, %c0_47], %140 {strides = array<i32>} : memref<64x32xf32, #tpu.memory_space<vmem>>, vector<8x32xf32>,
    %c56 = arith.constant 56 : index
    %c0_48 = arith.constant 0 : index
    %142 = vector.load %arg8[%c56, %c0_48] : memref<64x128xf32, #tpu.memory_space<vmem>>, vector<8x128xf32>
    %cst_49 = arith.constant dense<0.000000e+00> : vector<8x128xf32>
    %143 = tpu.matmul %140, %22, %cst_49 {dimension_numbers = #tpu.dot_dimension_numbers<[1], [0], [0], [1], [0, 0, 1, 1], [], []>} : vector<8x32xf32>, vector<32x128xf32>, vector<8x128xf32> -> vector<8x128xf32>
    %144 = arith.addf %142, %143 : vector<8x128xf32>
    %145 = math.tanh %144 : vector<8x128xf32>
    %146 = arith.mulf %145, %8 : vector<8x128xf32>
    %147 = arith.addf %146, %11 : vector<8x128xf32>
    %148 = vector.extract_strided_slice %147 {offsets = [0, 0], sizes = [8, 32], strides = [1, 1]} : vector<8x128xf32> to vector<8x32xf32>
    %149 = vector.extract_strided_slice %147 {offsets = [0, 32], sizes = [8, 32], strides = [1, 1]} : vector<8x128xf32> to vector<8x32xf32>
    %150 = vector.extract_strided_slice %147 {offsets = [0, 64], sizes = [8, 32], strides = [1, 1]} : vector<8x128xf32> to vector<8x32xf32>
    %151 = vector.extract_strided_slice %147 {offsets = [0, 96], sizes = [8, 32], strides = [1, 1]} : vector<8x128xf32> to vector<8x32xf32>
    %152 = arith.mulf %149, %138 : vector<8x32xf32>
    %153 = arith.mulf %148, %150 : vector<8x32xf32>
    %154 = arith.addf %152, %153 : vector<8x32xf32>
    %155 = math.tanh %154 : vector<8x32xf32>
    %156 = arith.mulf %151, %155 : vector<8x32xf32>
    %c56_50 = arith.constant 56 : index
    %c0_51 = arith.constant 0 : index
    %157 = vector.load %arg9[%c56_50, %c0_51] : memref<64x32xf32, #tpu.memory_space<vmem>>, vector<8x32xf32>
    tpu.vector_store %arg9[%c56_50, %c0_51], %156 {strides = array<i32>} : memref<64x32xf32, #tpu.memory_space<vmem>>, vector<8x32xf32>,
    %c1 = arith.constant 1 : index
    %c0_52 = arith.constant 0 : index
    %c0_53 = arith.constant 0 : index
    %158 = vector.load %arg4[%c1, %c0_52, %c0_53] : memref<4x1x128xf32, #tpu.memory_space<vmem>>, vector<1x1x128xf32>
    %159 = vector.shape_cast %158 : vector<1x1x128xf32> to vector<1x128xf32>
    %c1_54 = arith.constant 1 : index
    %c0_55 = arith.constant 0 : index
    %c0_56 = arith.constant 0 : index
    %160 = vector.load %arg3[%c1_54, %c0_55, %c0_56] : memref<4x32x128xf32, #tpu.memory_space<vmem>>, vector<1x32x128xf32>
    %161 = vector.shape_cast %160 : vector<1x32x128xf32> to vector<32x128xf32>
    %c0_57 = arith.constant 0 : index
    %c0_58 = arith.constant 0 : index
    %162 = vector.load %arg9[%c0_57, %c0_58] : memref<64x32xf32, #tpu.memory_space<vmem>>, vector<64x32xf32>
    %c0_59 = arith.constant 0 : index
    %c0_60 = arith.constant 0 : index
    %c0_61 = arith.constant 0 : index
    %163 = vector.load %arg2[%c0_59, %c0_60, %c0_61] : memref<3x32x128xf32, #tpu.memory_space<vmem>>, vector<1x32x128xf32>
    %164 = vector.shape_cast %163 : vector<1x32x128xf32> to vector<32x128xf32>
    %cst_62 = arith.constant dense<0.000000e+00> : vector<64x128xf32>
    %165 = tpu.matmul %162, %164, %cst_62 {dimension_numbers = #tpu.dot_dimension_numbers<[1], [0], [0], [1], [0, 0, 1, 1], [], []>} : vector<64x32xf32>, vector<32x128xf32>, vector<64x128xf32> -> vector<64x128xf32>
    %166 = vector.broadcast %159 : vector<1x128xf32> to vector<64x128xf32>
    %167 = arith.addf %165, %166 : vector<64x128xf32>
    %c0_63 = arith.constant 0 : index
    %c0_64 = arith.constant 0 : index
    %168 = vector.load %arg8[%c0_63, %c0_64] : memref<64x128xf32, #tpu.memory_space<vmem>>, vector<64x128xf32>
    tpu.vector_store %arg8[%c0_63, %c0_64], %167 {strides = array<i32>} : memref<64x128xf32, #tpu.memory_space<vmem>>, vector<64x128xf32>,
    %cst_65 = arith.constant 0.000000e+00 : f32
    %169 = vector.broadcast %cst_65 : f32 to vector<8x32xf32>
    %cst_66 = arith.constant 0.000000e+00 : f32
    %170 = vector.broadcast %cst_66 : f32 to vector<8x32xf32>
    %c0_67 = arith.constant 0 : index
    %c0_68 = arith.constant 0 : index
    %171 = vector.load %arg8[%c0_67, %c0_68] : memref<64x128xf32, #tpu.memory_space<vmem>>, vector<8x128xf32>
    %cst_69 = arith.constant dense<0.000000e+00> : vector<8x128xf32>
    %172 = tpu.matmul %169, %161, %cst_69 {dimension_numbers = #tpu.dot_dimension_numbers<[1], [0], [0], [1], [0, 0, 1, 1], [], []>} : vector<8x32xf32>, vector<32x128xf32>, vector<8x128xf32> -> vector<8x128xf32>
    %173 = arith.addf %171, %172 : vector<8x128xf32>
    %174 = math.tanh %173 : vector<8x128xf32>
    %175 = arith.mulf %174, %8 : vector<8x128xf32>
    %176 = arith.addf %175, %11 : vector<8x128xf32>
    %177 = vector.extract_strided_slice %176 {offsets = [0, 0], sizes = [8, 32], strides = [1, 1]} : vector<8x128xf32> to vector<8x32xf32>
    %178 = vector.extract_strided_slice %176 {offsets = [0, 32], sizes = [8, 32], strides = [1, 1]} : vector<8x128xf32> to vector<8x32xf32>
    %179 = vector.extract_strided_slice %176 {offsets = [0, 64], sizes = [8, 32], strides = [1, 1]} : vector<8x128xf32> to vector<8x32xf32>
    %180 = vector.extract_strided_slice %176 {offsets = [0, 96], sizes = [8, 32], strides = [1, 1]} : vector<8x128xf32> to vector<8x32xf32>
    %181 = arith.mulf %178, %170 : vector<8x32xf32>
    %182 = arith.mulf %177, %179 : vector<8x32xf32>
    %183 = arith.addf %181, %182 : vector<8x32xf32>
    %184 = math.tanh %183 : vector<8x32xf32>
    %185 = arith.mulf %180, %184 : vector<8x32xf32>
    %c0_70 = arith.constant 0 : index
    %c0_71 = arith.constant 0 : index
    %186 = vector.load %arg9[%c0_70, %c0_71] : memref<64x32xf32, #tpu.memory_space<vmem>>, vector<8x32xf32>
    tpu.vector_store %arg9[%c0_70, %c0_71], %185 {strides = array<i32>} : memref<64x32xf32, #tpu.memory_space<vmem>>, vector<8x32xf32>,
    %c8_72 = arith.constant 8 : index
    %c0_73 = arith.constant 0 : index
    %187 = vector.load %arg8[%c8_72, %c0_73] : memref<64x128xf32, #tpu.memory_space<vmem>>, vector<8x128xf32>
    %cst_74 = arith.constant dense<0.000000e+00> : vector<8x128xf32>
    %188 = tpu.matmul %185, %161, %cst_74 {dimension_numbers = #tpu.dot_dimension_numbers<[1], [0], [0], [1], [0, 0, 1, 1], [], []>} : vector<8x32xf32>, vector<32x128xf32>, vector<8x128xf32> -> vector<8x128xf32>
    %189 = arith.addf %187, %188 : vector<8x128xf32>
    %190 = math.tanh %189 : vector<8x128xf32>
    %191 = arith.mulf %190, %8 : vector<8x128xf32>
    %192 = arith.addf %191, %11 : vector<8x128xf32>
    %193 = vector.extract_strided_slice %192 {offsets = [0, 0], sizes = [8, 32], strides = [1, 1]} : vector<8x128xf32> to vector<8x32xf32>
    %194 = vector.extract_strided_slice %192 {offsets = [0, 32], sizes = [8, 32], strides = [1, 1]} : vector<8x128xf32> to vector<8x32xf32>
    %195 = vector.extract_strided_slice %192 {offsets = [0, 64], sizes = [8, 32], strides = [1, 1]} : vector<8x128xf32> to vector<8x32xf32>
    %196 = vector.extract_strided_slice %192 {offsets = [0, 96], sizes = [8, 32], strides = [1, 1]} : vector<8x128xf32> to vector<8x32xf32>
    %197 = arith.mulf %194, %183 : vector<8x32xf32>
    %198 = arith.mulf %193, %195 : vector<8x32xf32>
    %199 = arith.addf %197, %198 : vector<8x32xf32>
    %200 = math.tanh %199 : vector<8x32xf32>
    %201 = arith.mulf %196, %200 : vector<8x32xf32>
    %c8_75 = arith.constant 8 : index
    %c0_76 = arith.constant 0 : index
    %202 = vector.load %arg9[%c8_75, %c0_76] : memref<64x32xf32, #tpu.memory_space<vmem>>, vector<8x32xf32>
    tpu.vector_store %arg9[%c8_75, %c0_76], %201 {strides = array<i32>} : memref<64x32xf32, #tpu.memory_space<vmem>>, vector<8x32xf32>,
    %c16_77 = arith.constant 16 : index
    %c0_78 = arith.constant 0 : index
    %203 = vector.load %arg8[%c16_77, %c0_78] : memref<64x128xf32, #tpu.memory_space<vmem>>, vector<8x128xf32>
    %cst_79 = arith.constant dense<0.000000e+00> : vector<8x128xf32>
    %204 = tpu.matmul %201, %161, %cst_79 {dimension_numbers = #tpu.dot_dimension_numbers<[1], [0], [0], [1], [0, 0, 1, 1], [], []>} : vector<8x32xf32>, vector<32x128xf32>, vector<8x128xf32> -> vector<8x128xf32>
    %205 = arith.addf %203, %204 : vector<8x128xf32>
    %206 = math.tanh %205 : vector<8x128xf32>
    %207 = arith.mulf %206, %8 : vector<8x128xf32>
    %208 = arith.addf %207, %11 : vector<8x128xf32>
    %209 = vector.extract_strided_slice %208 {offsets = [0, 0], sizes = [8, 32], strides = [1, 1]} : vector<8x128xf32> to vector<8x32xf32>
    %210 = vector.extract_strided_slice %208 {offsets = [0, 32], sizes = [8, 32], strides = [1, 1]} : vector<8x128xf32> to vector<8x32xf32>
    %211 = vector.extract_strided_slice %208 {offsets = [0, 64], sizes = [8, 32], strides = [1, 1]} : vector<8x128xf32> to vector<8x32xf32>
    %212 = vector.extract_strided_slice %208 {offsets = [0, 96], sizes = [8, 32], strides = [1, 1]} : vector<8x128xf32> to vector<8x32xf32>
    %213 = arith.mulf %210, %199 : vector<8x32xf32>
    %214 = arith.mulf %209, %211 : vector<8x32xf32>
    %215 = arith.addf %213, %214 : vector<8x32xf32>
    %216 = math.tanh %215 : vector<8x32xf32>
    %217 = arith.mulf %212, %216 : vector<8x32xf32>
    %c16_80 = arith.constant 16 : index
    %c0_81 = arith.constant 0 : index
    %218 = vector.load %arg9[%c16_80, %c0_81] : memref<64x32xf32, #tpu.memory_space<vmem>>, vector<8x32xf32>
    tpu.vector_store %arg9[%c16_80, %c0_81], %217 {strides = array<i32>} : memref<64x32xf32, #tpu.memory_space<vmem>>, vector<8x32xf32>,
    %c24_82 = arith.constant 24 : index
    %c0_83 = arith.constant 0 : index
    %219 = vector.load %arg8[%c24_82, %c0_83] : memref<64x128xf32, #tpu.memory_space<vmem>>, vector<8x128xf32>
    %cst_84 = arith.constant dense<0.000000e+00> : vector<8x128xf32>
    %220 = tpu.matmul %217, %161, %cst_84 {dimension_numbers = #tpu.dot_dimension_numbers<[1], [0], [0], [1], [0, 0, 1, 1], [], []>} : vector<8x32xf32>, vector<32x128xf32>, vector<8x128xf32> -> vector<8x128xf32>
    %221 = arith.addf %219, %220 : vector<8x128xf32>
    %222 = math.tanh %221 : vector<8x128xf32>
    %223 = arith.mulf %222, %8 : vector<8x128xf32>
    %224 = arith.addf %223, %11 : vector<8x128xf32>
    %225 = vector.extract_strided_slice %224 {offsets = [0, 0], sizes = [8, 32], strides = [1, 1]} : vector<8x128xf32> to vector<8x32xf32>
    %226 = vector.extract_strided_slice %224 {offsets = [0, 32], sizes = [8, 32], strides = [1, 1]} : vector<8x128xf32> to vector<8x32xf32>
    %227 = vector.extract_strided_slice %224 {offsets = [0, 64], sizes = [8, 32], strides = [1, 1]} : vector<8x128xf32> to vector<8x32xf32>
    %228 = vector.extract_strided_slice %224 {offsets = [0, 96], sizes = [8, 32], strides = [1, 1]} : vector<8x128xf32> to vector<8x32xf32>
    %229 = arith.mulf %226, %215 : vector<8x32xf32>
    %230 = arith.mulf %225, %227 : vector<8x32xf32>
    %231 = arith.addf %229, %230 : vector<8x32xf32>
    %232 = math.tanh %231 : vector<8x32xf32>
    %233 = arith.mulf %228, %232 : vector<8x32xf32>
    %c24_85 = arith.constant 24 : index
    %c0_86 = arith.constant 0 : index
    %234 = vector.load %arg9[%c24_85, %c0_86] : memref<64x32xf32, #tpu.memory_space<vmem>>, vector<8x32xf32>
    tpu.vector_store %arg9[%c24_85, %c0_86], %233 {strides = array<i32>} : memref<64x32xf32, #tpu.memory_space<vmem>>, vector<8x32xf32>,
    %c32_87 = arith.constant 32 : index
    %c0_88 = arith.constant 0 : index
    %235 = vector.load %arg8[%c32_87, %c0_88] : memref<64x128xf32, #tpu.memory_space<vmem>>, vector<8x128xf32>
    %cst_89 = arith.constant dense<0.000000e+00> : vector<8x128xf32>
    %236 = tpu.matmul %233, %161, %cst_89 {dimension_numbers = #tpu.dot_dimension_numbers<[1], [0], [0], [1], [0, 0, 1, 1], [], []>} : vector<8x32xf32>, vector<32x128xf32>, vector<8x128xf32> -> vector<8x128xf32>
    %237 = arith.addf %235, %236 : vector<8x128xf32>
    %238 = math.tanh %237 : vector<8x128xf32>
    %239 = arith.mulf %238, %8 : vector<8x128xf32>
    %240 = arith.addf %239, %11 : vector<8x128xf32>
    %241 = vector.extract_strided_slice %240 {offsets = [0, 0], sizes = [8, 32], strides = [1, 1]} : vector<8x128xf32> to vector<8x32xf32>
    %242 = vector.extract_strided_slice %240 {offsets = [0, 32], sizes = [8, 32], strides = [1, 1]} : vector<8x128xf32> to vector<8x32xf32>
    %243 = vector.extract_strided_slice %240 {offsets = [0, 64], sizes = [8, 32], strides = [1, 1]} : vector<8x128xf32> to vector<8x32xf32>
    %244 = vector.extract_strided_slice %240 {offsets = [0, 96], sizes = [8, 32], strides = [1, 1]} : vector<8x128xf32> to vector<8x32xf32>
    %245 = arith.mulf %242, %231 : vector<8x32xf32>
    %246 = arith.mulf %241, %243 : vector<8x32xf32>
    %247 = arith.addf %245, %246 : vector<8x32xf32>
    %248 = math.tanh %247 : vector<8x32xf32>
    %249 = arith.mulf %244, %248 : vector<8x32xf32>
    %c32_90 = arith.constant 32 : index
    %c0_91 = arith.constant 0 : index
    %250 = vector.load %arg9[%c32_90, %c0_91] : memref<64x32xf32, #tpu.memory_space<vmem>>, vector<8x32xf32>
    tpu.vector_store %arg9[%c32_90, %c0_91], %249 {strides = array<i32>} : memref<64x32xf32, #tpu.memory_space<vmem>>, vector<8x32xf32>,
    %c40_92 = arith.constant 40 : index
    %c0_93 = arith.constant 0 : index
    %251 = vector.load %arg8[%c40_92, %c0_93] : memref<64x128xf32, #tpu.memory_space<vmem>>, vector<8x128xf32>
    %cst_94 = arith.constant dense<0.000000e+00> : vector<8x128xf32>
    %252 = tpu.matmul %249, %161, %cst_94 {dimension_numbers = #tpu.dot_dimension_numbers<[1], [0], [0], [1], [0, 0, 1, 1], [], []>} : vector<8x32xf32>, vector<32x128xf32>, vector<8x128xf32> -> vector<8x128xf32>
    %253 = arith.addf %251, %252 : vector<8x128xf32>
    %254 = math.tanh %253 : vector<8x128xf32>
    %255 = arith.mulf %254, %8 : vector<8x128xf32>
    %256 = arith.addf %255, %11 : vector<8x128xf32>
    %257 = vector.extract_strided_slice %256 {offsets = [0, 0], sizes = [8, 32], strides = [1, 1]} : vector<8x128xf32> to vector<8x32xf32>
    %258 = vector.extract_strided_slice %256 {offsets = [0, 32], sizes = [8, 32], strides = [1, 1]} : vector<8x128xf32> to vector<8x32xf32>
    %259 = vector.extract_strided_slice %256 {offsets = [0, 64], sizes = [8, 32], strides = [1, 1]} : vector<8x128xf32> to vector<8x32xf32>
    %260 = vector.extract_strided_slice %256 {offsets = [0, 96], sizes = [8, 32], strides = [1, 1]} : vector<8x128xf32> to vector<8x32xf32>
    %261 = arith.mulf %258, %247 : vector<8x32xf32>
    %262 = arith.mulf %257, %259 : vector<8x32xf32>
    %263 = arith.addf %261, %262 : vector<8x32xf32>
    %264 = math.tanh %263 : vector<8x32xf32>
    %265 = arith.mulf %260, %264 : vector<8x32xf32>
    %c40_95 = arith.constant 40 : index
    %c0_96 = arith.constant 0 : index
    %266 = vector.load %arg9[%c40_95, %c0_96] : memref<64x32xf32, #tpu.memory_space<vmem>>, vector<8x32xf32>
    tpu.vector_store %arg9[%c40_95, %c0_96], %265 {strides = array<i32>} : memref<64x32xf32, #tpu.memory_space<vmem>>, vector<8x32xf32>,
    %c48_97 = arith.constant 48 : index
    %c0_98 = arith.constant 0 : index
    %267 = vector.load %arg8[%c48_97, %c0_98] : memref<64x128xf32, #tpu.memory_space<vmem>>, vector<8x128xf32>
    %cst_99 = arith.constant dense<0.000000e+00> : vector<8x128xf32>
    %268 = tpu.matmul %265, %161, %cst_99 {dimension_numbers = #tpu.dot_dimension_numbers<[1], [0], [0], [1], [0, 0, 1, 1], [], []>} : vector<8x32xf32>, vector<32x128xf32>, vector<8x128xf32> -> vector<8x128xf32>
    %269 = arith.addf %267, %268 : vector<8x128xf32>
    %270 = math.tanh %269 : vector<8x128xf32>
    %271 = arith.mulf %270, %8 : vector<8x128xf32>
    %272 = arith.addf %271, %11 : vector<8x128xf32>
    %273 = vector.extract_strided_slice %272 {offsets = [0, 0], sizes = [8, 32], strides = [1, 1]} : vector<8x128xf32> to vector<8x32xf32>
    %274 = vector.extract_strided_slice %272 {offsets = [0, 32], sizes = [8, 32], strides = [1, 1]} : vector<8x128xf32> to vector<8x32xf32>
    %275 = vector.extract_strided_slice %272 {offsets = [0, 64], sizes = [8, 32], strides = [1, 1]} : vector<8x128xf32> to vector<8x32xf32>
    %276 = vector.extract_strided_slice %272 {offsets = [0, 96], sizes = [8, 32], strides = [1, 1]} : vector<8x128xf32> to vector<8x32xf32>
    %277 = arith.mulf %274, %263 : vector<8x32xf32>
    %278 = arith.mulf %273, %275 : vector<8x32xf32>
    %279 = arith.addf %277, %278 : vector<8x32xf32>
    %280 = math.tanh %279 : vector<8x32xf32>
    %281 = arith.mulf %276, %280 : vector<8x32xf32>
    %c48_100 = arith.constant 48 : index
    %c0_101 = arith.constant 0 : index
    %282 = vector.load %arg9[%c48_100, %c0_101] : memref<64x32xf32, #tpu.memory_space<vmem>>, vector<8x32xf32>
    tpu.vector_store %arg9[%c48_100, %c0_101], %281 {strides = array<i32>} : memref<64x32xf32, #tpu.memory_space<vmem>>, vector<8x32xf32>,
    %c56_102 = arith.constant 56 : index
    %c0_103 = arith.constant 0 : index
    %283 = vector.load %arg8[%c56_102, %c0_103] : memref<64x128xf32, #tpu.memory_space<vmem>>, vector<8x128xf32>
    %cst_104 = arith.constant dense<0.000000e+00> : vector<8x128xf32>
    %284 = tpu.matmul %281, %161, %cst_104 {dimension_numbers = #tpu.dot_dimension_numbers<[1], [0], [0], [1], [0, 0, 1, 1], [], []>} : vector<8x32xf32>, vector<32x128xf32>, vector<8x128xf32> -> vector<8x128xf32>
    %285 = arith.addf %283, %284 : vector<8x128xf32>
    %286 = math.tanh %285 : vector<8x128xf32>
    %287 = arith.mulf %286, %8 : vector<8x128xf32>
    %288 = arith.addf %287, %11 : vector<8x128xf32>
    %289 = vector.extract_strided_slice %288 {offsets = [0, 0], sizes = [8, 32], strides = [1, 1]} : vector<8x128xf32> to vector<8x32xf32>
    %290 = vector.extract_strided_slice %288 {offsets = [0, 32], sizes = [8, 32], strides = [1, 1]} : vector<8x128xf32> to vector<8x32xf32>
    %291 = vector.extract_strided_slice %288 {offsets = [0, 64], sizes = [8, 32], strides = [1, 1]} : vector<8x128xf32> to vector<8x32xf32>
    %292 = vector.extract_strided_slice %288 {offsets = [0, 96], sizes = [8, 32], strides = [1, 1]} : vector<8x128xf32> to vector<8x32xf32>
    %293 = arith.mulf %290, %279 : vector<8x32xf32>
    %294 = arith.mulf %289, %291 : vector<8x32xf32>
    %295 = arith.addf %293, %294 : vector<8x32xf32>
    %296 = math.tanh %295 : vector<8x32xf32>
    %297 = arith.mulf %292, %296 : vector<8x32xf32>
    %c56_105 = arith.constant 56 : index
    %c0_106 = arith.constant 0 : index
    %298 = vector.load %arg9[%c56_105, %c0_106] : memref<64x32xf32, #tpu.memory_space<vmem>>, vector<8x32xf32>
    tpu.vector_store %arg9[%c56_105, %c0_106], %297 {strides = array<i32>} : memref<64x32xf32, #tpu.memory_space<vmem>>, vector<8x32xf32>,
    %c2 = arith.constant 2 : index
    %c0_107 = arith.constant 0 : index
    %c0_108 = arith.constant 0 : index
    %299 = vector.load %arg4[%c2, %c0_107, %c0_108] : memref<4x1x128xf32, #tpu.memory_space<vmem>>, vector<1x1x128xf32>
    %300 = vector.shape_cast %299 : vector<1x1x128xf32> to vector<1x128xf32>
    %c2_109 = arith.constant 2 : index
    %c0_110 = arith.constant 0 : index
    %c0_111 = arith.constant 0 : index
    %301 = vector.load %arg3[%c2_109, %c0_110, %c0_111] : memref<4x32x128xf32, #tpu.memory_space<vmem>>, vector<1x32x128xf32>
    %302 = vector.shape_cast %301 : vector<1x32x128xf32> to vector<32x128xf32>
    %c0_112 = arith.constant 0 : index
    %c0_113 = arith.constant 0 : index
    %303 = vector.load %arg9[%c0_112, %c0_113] : memref<64x32xf32, #tpu.memory_space<vmem>>, vector<64x32xf32>
    %c1_114 = arith.constant 1 : index
    %c0_115 = arith.constant 0 : index
    %c0_116 = arith.constant 0 : index
    %304 = vector.load %arg2[%c1_114, %c0_115, %c0_116] : memref<3x32x128xf32, #tpu.memory_space<vmem>>, vector<1x32x128xf32>
    %305 = vector.shape_cast %304 : vector<1x32x128xf32> to vector<32x128xf32>
    %cst_117 = arith.constant dense<0.000000e+00> : vector<64x128xf32>
    %306 = tpu.matmul %303, %305, %cst_117 {dimension_numbers = #tpu.dot_dimension_numbers<[1], [0], [0], [1], [0, 0, 1, 1], [], []>} : vector<64x32xf32>, vector<32x128xf32>, vector<64x128xf32> -> vector<64x128xf32>
    %307 = vector.broadcast %300 : vector<1x128xf32> to vector<64x128xf32>
    %308 = arith.addf %306, %307 : vector<64x128xf32>
    %c0_118 = arith.constant 0 : index
    %c0_119 = arith.constant 0 : index
    %309 = vector.load %arg8[%c0_118, %c0_119] : memref<64x128xf32, #tpu.memory_space<vmem>>, vector<64x128xf32>
    tpu.vector_store %arg8[%c0_118, %c0_119], %308 {strides = array<i32>} : memref<64x128xf32, #tpu.memory_space<vmem>>, vector<64x128xf32>,
    %cst_120 = arith.constant 0.000000e+00 : f32
    %310 = vector.broadcast %cst_120 : f32 to vector<8x32xf32>
    %cst_121 = arith.constant 0.000000e+00 : f32
    %311 = vector.broadcast %cst_121 : f32 to vector<8x32xf32>
    %c0_122 = arith.constant 0 : index
    %c0_123 = arith.constant 0 : index
    %312 = vector.load %arg8[%c0_122, %c0_123] : memref<64x128xf32, #tpu.memory_space<vmem>>, vector<8x128xf32>
    %cst_124 = arith.constant dense<0.000000e+00> : vector<8x128xf32>
    %313 = tpu.matmul %310, %302, %cst_124 {dimension_numbers = #tpu.dot_dimension_numbers<[1], [0], [0], [1], [0, 0, 1, 1], [], []>} : vector<8x32xf32>, vector<32x128xf32>, vector<8x128xf32> -> vector<8x128xf32>
    %314 = arith.addf %312, %313 : vector<8x128xf32>
    %315 = math.tanh %314 : vector<8x128xf32>
    %316 = arith.mulf %315, %8 : vector<8x128xf32>
    %317 = arith.addf %316, %11 : vector<8x128xf32>
    %318 = vector.extract_strided_slice %317 {offsets = [0, 0], sizes = [8, 32], strides = [1, 1]} : vector<8x128xf32> to vector<8x32xf32>
    %319 = vector.extract_strided_slice %317 {offsets = [0, 32], sizes = [8, 32], strides = [1, 1]} : vector<8x128xf32> to vector<8x32xf32>
    %320 = vector.extract_strided_slice %317 {offsets = [0, 64], sizes = [8, 32], strides = [1, 1]} : vector<8x128xf32> to vector<8x32xf32>
    %321 = vector.extract_strided_slice %317 {offsets = [0, 96], sizes = [8, 32], strides = [1, 1]} : vector<8x128xf32> to vector<8x32xf32>
    %322 = arith.mulf %319, %311 : vector<8x32xf32>
    %323 = arith.mulf %318, %320 : vector<8x32xf32>
    %324 = arith.addf %322, %323 : vector<8x32xf32>
    %325 = math.tanh %324 : vector<8x32xf32>
    %326 = arith.mulf %321, %325 : vector<8x32xf32>
    %c0_125 = arith.constant 0 : index
    %c0_126 = arith.constant 0 : index
    %327 = vector.load %arg9[%c0_125, %c0_126] : memref<64x32xf32, #tpu.memory_space<vmem>>, vector<8x32xf32>
    tpu.vector_store %arg9[%c0_125, %c0_126], %326 {strides = array<i32>} : memref<64x32xf32, #tpu.memory_space<vmem>>, vector<8x32xf32>,
    %c8_127 = arith.constant 8 : index
    %c0_128 = arith.constant 0 : index
    %328 = vector.load %arg8[%c8_127, %c0_128] : memref<64x128xf32, #tpu.memory_space<vmem>>, vector<8x128xf32>
    %cst_129 = arith.constant dense<0.000000e+00> : vector<8x128xf32>
    %329 = tpu.matmul %326, %302, %cst_129 {dimension_numbers = #tpu.dot_dimension_numbers<[1], [0], [0], [1], [0, 0, 1, 1], [], []>} : vector<8x32xf32>, vector<32x128xf32>, vector<8x128xf32> -> vector<8x128xf32>
    %330 = arith.addf %328, %329 : vector<8x128xf32>
    %331 = math.tanh %330 : vector<8x128xf32>
    %332 = arith.mulf %331, %8 : vector<8x128xf32>
    %333 = arith.addf %332, %11 : vector<8x128xf32>
    %334 = vector.extract_strided_slice %333 {offsets = [0, 0], sizes = [8, 32], strides = [1, 1]} : vector<8x128xf32> to vector<8x32xf32>
    %335 = vector.extract_strided_slice %333 {offsets = [0, 32], sizes = [8, 32], strides = [1, 1]} : vector<8x128xf32> to vector<8x32xf32>
    %336 = vector.extract_strided_slice %333 {offsets = [0, 64], sizes = [8, 32], strides = [1, 1]} : vector<8x128xf32> to vector<8x32xf32>
    %337 = vector.extract_strided_slice %333 {offsets = [0, 96], sizes = [8, 32], strides = [1, 1]} : vector<8x128xf32> to vector<8x32xf32>
    %338 = arith.mulf %335, %324 : vector<8x32xf32>
    %339 = arith.mulf %334, %336 : vector<8x32xf32>
    %340 = arith.addf %338, %339 : vector<8x32xf32>
    %341 = math.tanh %340 : vector<8x32xf32>
    %342 = arith.mulf %337, %341 : vector<8x32xf32>
    %c8_130 = arith.constant 8 : index
    %c0_131 = arith.constant 0 : index
    %343 = vector.load %arg9[%c8_130, %c0_131] : memref<64x32xf32, #tpu.memory_space<vmem>>, vector<8x32xf32>
    tpu.vector_store %arg9[%c8_130, %c0_131], %342 {strides = array<i32>} : memref<64x32xf32, #tpu.memory_space<vmem>>, vector<8x32xf32>,
    %c16_132 = arith.constant 16 : index
    %c0_133 = arith.constant 0 : index
    %344 = vector.load %arg8[%c16_132, %c0_133] : memref<64x128xf32, #tpu.memory_space<vmem>>, vector<8x128xf32>
    %cst_134 = arith.constant dense<0.000000e+00> : vector<8x128xf32>
    %345 = tpu.matmul %342, %302, %cst_134 {dimension_numbers = #tpu.dot_dimension_numbers<[1], [0], [0], [1], [0, 0, 1, 1], [], []>} : vector<8x32xf32>, vector<32x128xf32>, vector<8x128xf32> -> vector<8x128xf32>
    %346 = arith.addf %344, %345 : vector<8x128xf32>
    %347 = math.tanh %346 : vector<8x128xf32>
    %348 = arith.mulf %347, %8 : vector<8x128xf32>
    %349 = arith.addf %348, %11 : vector<8x128xf32>
    %350 = vector.extract_strided_slice %349 {offsets = [0, 0], sizes = [8, 32], strides = [1, 1]} : vector<8x128xf32> to vector<8x32xf32>
    %351 = vector.extract_strided_slice %349 {offsets = [0, 32], sizes = [8, 32], strides = [1, 1]} : vector<8x128xf32> to vector<8x32xf32>
    %352 = vector.extract_strided_slice %349 {offsets = [0, 64], sizes = [8, 32], strides = [1, 1]} : vector<8x128xf32> to vector<8x32xf32>
    %353 = vector.extract_strided_slice %349 {offsets = [0, 96], sizes = [8, 32], strides = [1, 1]} : vector<8x128xf32> to vector<8x32xf32>
    %354 = arith.mulf %351, %340 : vector<8x32xf32>
    %355 = arith.mulf %350, %352 : vector<8x32xf32>
    %356 = arith.addf %354, %355 : vector<8x32xf32>
    %357 = math.tanh %356 : vector<8x32xf32>
    %358 = arith.mulf %353, %357 : vector<8x32xf32>
    %c16_135 = arith.constant 16 : index
    %c0_136 = arith.constant 0 : index
    %359 = vector.load %arg9[%c16_135, %c0_136] : memref<64x32xf32, #tpu.memory_space<vmem>>, vector<8x32xf32>
    tpu.vector_store %arg9[%c16_135, %c0_136], %358 {strides = array<i32>} : memref<64x32xf32, #tpu.memory_space<vmem>>, vector<8x32xf32>,
    %c24_137 = arith.constant 24 : index
    %c0_138 = arith.constant 0 : index
    %360 = vector.load %arg8[%c24_137, %c0_138] : memref<64x128xf32, #tpu.memory_space<vmem>>, vector<8x128xf32>
    %cst_139 = arith.constant dense<0.000000e+00> : vector<8x128xf32>
    %361 = tpu.matmul %358, %302, %cst_139 {dimension_numbers = #tpu.dot_dimension_numbers<[1], [0], [0], [1], [0, 0, 1, 1], [], []>} : vector<8x32xf32>, vector<32x128xf32>, vector<8x128xf32> -> vector<8x128xf32>
    %362 = arith.addf %360, %361 : vector<8x128xf32>
    %363 = math.tanh %362 : vector<8x128xf32>
    %364 = arith.mulf %363, %8 : vector<8x128xf32>
    %365 = arith.addf %364, %11 : vector<8x128xf32>
    %366 = vector.extract_strided_slice %365 {offsets = [0, 0], sizes = [8, 32], strides = [1, 1]} : vector<8x128xf32> to vector<8x32xf32>
    %367 = vector.extract_strided_slice %365 {offsets = [0, 32], sizes = [8, 32], strides = [1, 1]} : vector<8x128xf32> to vector<8x32xf32>
    %368 = vector.extract_strided_slice %365 {offsets = [0, 64], sizes = [8, 32], strides = [1, 1]} : vector<8x128xf32> to vector<8x32xf32>
    %369 = vector.extract_strided_slice %365 {offsets = [0, 96], sizes = [8, 32], strides = [1, 1]} : vector<8x128xf32> to vector<8x32xf32>
    %370 = arith.mulf %367, %356 : vector<8x32xf32>
    %371 = arith.mulf %366, %368 : vector<8x32xf32>
    %372 = arith.addf %370, %371 : vector<8x32xf32>
    %373 = math.tanh %372 : vector<8x32xf32>
    %374 = arith.mulf %369, %373 : vector<8x32xf32>
    %c24_140 = arith.constant 24 : index
    %c0_141 = arith.constant 0 : index
    %375 = vector.load %arg9[%c24_140, %c0_141] : memref<64x32xf32, #tpu.memory_space<vmem>>, vector<8x32xf32>
    tpu.vector_store %arg9[%c24_140, %c0_141], %374 {strides = array<i32>} : memref<64x32xf32, #tpu.memory_space<vmem>>, vector<8x32xf32>,
    %c32_142 = arith.constant 32 : index
    %c0_143 = arith.constant 0 : index
    %376 = vector.load %arg8[%c32_142, %c0_143] : memref<64x128xf32, #tpu.memory_space<vmem>>, vector<8x128xf32>
    %cst_144 = arith.constant dense<0.000000e+00> : vector<8x128xf32>
    %377 = tpu.matmul %374, %302, %cst_144 {dimension_numbers = #tpu.dot_dimension_numbers<[1], [0], [0], [1], [0, 0, 1, 1], [], []>} : vector<8x32xf32>, vector<32x128xf32>, vector<8x128xf32> -> vector<8x128xf32>
    %378 = arith.addf %376, %377 : vector<8x128xf32>
    %379 = math.tanh %378 : vector<8x128xf32>
    %380 = arith.mulf %379, %8 : vector<8x128xf32>
    %381 = arith.addf %380, %11 : vector<8x128xf32>
    %382 = vector.extract_strided_slice %381 {offsets = [0, 0], sizes = [8, 32], strides = [1, 1]} : vector<8x128xf32> to vector<8x32xf32>
    %383 = vector.extract_strided_slice %381 {offsets = [0, 32], sizes = [8, 32], strides = [1, 1]} : vector<8x128xf32> to vector<8x32xf32>
    %384 = vector.extract_strided_slice %381 {offsets = [0, 64], sizes = [8, 32], strides = [1, 1]} : vector<8x128xf32> to vector<8x32xf32>
    %385 = vector.extract_strided_slice %381 {offsets = [0, 96], sizes = [8, 32], strides = [1, 1]} : vector<8x128xf32> to vector<8x32xf32>
    %386 = arith.mulf %383, %372 : vector<8x32xf32>
    %387 = arith.mulf %382, %384 : vector<8x32xf32>
    %388 = arith.addf %386, %387 : vector<8x32xf32>
    %389 = math.tanh %388 : vector<8x32xf32>
    %390 = arith.mulf %385, %389 : vector<8x32xf32>
    %c32_145 = arith.constant 32 : index
    %c0_146 = arith.constant 0 : index
    %391 = vector.load %arg9[%c32_145, %c0_146] : memref<64x32xf32, #tpu.memory_space<vmem>>, vector<8x32xf32>
    tpu.vector_store %arg9[%c32_145, %c0_146], %390 {strides = array<i32>} : memref<64x32xf32, #tpu.memory_space<vmem>>, vector<8x32xf32>,
    %c40_147 = arith.constant 40 : index
    %c0_148 = arith.constant 0 : index
    %392 = vector.load %arg8[%c40_147, %c0_148] : memref<64x128xf32, #tpu.memory_space<vmem>>, vector<8x128xf32>
    %cst_149 = arith.constant dense<0.000000e+00> : vector<8x128xf32>
    %393 = tpu.matmul %390, %302, %cst_149 {dimension_numbers = #tpu.dot_dimension_numbers<[1], [0], [0], [1], [0, 0, 1, 1], [], []>} : vector<8x32xf32>, vector<32x128xf32>, vector<8x128xf32> -> vector<8x128xf32>
    %394 = arith.addf %392, %393 : vector<8x128xf32>
    %395 = math.tanh %394 : vector<8x128xf32>
    %396 = arith.mulf %395, %8 : vector<8x128xf32>
    %397 = arith.addf %396, %11 : vector<8x128xf32>
    %398 = vector.extract_strided_slice %397 {offsets = [0, 0], sizes = [8, 32], strides = [1, 1]} : vector<8x128xf32> to vector<8x32xf32>
    %399 = vector.extract_strided_slice %397 {offsets = [0, 32], sizes = [8, 32], strides = [1, 1]} : vector<8x128xf32> to vector<8x32xf32>
    %400 = vector.extract_strided_slice %397 {offsets = [0, 64], sizes = [8, 32], strides = [1, 1]} : vector<8x128xf32> to vector<8x32xf32>
    %401 = vector.extract_strided_slice %397 {offsets = [0, 96], sizes = [8, 32], strides = [1, 1]} : vector<8x128xf32> to vector<8x32xf32>
    %402 = arith.mulf %399, %388 : vector<8x32xf32>
    %403 = arith.mulf %398, %400 : vector<8x32xf32>
    %404 = arith.addf %402, %403 : vector<8x32xf32>
    %405 = math.tanh %404 : vector<8x32xf32>
    %406 = arith.mulf %401, %405 : vector<8x32xf32>
    %c40_150 = arith.constant 40 : index
    %c0_151 = arith.constant 0 : index
    %407 = vector.load %arg9[%c40_150, %c0_151] : memref<64x32xf32, #tpu.memory_space<vmem>>, vector<8x32xf32>
    tpu.vector_store %arg9[%c40_150, %c0_151], %406 {strides = array<i32>} : memref<64x32xf32, #tpu.memory_space<vmem>>, vector<8x32xf32>,
    %c48_152 = arith.constant 48 : index
    %c0_153 = arith.constant 0 : index
    %408 = vector.load %arg8[%c48_152, %c0_153] : memref<64x128xf32, #tpu.memory_space<vmem>>, vector<8x128xf32>
    %cst_154 = arith.constant dense<0.000000e+00> : vector<8x128xf32>
    %409 = tpu.matmul %406, %302, %cst_154 {dimension_numbers = #tpu.dot_dimension_numbers<[1], [0], [0], [1], [0, 0, 1, 1], [], []>} : vector<8x32xf32>, vector<32x128xf32>, vector<8x128xf32> -> vector<8x128xf32>
    %410 = arith.addf %408, %409 : vector<8x128xf32>
    %411 = math.tanh %410 : vector<8x128xf32>
    %412 = arith.mulf %411, %8 : vector<8x128xf32>
    %413 = arith.addf %412, %11 : vector<8x128xf32>
    %414 = vector.extract_strided_slice %413 {offsets = [0, 0], sizes = [8, 32], strides = [1, 1]} : vector<8x128xf32> to vector<8x32xf32>
    %415 = vector.extract_strided_slice %413 {offsets = [0, 32], sizes = [8, 32], strides = [1, 1]} : vector<8x128xf32> to vector<8x32xf32>
    %416 = vector.extract_strided_slice %413 {offsets = [0, 64], sizes = [8, 32], strides = [1, 1]} : vector<8x128xf32> to vector<8x32xf32>
    %417 = vector.extract_strided_slice %413 {offsets = [0, 96], sizes = [8, 32], strides = [1, 1]} : vector<8x128xf32> to vector<8x32xf32>
    %418 = arith.mulf %415, %404 : vector<8x32xf32>
    %419 = arith.mulf %414, %416 : vector<8x32xf32>
    %420 = arith.addf %418, %419 : vector<8x32xf32>
    %421 = math.tanh %420 : vector<8x32xf32>
    %422 = arith.mulf %417, %421 : vector<8x32xf32>
    %c48_155 = arith.constant 48 : index
    %c0_156 = arith.constant 0 : index
    %423 = vector.load %arg9[%c48_155, %c0_156] : memref<64x32xf32, #tpu.memory_space<vmem>>, vector<8x32xf32>
    tpu.vector_store %arg9[%c48_155, %c0_156], %422 {strides = array<i32>} : memref<64x32xf32, #tpu.memory_space<vmem>>, vector<8x32xf32>,
    %c56_157 = arith.constant 56 : index
    %c0_158 = arith.constant 0 : index
    %424 = vector.load %arg8[%c56_157, %c0_158] : memref<64x128xf32, #tpu.memory_space<vmem>>, vector<8x128xf32>
    %cst_159 = arith.constant dense<0.000000e+00> : vector<8x128xf32>
    %425 = tpu.matmul %422, %302, %cst_159 {dimension_numbers = #tpu.dot_dimension_numbers<[1], [0], [0], [1], [0, 0, 1, 1], [], []>} : vector<8x32xf32>, vector<32x128xf32>, vector<8x128xf32> -> vector<8x128xf32>
    %426 = arith.addf %424, %425 : vector<8x128xf32>
    %427 = math.tanh %426 : vector<8x128xf32>
    %428 = arith.mulf %427, %8 : vector<8x128xf32>
    %429 = arith.addf %428, %11 : vector<8x128xf32>
    %430 = vector.extract_strided_slice %429 {offsets = [0, 0], sizes = [8, 32], strides = [1, 1]} : vector<8x128xf32> to vector<8x32xf32>
    %431 = vector.extract_strided_slice %429 {offsets = [0, 32], sizes = [8, 32], strides = [1, 1]} : vector<8x128xf32> to vector<8x32xf32>
    %432 = vector.extract_strided_slice %429 {offsets = [0, 64], sizes = [8, 32], strides = [1, 1]} : vector<8x128xf32> to vector<8x32xf32>
    %433 = vector.extract_strided_slice %429 {offsets = [0, 96], sizes = [8, 32], strides = [1, 1]} : vector<8x128xf32> to vector<8x32xf32>
    %434 = arith.mulf %431, %420 : vector<8x32xf32>
    %435 = arith.mulf %430, %432 : vector<8x32xf32>
    %436 = arith.addf %434, %435 : vector<8x32xf32>
    %437 = math.tanh %436 : vector<8x32xf32>
    %438 = arith.mulf %433, %437 : vector<8x32xf32>
    %c56_160 = arith.constant 56 : index
    %c0_161 = arith.constant 0 : index
    %439 = vector.load %arg9[%c56_160, %c0_161] : memref<64x32xf32, #tpu.memory_space<vmem>>, vector<8x32xf32>
    tpu.vector_store %arg9[%c56_160, %c0_161], %438 {strides = array<i32>} : memref<64x32xf32, #tpu.memory_space<vmem>>, vector<8x32xf32>,
    %c3 = arith.constant 3 : index
    %c0_162 = arith.constant 0 : index
    %c0_163 = arith.constant 0 : index
    %440 = vector.load %arg4[%c3, %c0_162, %c0_163] : memref<4x1x128xf32, #tpu.memory_space<vmem>>, vector<1x1x128xf32>
    %441 = vector.shape_cast %440 : vector<1x1x128xf32> to vector<1x128xf32>
    %c3_164 = arith.constant 3 : index
    %c0_165 = arith.constant 0 : index
    %c0_166 = arith.constant 0 : index
    %442 = vector.load %arg3[%c3_164, %c0_165, %c0_166] : memref<4x32x128xf32, #tpu.memory_space<vmem>>, vector<1x32x128xf32>
    %443 = vector.shape_cast %442 : vector<1x32x128xf32> to vector<32x128xf32>
    %c0_167 = arith.constant 0 : index
    %c0_168 = arith.constant 0 : index
    %444 = vector.load %arg9[%c0_167, %c0_168] : memref<64x32xf32, #tpu.memory_space<vmem>>, vector<64x32xf32>
    %c2_169 = arith.constant 2 : index
    %c0_170 = arith.constant 0 : index
    %c0_171 = arith.constant 0 : index
    %445 = vector.load %arg2[%c2_169, %c0_170, %c0_171] : memref<3x32x128xf32, #tpu.memory_space<vmem>>, vector<1x32x128xf32>
    %446 = vector.shape_cast %445 : vector<1x32x128xf32> to vector<32x128xf32>
    %cst_172 = arith.constant dense<0.000000e+00> : vector<64x128xf32>
    %447 = tpu.matmul %444, %446, %cst_172 {dimension_numbers = #tpu.dot_dimension_numbers<[1], [0], [0], [1], [0, 0, 1, 1], [], []>} : vector<64x32xf32>, vector<32x128xf32>, vector<64x128xf32> -> vector<64x128xf32>
    %448 = vector.broadcast %441 : vector<1x128xf32> to vector<64x128xf32>
    %449 = arith.addf %447, %448 : vector<64x128xf32>
    %c0_173 = arith.constant 0 : index
    %c0_174 = arith.constant 0 : index
    %450 = vector.load %arg8[%c0_173, %c0_174] : memref<64x128xf32, #tpu.memory_space<vmem>>, vector<64x128xf32>
    tpu.vector_store %arg8[%c0_173, %c0_174], %449 {strides = array<i32>} : memref<64x128xf32, #tpu.memory_space<vmem>>, vector<64x128xf32>,
    %cst_175 = arith.constant 0.000000e+00 : f32
    %451 = vector.broadcast %cst_175 : f32 to vector<8x32xf32>
    %cst_176 = arith.constant 0.000000e+00 : f32
    %452 = vector.broadcast %cst_176 : f32 to vector<8x32xf32>
    %c0_177 = arith.constant 0 : index
    %c0_178 = arith.constant 0 : index
    %453 = vector.load %arg8[%c0_177, %c0_178] : memref<64x128xf32, #tpu.memory_space<vmem>>, vector<8x128xf32>
    %cst_179 = arith.constant dense<0.000000e+00> : vector<8x128xf32>
    %454 = tpu.matmul %451, %443, %cst_179 {dimension_numbers = #tpu.dot_dimension_numbers<[1], [0], [0], [1], [0, 0, 1, 1], [], []>} : vector<8x32xf32>, vector<32x128xf32>, vector<8x128xf32> -> vector<8x128xf32>
    %455 = arith.addf %453, %454 : vector<8x128xf32>
    %456 = math.tanh %455 : vector<8x128xf32>
    %457 = arith.mulf %456, %8 : vector<8x128xf32>
    %458 = arith.addf %457, %11 : vector<8x128xf32>
    %459 = vector.extract_strided_slice %458 {offsets = [0, 0], sizes = [8, 32], strides = [1, 1]} : vector<8x128xf32> to vector<8x32xf32>
    %460 = vector.extract_strided_slice %458 {offsets = [0, 32], sizes = [8, 32], strides = [1, 1]} : vector<8x128xf32> to vector<8x32xf32>
    %461 = vector.extract_strided_slice %458 {offsets = [0, 64], sizes = [8, 32], strides = [1, 1]} : vector<8x128xf32> to vector<8x32xf32>
    %462 = vector.extract_strided_slice %458 {offsets = [0, 96], sizes = [8, 32], strides = [1, 1]} : vector<8x128xf32> to vector<8x32xf32>
    %463 = arith.mulf %460, %452 : vector<8x32xf32>
    %464 = arith.mulf %459, %461 : vector<8x32xf32>
    %465 = arith.addf %463, %464 : vector<8x32xf32>
    %466 = math.tanh %465 : vector<8x32xf32>
    %467 = arith.mulf %462, %466 : vector<8x32xf32>
    %c0_180 = arith.constant 0 : index
    %c0_181 = arith.constant 0 : index
    %468 = vector.load %arg9[%c0_180, %c0_181] : memref<64x32xf32, #tpu.memory_space<vmem>>, vector<8x32xf32>
    tpu.vector_store %arg9[%c0_180, %c0_181], %467 {strides = array<i32>} : memref<64x32xf32, #tpu.memory_space<vmem>>, vector<8x32xf32>,
    %c8_182 = arith.constant 8 : index
    %c0_183 = arith.constant 0 : index
    %469 = vector.load %arg8[%c8_182, %c0_183] : memref<64x128xf32, #tpu.memory_space<vmem>>, vector<8x128xf32>
    %cst_184 = arith.constant dense<0.000000e+00> : vector<8x128xf32>
    %470 = tpu.matmul %467, %443, %cst_184 {dimension_numbers = #tpu.dot_dimension_numbers<[1], [0], [0], [1], [0, 0, 1, 1], [], []>} : vector<8x32xf32>, vector<32x128xf32>, vector<8x128xf32> -> vector<8x128xf32>
    %471 = arith.addf %469, %470 : vector<8x128xf32>
    %472 = math.tanh %471 : vector<8x128xf32>
    %473 = arith.mulf %472, %8 : vector<8x128xf32>
    %474 = arith.addf %473, %11 : vector<8x128xf32>
    %475 = vector.extract_strided_slice %474 {offsets = [0, 0], sizes = [8, 32], strides = [1, 1]} : vector<8x128xf32> to vector<8x32xf32>
    %476 = vector.extract_strided_slice %474 {offsets = [0, 32], sizes = [8, 32], strides = [1, 1]} : vector<8x128xf32> to vector<8x32xf32>
    %477 = vector.extract_strided_slice %474 {offsets = [0, 64], sizes = [8, 32], strides = [1, 1]} : vector<8x128xf32> to vector<8x32xf32>
    %478 = vector.extract_strided_slice %474 {offsets = [0, 96], sizes = [8, 32], strides = [1, 1]} : vector<8x128xf32> to vector<8x32xf32>
    %479 = arith.mulf %476, %465 : vector<8x32xf32>
    %480 = arith.mulf %475, %477 : vector<8x32xf32>
    %481 = arith.addf %479, %480 : vector<8x32xf32>
    %482 = math.tanh %481 : vector<8x32xf32>
    %483 = arith.mulf %478, %482 : vector<8x32xf32>
    %c8_185 = arith.constant 8 : index
    %c0_186 = arith.constant 0 : index
    %484 = vector.load %arg9[%c8_185, %c0_186] : memref<64x32xf32, #tpu.memory_space<vmem>>, vector<8x32xf32>
    tpu.vector_store %arg9[%c8_185, %c0_186], %483 {strides = array<i32>} : memref<64x32xf32, #tpu.memory_space<vmem>>, vector<8x32xf32>,
    %c16_187 = arith.constant 16 : index
    %c0_188 = arith.constant 0 : index
    %485 = vector.load %arg8[%c16_187, %c0_188] : memref<64x128xf32, #tpu.memory_space<vmem>>, vector<8x128xf32>
    %cst_189 = arith.constant dense<0.000000e+00> : vector<8x128xf32>
    %486 = tpu.matmul %483, %443, %cst_189 {dimension_numbers = #tpu.dot_dimension_numbers<[1], [0], [0], [1], [0, 0, 1, 1], [], []>} : vector<8x32xf32>, vector<32x128xf32>, vector<8x128xf32> -> vector<8x128xf32>
    %487 = arith.addf %485, %486 : vector<8x128xf32>
    %488 = math.tanh %487 : vector<8x128xf32>
    %489 = arith.mulf %488, %8 : vector<8x128xf32>
    %490 = arith.addf %489, %11 : vector<8x128xf32>
    %491 = vector.extract_strided_slice %490 {offsets = [0, 0], sizes = [8, 32], strides = [1, 1]} : vector<8x128xf32> to vector<8x32xf32>
    %492 = vector.extract_strided_slice %490 {offsets = [0, 32], sizes = [8, 32], strides = [1, 1]} : vector<8x128xf32> to vector<8x32xf32>
    %493 = vector.extract_strided_slice %490 {offsets = [0, 64], sizes = [8, 32], strides = [1, 1]} : vector<8x128xf32> to vector<8x32xf32>
    %494 = vector.extract_strided_slice %490 {offsets = [0, 96], sizes = [8, 32], strides = [1, 1]} : vector<8x128xf32> to vector<8x32xf32>
    %495 = arith.mulf %492, %481 : vector<8x32xf32>
    %496 = arith.mulf %491, %493 : vector<8x32xf32>
    %497 = arith.addf %495, %496 : vector<8x32xf32>
    %498 = math.tanh %497 : vector<8x32xf32>
    %499 = arith.mulf %494, %498 : vector<8x32xf32>
    %c16_190 = arith.constant 16 : index
    %c0_191 = arith.constant 0 : index
    %500 = vector.load %arg9[%c16_190, %c0_191] : memref<64x32xf32, #tpu.memory_space<vmem>>, vector<8x32xf32>
    tpu.vector_store %arg9[%c16_190, %c0_191], %499 {strides = array<i32>} : memref<64x32xf32, #tpu.memory_space<vmem>>, vector<8x32xf32>,
    %c24_192 = arith.constant 24 : index
    %c0_193 = arith.constant 0 : index
    %501 = vector.load %arg8[%c24_192, %c0_193] : memref<64x128xf32, #tpu.memory_space<vmem>>, vector<8x128xf32>
    %cst_194 = arith.constant dense<0.000000e+00> : vector<8x128xf32>
    %502 = tpu.matmul %499, %443, %cst_194 {dimension_numbers = #tpu.dot_dimension_numbers<[1], [0], [0], [1], [0, 0, 1, 1], [], []>} : vector<8x32xf32>, vector<32x128xf32>, vector<8x128xf32> -> vector<8x128xf32>
    %503 = arith.addf %501, %502 : vector<8x128xf32>
    %504 = math.tanh %503 : vector<8x128xf32>
    %505 = arith.mulf %504, %8 : vector<8x128xf32>
    %506 = arith.addf %505, %11 : vector<8x128xf32>
    %507 = vector.extract_strided_slice %506 {offsets = [0, 0], sizes = [8, 32], strides = [1, 1]} : vector<8x128xf32> to vector<8x32xf32>
    %508 = vector.extract_strided_slice %506 {offsets = [0, 32], sizes = [8, 32], strides = [1, 1]} : vector<8x128xf32> to vector<8x32xf32>
    %509 = vector.extract_strided_slice %506 {offsets = [0, 64], sizes = [8, 32], strides = [1, 1]} : vector<8x128xf32> to vector<8x32xf32>
    %510 = vector.extract_strided_slice %506 {offsets = [0, 96], sizes = [8, 32], strides = [1, 1]} : vector<8x128xf32> to vector<8x32xf32>
    %511 = arith.mulf %508, %497 : vector<8x32xf32>
    %512 = arith.mulf %507, %509 : vector<8x32xf32>
    %513 = arith.addf %511, %512 : vector<8x32xf32>
    %514 = math.tanh %513 : vector<8x32xf32>
    %515 = arith.mulf %510, %514 : vector<8x32xf32>
    %c24_195 = arith.constant 24 : index
    %c0_196 = arith.constant 0 : index
    %516 = vector.load %arg9[%c24_195, %c0_196] : memref<64x32xf32, #tpu.memory_space<vmem>>, vector<8x32xf32>
    tpu.vector_store %arg9[%c24_195, %c0_196], %515 {strides = array<i32>} : memref<64x32xf32, #tpu.memory_space<vmem>>, vector<8x32xf32>,
    %c32_197 = arith.constant 32 : index
    %c0_198 = arith.constant 0 : index
    %517 = vector.load %arg8[%c32_197, %c0_198] : memref<64x128xf32, #tpu.memory_space<vmem>>, vector<8x128xf32>
    %cst_199 = arith.constant dense<0.000000e+00> : vector<8x128xf32>
    %518 = tpu.matmul %515, %443, %cst_199 {dimension_numbers = #tpu.dot_dimension_numbers<[1], [0], [0], [1], [0, 0, 1, 1], [], []>} : vector<8x32xf32>, vector<32x128xf32>, vector<8x128xf32> -> vector<8x128xf32>
    %519 = arith.addf %517, %518 : vector<8x128xf32>
    %520 = math.tanh %519 : vector<8x128xf32>
    %521 = arith.mulf %520, %8 : vector<8x128xf32>
    %522 = arith.addf %521, %11 : vector<8x128xf32>
    %523 = vector.extract_strided_slice %522 {offsets = [0, 0], sizes = [8, 32], strides = [1, 1]} : vector<8x128xf32> to vector<8x32xf32>
    %524 = vector.extract_strided_slice %522 {offsets = [0, 32], sizes = [8, 32], strides = [1, 1]} : vector<8x128xf32> to vector<8x32xf32>
    %525 = vector.extract_strided_slice %522 {offsets = [0, 64], sizes = [8, 32], strides = [1, 1]} : vector<8x128xf32> to vector<8x32xf32>
    %526 = vector.extract_strided_slice %522 {offsets = [0, 96], sizes = [8, 32], strides = [1, 1]} : vector<8x128xf32> to vector<8x32xf32>
    %527 = arith.mulf %524, %513 : vector<8x32xf32>
    %528 = arith.mulf %523, %525 : vector<8x32xf32>
    %529 = arith.addf %527, %528 : vector<8x32xf32>
    %530 = math.tanh %529 : vector<8x32xf32>
    %531 = arith.mulf %526, %530 : vector<8x32xf32>
    %c32_200 = arith.constant 32 : index
    %c0_201 = arith.constant 0 : index
    %532 = vector.load %arg9[%c32_200, %c0_201] : memref<64x32xf32, #tpu.memory_space<vmem>>, vector<8x32xf32>
    tpu.vector_store %arg9[%c32_200, %c0_201], %531 {strides = array<i32>} : memref<64x32xf32, #tpu.memory_space<vmem>>, vector<8x32xf32>,
    %c40_202 = arith.constant 40 : index
    %c0_203 = arith.constant 0 : index
    %533 = vector.load %arg8[%c40_202, %c0_203] : memref<64x128xf32, #tpu.memory_space<vmem>>, vector<8x128xf32>
    %cst_204 = arith.constant dense<0.000000e+00> : vector<8x128xf32>
    %534 = tpu.matmul %531, %443, %cst_204 {dimension_numbers = #tpu.dot_dimension_numbers<[1], [0], [0], [1], [0, 0, 1, 1], [], []>} : vector<8x32xf32>, vector<32x128xf32>, vector<8x128xf32> -> vector<8x128xf32>
    %535 = arith.addf %533, %534 : vector<8x128xf32>
    %536 = math.tanh %535 : vector<8x128xf32>
    %537 = arith.mulf %536, %8 : vector<8x128xf32>
    %538 = arith.addf %537, %11 : vector<8x128xf32>
    %539 = vector.extract_strided_slice %538 {offsets = [0, 0], sizes = [8, 32], strides = [1, 1]} : vector<8x128xf32> to vector<8x32xf32>
    %540 = vector.extract_strided_slice %538 {offsets = [0, 32], sizes = [8, 32], strides = [1, 1]} : vector<8x128xf32> to vector<8x32xf32>
    %541 = vector.extract_strided_slice %538 {offsets = [0, 64], sizes = [8, 32], strides = [1, 1]} : vector<8x128xf32> to vector<8x32xf32>
    %542 = vector.extract_strided_slice %538 {offsets = [0, 96], sizes = [8, 32], strides = [1, 1]} : vector<8x128xf32> to vector<8x32xf32>
    %543 = arith.mulf %540, %529 : vector<8x32xf32>
    %544 = arith.mulf %539, %541 : vector<8x32xf32>
    %545 = arith.addf %543, %544 : vector<8x32xf32>
    %546 = math.tanh %545 : vector<8x32xf32>
    %547 = arith.mulf %542, %546 : vector<8x32xf32>
    %c40_205 = arith.constant 40 : index
    %c0_206 = arith.constant 0 : index
    %548 = vector.load %arg9[%c40_205, %c0_206] : memref<64x32xf32, #tpu.memory_space<vmem>>, vector<8x32xf32>
    tpu.vector_store %arg9[%c40_205, %c0_206], %547 {strides = array<i32>} : memref<64x32xf32, #tpu.memory_space<vmem>>, vector<8x32xf32>,
    %c48_207 = arith.constant 48 : index
    %c0_208 = arith.constant 0 : index
    %549 = vector.load %arg8[%c48_207, %c0_208] : memref<64x128xf32, #tpu.memory_space<vmem>>, vector<8x128xf32>
    %cst_209 = arith.constant dense<0.000000e+00> : vector<8x128xf32>
    %550 = tpu.matmul %547, %443, %cst_209 {dimension_numbers = #tpu.dot_dimension_numbers<[1], [0], [0], [1], [0, 0, 1, 1], [], []>} : vector<8x32xf32>, vector<32x128xf32>, vector<8x128xf32> -> vector<8x128xf32>
    %551 = arith.addf %549, %550 : vector<8x128xf32>
    %552 = math.tanh %551 : vector<8x128xf32>
    %553 = arith.mulf %552, %8 : vector<8x128xf32>
    %554 = arith.addf %553, %11 : vector<8x128xf32>
    %555 = vector.extract_strided_slice %554 {offsets = [0, 0], sizes = [8, 32], strides = [1, 1]} : vector<8x128xf32> to vector<8x32xf32>
    %556 = vector.extract_strided_slice %554 {offsets = [0, 32], sizes = [8, 32], strides = [1, 1]} : vector<8x128xf32> to vector<8x32xf32>
    %557 = vector.extract_strided_slice %554 {offsets = [0, 64], sizes = [8, 32], strides = [1, 1]} : vector<8x128xf32> to vector<8x32xf32>
    %558 = vector.extract_strided_slice %554 {offsets = [0, 96], sizes = [8, 32], strides = [1, 1]} : vector<8x128xf32> to vector<8x32xf32>
    %559 = arith.mulf %556, %545 : vector<8x32xf32>
    %560 = arith.mulf %555, %557 : vector<8x32xf32>
    %561 = arith.addf %559, %560 : vector<8x32xf32>
    %562 = math.tanh %561 : vector<8x32xf32>
    %563 = arith.mulf %558, %562 : vector<8x32xf32>
    %c48_210 = arith.constant 48 : index
    %c0_211 = arith.constant 0 : index
    %564 = vector.load %arg9[%c48_210, %c0_211] : memref<64x32xf32, #tpu.memory_space<vmem>>, vector<8x32xf32>
    tpu.vector_store %arg9[%c48_210, %c0_211], %563 {strides = array<i32>} : memref<64x32xf32, #tpu.memory_space<vmem>>, vector<8x32xf32>,
    %c56_212 = arith.constant 56 : index
    %c0_213 = arith.constant 0 : index
    %565 = vector.load %arg8[%c56_212, %c0_213] : memref<64x128xf32, #tpu.memory_space<vmem>>, vector<8x128xf32>
    %cst_214 = arith.constant dense<0.000000e+00> : vector<8x128xf32>
    %566 = tpu.matmul %563, %443, %cst_214 {dimension_numbers = #tpu.dot_dimension_numbers<[1], [0], [0], [1], [0, 0, 1, 1], [], []>} : vector<8x32xf32>, vector<32x128xf32>, vector<8x128xf32> -> vector<8x128xf32>
    %567 = arith.addf %565, %566 : vector<8x128xf32>
    %568 = math.tanh %567 : vector<8x128xf32>
    %569 = arith.mulf %568, %8 : vector<8x128xf32>
    %570 = arith.addf %569, %11 : vector<8x128xf32>
    %571 = vector.extract_strided_slice %570 {offsets = [0, 0], sizes = [8, 32], strides = [1, 1]} : vector<8x128xf32> to vector<8x32xf32>
    %572 = vector.extract_strided_slice %570 {offsets = [0, 32], sizes = [8, 32], strides = [1, 1]} : vector<8x128xf32> to vector<8x32xf32>
    %573 = vector.extract_strided_slice %570 {offsets = [0, 64], sizes = [8, 32], strides = [1, 1]} : vector<8x128xf32> to vector<8x32xf32>
    %574 = vector.extract_strided_slice %570 {offsets = [0, 96], sizes = [8, 32], strides = [1, 1]} : vector<8x128xf32> to vector<8x32xf32>
    %575 = arith.mulf %572, %561 : vector<8x32xf32>
    %576 = arith.mulf %571, %573 : vector<8x32xf32>
    %577 = arith.addf %575, %576 : vector<8x32xf32>
    %578 = math.tanh %577 : vector<8x32xf32>
    %579 = arith.mulf %574, %578 : vector<8x32xf32>
    %c56_215 = arith.constant 56 : index
    %c0_216 = arith.constant 0 : index
    %580 = vector.load %arg9[%c56_215, %c0_216] : memref<64x32xf32, #tpu.memory_space<vmem>>, vector<8x32xf32>
    tpu.vector_store %arg9[%c56_215, %c0_216], %579 {strides = array<i32>} : memref<64x32xf32, #tpu.memory_space<vmem>>, vector<8x32xf32>,
    %c0_217 = arith.constant 0 : index
    %c0_218 = arith.constant 0 : index
    %581 = vector.load %arg9[%c0_217, %c0_218] : memref<64x32xf32, #tpu.memory_space<vmem>>, vector<64x32xf32>
    %c0_219 = arith.constant 0 : index
    %c0_220 = arith.constant 0 : index
    %582 = vector.load %arg5[%c0_219, %c0_220] : memref<32x128xf32, #tpu.memory_space<vmem>>, vector<32x128xf32>
    %cst_221 = arith.constant dense<0.000000e+00> : vector<64x128xf32>
    %583 = tpu.matmul %581, %582, %cst_221 {dimension_numbers = #tpu.dot_dimension_numbers<[1], [0], [0], [1], [0, 0, 1, 1], [], []>} : vector<64x32xf32>, vector<32x128xf32>, vector<64x128xf32> -> vector<64x128xf32>
    %c0_222 = arith.constant 0 : index
    %c0_223 = arith.constant 0 : index
    %584 = vector.load %arg6[%c0_222, %c0_223] : memref<1x128xf32, #tpu.memory_space<vmem>>, vector<1x128xf32>
    %585 = vector.broadcast %584 : vector<1x128xf32> to vector<64x128xf32>
    %586 = arith.addf %583, %585 : vector<64x128xf32>
    %c0_224 = arith.constant 0 : index
    %c0_225 = arith.constant 0 : index
    %587 = vector.load %arg7[%c0_224, %c0_225] : memref<64x128xf32, #tpu.memory_space<vmem>>, vector<64x128xf32>
    tpu.vector_store %arg7[%c0_224, %c0_225], %586 {strides = array<i32>} : memref<64x128xf32, #tpu.memory_space<vmem>>, vector<64x128xf32>,
    return
  }
}

</mosaic_0001>

<bundles_post_ra>
// kernel: model_lm_forward.1
= control target key start
LH: loop header
LB: loop body
LE: loop exit
PB: predicated region body
PF: predicated region fallthrough
CT: control target
= control target key end

     0   :  { %12 = vsyncpa [#allocation5], 0  ;;  %s3184_s0 = inlined_call_operand.vmem [shape: s32[64,1], index: 0, kind: input, shape index: {}]   ;;  %s3185_s1 = inlined_call_operand.hbm [shape: f32[128,128], index: 1, kind: input, shape index: {}]   ;;  %s3186_s2 = inlined_call_operand.vmem [shape: f32[3,32,128], index: 2, kind: input, shape index: {}]   ;;  %s3187_s3 = inlined_call_operand.hbm [shape: f32[4,32,128], index: 3, kind: input, shape index: {}]   ;;  %s3188_s4 = inlined_call_operand.vmem [shape: f32[4,1,128], index: 4, kind: input, shape index: {}]   ;;  %s3189_s5 = inlined_call_operand.hbm [shape: f32[32,128], index: 5, kind: input, shape index: {}]   ;;  %s3190_s6 = inlined_call_operand.vmem [shape: f32[1,128], index: 6, kind: input, shape index: {}]   ;;  %s3191_s7 = inlined_call_operand.vmem [shape: f32[64,128], index: 7, kind: output, shape index: {}]  }
   0x1   :  { %13 = vsyncpa [#allocation7], 0  ;;  %s35_s26 = sshll.u32 %s3187_s3, 4  ;;  %s2455_s27 = smov [#allocation6]   ;;  %s36_s26 = int_to_ptr.hbm [resolvable:$true] %s35_s26 }
   0x2   :  { %s37_s28 = sshll.u32 %s2455_s27, 4  ;;  %s20_s8 = sshll.u32 %s3185_s1, 4  ;;  %s38_s28 = int_to_ptr.vmem [resolvable:$true] %s37_s28  ;;  %s21_s8 = int_to_ptr.hbm [resolvable:$true] %s20_s8 }
   0x3   :  { %s2456_s9 = smov 128   ;;  %s2457_s10 = smov 8  }
   0x4   :  { %43 = dma.hbm_to_vmem [thread:$0]  %s36_s26, 2048, %s38_s28, [#allocation7], %s2456_s9, %s2456_s9, %s2457_s10  }
   0x5   :  { %s2458_s11 = smov [#allocation4]   ;;  %s50_s15 = sshll.u32 %s3189_s5, 4  ;;  %s51_s15 = int_to_ptr.hbm [resolvable:$true] %s50_s15 }
   0x6   :  { %s22_s12 = sshll.u32 %s2458_s11, 4  ;;  %s2459_s3 = smov [#allocation8]   ;;  %s23_s12 = int_to_ptr.vmem [resolvable:$true] %s22_s12 }
   0x7   :  { %28 = dma.hbm_to_vmem [thread:$0]  %s21_s8, 2048, %s23_s12, [#allocation5], %s2456_s9, %s2456_s9, %s2457_s10  }
   0x8   :  { %s52_s16 = sshll.u32 %s2459_s3, 4  ;;  %s53_s16 = int_to_ptr.vmem [resolvable:$true] %s52_s16 }
   0x9   :  { %58 = dma.hbm_to_vmem [thread:$0]  %s51_s15, 512, %s53_s16, [#allocation7], %s2456_s9, %s2456_s9, %s2457_s10  }
   0xa   :  { %2451 = dma.done.wait [#allocation5], 2048  }
   0xb   :  { %2452 = vsyncadd [#allocation5], 4294965248 }
   0xc   :  { %2453 = dma.done.wait [#allocation7], 2560  }
   0xd   :  { %2454 = vsyncadd [#allocation7], 4294964736  ;;  %v2460_v0 = vmov 0   ;;  %v80_v1 = vld [vmem:[%s3184_s0] sm:$0xff]  ;;  %v148_v2 = vld [vmem:[#allocation4 + $0x78] sm:$0xff]  ;;  %v2461_v14 = vmov 0.0   ;;  %v73_v23 = vlaneseq }
   0xe   :  { %2241 = vset.pattern.permute.xlu0 %v2460_v0  ;;  %2242 = vset.pattern.permute.xlu2 %v2460_v0  ;;  %v147_v3 = vld [vmem:[#allocation4 + $0x70] sm:$0xff]  ;;  %v146_v4 = vld [vmem:[#allocation4 + $0x68] sm:$0xff]  ;;  %v145_v5 = vld [vmem:[#allocation4 + $0x60] sm:$0xff]  ;;  %v2462_v26 = vmov 1.0   ;;  %v2463_v32 = vmov 0.5   ;;  %s2464_s19 = smov 64  }
   0xf   :  { %2243 = vset.pattern.permute.xlu1 %v2460_v0  ;;  %89 = vperm.xlu0 %2241, %v80_v1   ;;  %v2518_v6 = vld [vmem:[#allocation6 + $0x18] sm:$0xff]  ;;  %v2520_v7 = vld [vmem:[#allocation6 + $0x10] sm:$0xff]  ;;  %v2523_v10 = vld [vmem:[#allocation6 + $0x8] sm:$0xff]  ;;  %v2555_v24 = vand.u32 127, %v73_v23  ;;  %s2465_s20 = smov 32   ;;  %vm202_vm4 = vcmask 261120  }
  0x10   :  { %152 = vmatpush.msra.mxu0 %v148_v2  ;;  %218 = vmatpush.msra.mxu2 %v2518_v6  ;;  %v144_v8 = vld [vmem:[#allocation4 + $0x58] sm:$0xff]  ;;  %v143_v9 = vld [vmem:[#allocation4 + $0x50] sm:$0xff]  ;;  %v2528_v11 = vld [vmem:[#allocation6] sm:$0xff] }
  0x11   :  { %316 = vmatpush.msra.mxu3 %v2518_v6  ;;  %365 = vmatpush.msra.mxu1 %v2518_v6  ;;  %v142_v12 = vld [vmem:[#allocation4 + $0x48] sm:$0xff]  ;;  %v141_v13 = vld [vmem:[#allocation4 + $0x40] sm:$0xff]  ;;  %v140_v15 = vld [vmem:[#allocation4 + $0x38] sm:$0xff]  ;;  %vm75_vm1 = vcmp.ge.s32.totalorder %v2555_v24, 64  ;;  %vm76_vm2 = vcmp.lt.s32.totalorder %v2555_v24, 96 }
  0x12   :  { %153 = vmatpush.msra.mxu0 %v147_v3  ;;  %219 = vmatpush.msra.mxu2 %v2520_v7  ;;  %v139_v16 = vld [vmem:[#allocation4 + $0x30] sm:$0xff]  ;;  %v138_v17 = vld [vmem:[#allocation4 + $0x28] sm:$0xff]  ;;  %v137_v18 = vld [vmem:[#allocation4 + $0x20] sm:$0xff] }
  0x13   :  { %317 = vmatpush.msra.mxu3 %v2520_v7  ;;  %366 = vmatpush.msra.mxu1 %v2520_v7  ;;  %v136_v19 = vld [vmem:[#allocation4 + $0x18] sm:$0xff]  ;;  %v135_v20 = vld [vmem:[#allocation4 + $0x10] sm:$0xff]  ;;  %v134_v21 = vld [vmem:[#allocation4 + $0x8] sm:$0xff] }
  0x14   :  { %154 = vmatpush.msra.mxu0 %v146_v4  ;;  %220 = vmatpush.msra.mxu2 %v2523_v10  ;;  %v133_v22 = vld [vmem:[#allocation4] sm:$0xff]  ;;  %vm77_vm3 = vmand %vm75_vm1, %vm76_vm2  ;;  %v81_v46 = vld [vmem:[%s3184_s0 + $0x8] sm:$0xff] }
  0x15   :  { %318 = vmatpush.msra.mxu3 %v2523_v10  ;;  %367 = vmatpush.msra.mxu1 %v2523_v10  ;;  %v2562_v27 = vld [vmem:[%s3188_s4] ss:$0 sm:$0xff]  ;;  %v2567_v33 = vsel %vm77_vm3, 1.0, %v2463_v32  ;;  %v2569_v35 = vsel %vm77_vm3, 0.0, %v2463_v32  ;;  %v82_v62 = vld [vmem:[%s3184_s0 + $0x10] sm:$0xff] }
  0x16   :  { %155 = vmatpush.msra.mxu0 %v145_v5  ;;  %221 = vmatpush.msra.mxu2 %v2528_v11 }
  0x17   :  { %222 = vmatmul.f32.vlgmr.msra.gmra.mxu2 %v2461_v14  ;;  %319 = vmatpush.msra.mxu3 %v2528_v11 }
  0x18   :  { %156 = vmatpush.msra.mxu0 %v144_v8  ;;  %267 = vmatpush.msrb.mxu2 %v2518_v6 }
  0x19   :  { %368 = vmatpush.msra.mxu1 %v2528_v11  ;;  %463 = vmatpush.msrb.mxu3 %v2518_v6 }
  0x1a   :  { %157 = vmatpush.msra.mxu0 %v143_v9  ;;  %268 = vmatpush.msrb.mxu2 %v2520_v7 }
  0x1b   :  { %464 = vmatpush.msrb.mxu3 %v2520_v7  ;;  %512 = vmatpush.msrb.mxu1 %v2518_v6 }
  0x1c   :  { %158 = vmatpush.msra.mxu0 %v142_v12  ;;  %269 = vmatpush.msrb.mxu2 %v2523_v10 }
  0x1d   :  { %465 = vmatpush.msrb.mxu3 %v2523_v10  ;;  %513 = vmatpush.msrb.mxu1 %v2520_v7 }
  0x1e   :  { %159 = vmatpush.msra.mxu0 %v141_v13  ;;  %270 = vmatpush.msrb.mxu2 %v2528_v11 }
  0x1f   :  { %466 = vmatpush.msrb.mxu3 %v2528_v11  ;;  %514 = vmatpush.msrb.mxu1 %v2523_v10 }
  0x20   :  { %160 = vmatpush.msra.mxu0 %v140_v15  ;;  %414 = vmatpush.msra.mxu2 %v2518_v6 }
  0x21   :  { %515 = vmatpush.msrb.mxu1 %v2528_v11 }
  0x22   :  { %161 = vmatpush.msra.mxu0 %v139_v16  ;;  %415 = vmatpush.msra.mxu2 %v2520_v7 }
  0x24   :  { %162 = vmatpush.msra.mxu0 %v138_v17  ;;  %416 = vmatpush.msra.mxu2 %v2523_v10 }
  0x26   :  { %163 = vmatpush.msra.mxu0 %v137_v18  ;;  %417 = vmatpush.msra.mxu2 %v2528_v11 }
  0x28   :  { %164 = vmatpush.msra.mxu0 %v136_v19 }
  0x2a   :  { %165 = vmatpush.msra.mxu0 %v135_v20 }
  0x2c   :  { %166 = vmatpush.msra.mxu0 %v134_v21 }
  0x2e   :  { %167 = vmatpush.msra.mxu0 %v133_v22 }
  0x81   :  { %v90_v25 = vpop.permute.xlu0 %89 }
  0x82   :  { %vm112_vm0 = vcmp.eq.s32.totalorder %v2555_v24, %v90_v25 }
  0x83   :  { %2147 = vmatmul.msk.f32.vlgmr.msra.gmra.mxu0 %vm112_vm0, %v2462_v26 }
  0x9a   :  { %v223_v29 = vpop.f32.mrf.mxu2 }
 0x100   :  { %v169_v28 = vpop.f32.mrf.mxu0 }
 0x101   :  { %v170_v30 = vadd.f32 %v2562_v27, %v169_v28 }
 0x103   :  { %v226_v31 = vadd.f32 %v223_v29, %v170_v30 }
 0x105   :  { %2249 = vtanh.f32 %v226_v31 }
 0x10b   :  { %v2250_v34 = vpop.eup %2249 }
 0x10c   :  { %v228_v36 = vmul.f32 %v2250_v34, %v2567_v33 }
 0x10e   :  { %v229_v37 = vadd.f32 %v228_v36, %v2569_v35  ;;  %v84_v36 = vld [vmem:[%s3184_s0 + $0x20] sm:$0xff] }
 0x110   :  { %232 = vrot.lane.b32.xlu0 %v229_v37, %s2464_s19  ;;  %v230_v40 = vmul.f32 0.0, %v229_v37 }
 0x182   :  { %v233_v38 = vpop.permute.xlu0 %232 }
 0x183   :  { %v235_v39 = vmul.f32 %v233_v38, %v229_v37 }
 0x185   :  { %237 = vrot.lane.b32.xlu1 %v235_v39, %s2465_s20 }
 0x1f7   :  { %v238_v41 = vpop.permute.xlu1 %237 }
 0x1f8   :  { %v240_v42 = vadd.f32 %v238_v41, %v230_v40 }
 0x1fa   :  { %2251 = vtanh.f32 %v240_v42 }
 0x200   :  { %v2252_v43 = vpop.eup %2251 }
 0x201   :  { %243 = vrot.lane.b32.xlu1 %v2252_v43, %s2464_s19 }
 0x273   :  { %v244_v44 = vpop.permute.xlu1 %243 }
 0x274   :  { %v246_v45 = vmul.f32 %v244_v44, %v229_v37 }
 0x276   :  { %248 = vrot.lane.b32.xlu2 %v246_v45, %s2465_s20 }
 0x27e   :  { %92 = vperm.xlu2 %2242, %v81_v46  }
 0x2d0   :  { %v249_v47 = vpop.permute.xlu2 %248 }
 0x2d1   :  { %251 = vst.msk [vmem:[#allocation3] sm:$0xff] %vm202_vm4, %v249_v47  ;;  %2155 = vmatmul.msk.f32.vlgmr.msrb.gmra.mxu2 %vm202_vm4, %v249_v47 }
 0x2d2   :  { %561 = vmatpush.msrb.mxu2 %v2518_v6 }
 0x2d4   :  { %562 = vmatpush.msrb.mxu2 %v2520_v7 }
 0x2d6   :  { %563 = vmatpush.msrb.mxu2 %v2523_v10  ;;  %v83_v10 = vld [vmem:[%s3184_s0 + $0x18] sm:$0xff] }
 0x2d8   :  { %v93_v48 = vpop.permute.xlu2 %92  ;;  %564 = vmatpush.msrb.mxu2 %v2528_v11 }
 0x2d9   :  { %vm113_vm5 = vcmp.eq.s32.totalorder %v2555_v24, %v93_v48 }
 0x2da   :  { %2148 = vmatmul.msk.f32.gmra.mxu0 %vm113_vm5, %v2462_v26 }
 0x354   :  { %v272_v51 = vpop.f32.mrf.mxu2 }
 0x357   :  { %v172_v49 = vpop.f32.mrf.mxu0 }
 0x358   :  { %v173_v50 = vadd.f32 %v2562_v27, %v172_v49 }
 0x35a   :  { %v275_v52 = vadd.f32 %v272_v51, %v173_v50 }
 0x35c   :  { %2253 = vtanh.f32 %v275_v52 }
 0x362   :  { %v2254_v53 = vpop.eup %2253 }
 0x363   :  { %v277_v54 = vmul.f32 %v2254_v53, %v2567_v33 }
 0x365   :  { %v278_v55 = vadd.f32 %v277_v54, %v2569_v35  ;;  %v85_v54 = vld [vmem:[%s3184_s0 + $0x28] sm:$0xff] }
 0x367   :  { %281 = vrot.lane.b32.xlu0 %v278_v55, %s2464_s19  ;;  %v279_v58 = vmul.f32 %v278_v55, %v240_v42 }
 0x3d9   :  { %v282_v56 = vpop.permute.xlu0 %281 }
 0x3da   :  { %v284_v57 = vmul.f32 %v282_v56, %v278_v55 }
 0x3dc   :  { %286 = vrot.lane.b32.xlu1 %v284_v57, %s2465_s20 }
 0x3e4   :  { %95 = vperm.xlu1 %2243, %v82_v62   ;;  %v613_v62 = vld [vmem:[%s3186_s2 + $0x18] sm:$0xff] }
 0x44e   :  { %v287_v59 = vpop.permute.xlu1 %286 }
 0x44f   :  { %v289_v60 = vadd.f32 %v287_v59, %v279_v58 }
 0x451   :  { %2255 = vtanh.f32 %v289_v60 }
 0x456   :  { %v96_v1 = vpop.permute.xlu1 %95 }
 0x457   :  { %v2256_v61 = vpop.eup %2255  ;;  %vm114_vm6 = vcmp.eq.s32.totalorder %v2555_v24, %v96_v1  ;;  %v610_v1 = vld [vmem:[%s3186_s2] sm:$0xff] }
 0x458   :  { %292 = vrot.lane.b32.xlu2 %v2256_v61, %s2464_s19  ;;  %2149 = vmatmul.msk.f32.gmra.mxu0 %vm114_vm6, %v2462_v26 }
 0x4b2   :  { %v293_v63 = vpop.permute.xlu2 %292 }
 0x4b3   :  { %v295_v0 = vmul.f32 %v293_v63, %v278_v55  ;;  %v612_v63 = vld [vmem:[%s3186_s2 + $0x10] sm:$0xff] }
 0x4b5   :  { %297 = vrot.lane.b32.xlu0 %v295_v0, %s2465_s20  ;;  %v611_v0 = vld [vmem:[%s3186_s2 + $0x8] sm:$0xff] }
 0x4d5   :  { %v175_v3 = vpop.f32.mrf.mxu0 }
 0x4d6   :  { %v176_v4 = vadd.f32 %v2562_v27, %v175_v3 }
 0x527   :  { %v298_v2 = vpop.permute.xlu0 %297 }
 0x528   :  { %300 = vst.msk [vmem:[#allocation3 + $0x8] sm:$0xff] %vm202_vm4, %v298_v2  ;;  %2156 = vmatmul.msk.f32.vlgmr.msra.gmra.mxu3 %vm202_vm4, %v298_v2 }
 0x529   :  { %2226 = vmatpush.msra.mxu3 %v613_v62 }
 0x52b   :  { %2227 = vmatpush.msra.mxu3 %v612_v63 }
 0x52d   :  { %2228 = vmatpush.msra.mxu3 %v611_v0 }
 0x52f   :  { %2229 = vmatpush.msra.mxu3 %v610_v1 }
 0x5ab   :  { %v321_v5 = vpop.f32.mrf.mxu3 }
 0x5ac   :  { %v324_v6 = vadd.f32 %v321_v5, %v176_v4 }
 0x5ae   :  { %2257 = vtanh.f32 %v324_v6 }
 0x5b4   :  { %v2258_v7 = vpop.eup %2257 }
 0x5b5   :  { %v326_v8 = vmul.f32 %v2258_v7, %v2567_v33 }
 0x5b7   :  { %v327_v9 = vadd.f32 %v326_v8, %v2569_v35 }
 0x5b9   :  { %330 = vrot.lane.b32.xlu2 %v327_v9, %s2464_s19  ;;  %v328_v15 = vmul.f32 %v327_v9, %v289_v60 }
 0x5c1   :  { %98 = vperm.xlu2 %2242, %v83_v10  }
 0x613   :  { %v331_v11 = vpop.permute.xlu2 %330 }
 0x614   :  { %v333_v12 = vmul.f32 %v331_v11, %v327_v9 }
 0x616   :  { %335 = vrot.lane.b32.xlu0 %v333_v12, %s2465_s20 }
 0x61b   :  { %v99_v13 = vpop.permute.xlu2 %98 }
 0x61c   :  { %vm115_vm7 = vcmp.eq.s32.totalorder %v2555_v24, %v99_v13  ;;  %v86_v13 = vld [vmem:[%s3184_s0 + $0x30] sm:$0xff] }
 0x61d   :  { %2150 = vmatmul.msk.f32.gmra.mxu0 %vm115_vm7, %v2462_v26 }
 0x688   :  { %v336_v16 = vpop.permute.xlu0 %335 }
 0x689   :  { %v338_v17 = vadd.f32 %v336_v16, %v328_v15 }
 0x68b   :  { %2259 = vtanh.f32 %v338_v17 }
 0x691   :  { %v2260_v18 = vpop.eup %2259 }
 0x692   :  { %341 = vrot.lane.b32.xlu1 %v2260_v18, %s2464_s19 }
 0x69a   :  { %v178_v22 = vpop.f32.mrf.mxu0 }
 0x69b   :  { %v179_v23 = vadd.f32 %v2562_v27, %v178_v22  ;;  %v2672_v22 = vld [vmem:[#allocation6 + $0x38] sm:$0xff] }
 0x704   :  { %v342_v19 = vpop.permute.xlu1 %341 }
 0x705   :  { %v344_v20 = vmul.f32 %v342_v19, %v327_v9 }
 0x707   :  { %346 = vrot.lane.b32.xlu0 %v344_v20, %s2465_s20 }
 0x779   :  { %v347_v21 = vpop.permute.xlu0 %346 }
 0x77a   :  { %349 = vst.msk [vmem:[#allocation3 + $0x10] sm:$0xff] %vm202_vm4, %v347_v21  ;;  %2157 = vmatmul.msk.f32.vlgmr.msra.gmra.mxu1 %vm202_vm4, %v347_v21 }
 0x77b   :  { %653 = vmatpush.msra.mxu1 %v613_v62 }
 0x77d   :  { %654 = vmatpush.msra.mxu1 %v612_v63 }
 0x77f   :  { %655 = vmatpush.msra.mxu1 %v611_v0 }
 0x781   :  { %656 = vmatpush.msra.mxu1 %v610_v1 }
 0x7f7   :  { %v370_v25 = vpop.f32.mrf.mxu1 }
 0x7f8   :  { %v373_v28 = vadd.f32 %v370_v25, %v179_v23  ;;  %v2675_v23 = vld [vmem:[#allocation6 + $0x30] sm:$0xff]  ;;  %v2678_v25 = vld [vmem:[#allocation6 + $0x28] sm:$0xff] }
 0x7fa   :  { %2261 = vtanh.f32 %v373_v28 }
 0x800   :  { %v2262_v29 = vpop.eup %2261 }
 0x801   :  { %v375_v30 = vmul.f32 %v2262_v29, %v2567_v33  ;;  %v2683_v29 = vld [vmem:[#allocation6 + $0x20] sm:$0xff] }
 0x803   :  { %v376_v31 = vadd.f32 %v375_v30, %v2569_v35  ;;  %v602_v30 = vld [vmem:[#allocation3] sm:$0xff] }
 0x805   :  { %379 = vrot.lane.b32.xlu1 %v376_v31, %s2464_s19  ;;  %v377_v37 = vmul.f32 %v376_v31, %v338_v17 }
 0x877   :  { %v380_v32 = vpop.permute.xlu1 %379 }
 0x878   :  { %v382_v34 = vmul.f32 %v380_v32, %v376_v31  ;;  %v603_v32 = vld [vmem:[#allocation3 + $0x8] sm:$0xff] }
 0x87a   :  { %384 = vrot.lane.b32.xlu2 %v382_v34, %s2465_s20  ;;  %v604_v34 = vld [vmem:[#allocation3 + $0x10] sm:$0xff] }
 0x882   :  { %101 = vperm.xlu2 %2242, %v84_v36  }
 0x8d4   :  { %v385_v38 = vpop.permute.xlu2 %384 }
 0x8d5   :  { %v387_v39 = vadd.f32 %v385_v38, %v377_v37 }
 0x8d7   :  { %2263 = vtanh.f32 %v387_v39 }
 0x8dc   :  { %v102_v40 = vpop.permute.xlu2 %101 }
 0x8dd   :  { %v2264_v41 = vpop.eup %2263  ;;  %vm116_vm8 = vcmp.eq.s32.totalorder %v2555_v24, %v102_v40 }
 0x8de   :  { %2151 = vmatmul.msk.f32.gmra.mxu0 %vm116_vm8, %v2462_v26  ;;  %390 = vrot.lane.b32.xlu0 %v2264_v41, %s2464_s19 }
 0x950   :  { %v391_v42 = vpop.permute.xlu0 %390 }
 0x951   :  { %v393_v43 = vmul.f32 %v391_v42, %v376_v31 }
 0x953   :  { %395 = vrot.lane.b32.xlu1 %v393_v43, %s2465_s20 }
 0x95b   :  { %v181_v45 = vpop.f32.mrf.mxu0 }
 0x95c   :  { %v182_v46 = vadd.f32 %v2562_v27, %v181_v45 }
 0x9c5   :  { %v396_v44 = vpop.permute.xlu1 %395 }
 0x9c6   :  { %398 = vst.msk [vmem:[#allocation3 + $0x18] sm:$0xff] %vm202_vm4, %v396_v44  ;;  %2158 = vmatmul.msk.f32.vlgmr.msra.gmra.mxu2 %vm202_vm4, %v396_v44 }
 0x9c7   :  { %752 = vmatpush.msra.mxu2 %v2672_v22 }
 0x9c9   :  { %753 = vmatpush.msra.mxu2 %v2675_v23 }
 0x9cb   :  { %754 = vmatpush.msra.mxu2 %v2678_v25 }
 0x9cd   :  { %755 = vmatpush.msra.mxu2 %v2683_v29  ;;  %v605_v36 = vld [vmem:[#allocation3 + $0x18] sm:$0xff] }
 0xa49   :  { %v419_v47 = vpop.f32.mrf.mxu2 }
 0xa4a   :  { %v422_v48 = vadd.f32 %v419_v47, %v182_v46 }
 0xa4c   :  { %2265 = vtanh.f32 %v422_v48 }
 0xa52   :  { %v2266_v49 = vpop.eup %2265 }
 0xa53   :  { %v424_v50 = vmul.f32 %v2266_v49, %v2567_v33 }
 0xa55   :  { %v425_v51 = vadd.f32 %v424_v50, %v2569_v35 }
 0xa57   :  { %428 = vrot.lane.b32.xlu0 %v425_v51, %s2464_s19  ;;  %v426_v55 = vmul.f32 %v425_v51, %v387_v39 }
 0xac9   :  { %v429_v52 = vpop.permute.xlu0 %428 }
 0xaca   :  { %v431_v53 = vmul.f32 %v429_v52, %v425_v51 }
 0xacc   :  { %433 = vrot.lane.b32.xlu1 %v431_v53, %s2465_s20 }
 0xad4   :  { %104 = vperm.xlu1 %2243, %v85_v54  }
 0xb3e   :  { %v434_v56 = vpop.permute.xlu1 %433 }
 0xb3f   :  { %v436_v57 = vadd.f32 %v434_v56, %v426_v55 }
 0xb41   :  { %2267 = vtanh.f32 %v436_v57 }
 0xb46   :  { %v105_v58 = vpop.permute.xlu1 %104 }
 0xb47   :  { %v2268_v59 = vpop.eup %2267  ;;  %vm117_vm9 = vcmp.eq.s32.totalorder %v2555_v24, %v105_v58 }
 0xb48   :  { %2152 = vmatmul.msk.f32.gmra.mxu0 %vm117_vm9, %v2462_v26  ;;  %439 = vrot.lane.b32.xlu2 %v2268_v59, %s2464_s19 }
 0xba2   :  { %v440_v60 = vpop.permute.xlu2 %439 }
 0xba3   :  { %v442_v61 = vmul.f32 %v440_v60, %v425_v51 }
 0xba5   :  { %444 = vrot.lane.b32.xlu0 %v442_v61, %s2465_s20 }
 0xbc5   :  { %v184_v4 = vpop.f32.mrf.mxu0 }
 0xbc6   :  { %v185_v5 = vadd.f32 %v2562_v27, %v184_v4 }
 0xc17   :  { %v445_v2 = vpop.permute.xlu0 %444 }
 0xc18   :  { %447 = vst.msk [vmem:[#allocation3 + $0x20] sm:$0xff] %vm202_vm4, %v445_v2  ;;  %2159 = vmatmul.msk.f32.vlgmr.msrb.gmra.mxu3 %vm202_vm4, %v445_v2 }
 0xc1f   :  { %v606_v3 = vld [vmem:[#allocation3 + $0x20] sm:$0xff] }
 0xc20   :  { %2167 = vmatmul.msk.f32.vlgmr.msra.gmra.mxu3 %vm202_vm4, %v606_v3 }
 0xc9b   :  { %v468_v6 = vpop.f32.mrf.mxu3 }
 0xc9c   :  { %v471_v7 = vadd.f32 %v468_v6, %v185_v5 }
 0xc9e   :  { %2269 = vtanh.f32 %v471_v7 }
 0xca4   :  { %v2270_v8 = vpop.eup %2269 }
 0xca5   :  { %v473_v9 = vmul.f32 %v2270_v8, %v2567_v33 }
 0xca7   :  { %v474_v10 = vadd.f32 %v473_v9, %v2569_v35 }
 0xca9   :  { %477 = vrot.lane.b32.xlu2 %v474_v10, %s2464_s19  ;;  %v475_v15 = vmul.f32 %v474_v10, %v436_v57 }
 0xd03   :  { %v478_v11 = vpop.permute.xlu2 %477 }
 0xd04   :  { %v480_v12 = vmul.f32 %v478_v11, %v474_v10 }
 0xd06   :  { %482 = vrot.lane.b32.xlu0 %v480_v12, %s2465_s20 }
 0xd0e   :  { %107 = vperm.xlu0 %2241, %v86_v13  }
 0xd78   :  { %v483_v16 = vpop.permute.xlu0 %482 }
 0xd79   :  { %v2665_v17 = vadd.f32 %v483_v16, %v475_v15 }
 0xd7b   :  { %2271 = vtanh.f32 %v2665_v17 }
 0xd80   :  { %v108_v18 = vpop.permute.xlu0 %107 }
 0xd81   :  { %v2272_v19 = vpop.eup %2271  ;;  %vm118_vm10 = vcmp.eq.s32.totalorder %v2555_v24, %v108_v18 }
 0xd82   :  { %2153 = vmatmul.msk.f32.gmra.mxu0 %vm118_vm10, %v2462_v26  ;;  %488 = vrot.lane.b32.xlu1 %v2272_v19, %s2464_s19 }
 0xdf4   :  { %v489_v20 = vpop.permute.xlu1 %488 }
 0xdf5   :  { %v491_v21 = vmul.f32 %v489_v20, %v474_v10 }
 0xdf7   :  { %493 = vrot.lane.b32.xlu2 %v491_v21, %s2465_s20 }
 0xdff   :  { %v187_v37 = vpop.f32.mrf.mxu0 }
 0xe00   :  { %v188_v38 = vadd.f32 %v2562_v27, %v187_v37  ;;  %v2715_v27 = vld [vmem:[%s3188_s4 + $0x1] ss:$0 sm:$0xff] }
 0xe51   :  { %v494_v28 = vpop.permute.xlu2 %493 }
 0xe52   :  { %496 = vst.msk [vmem:[#allocation3 + $0x28] sm:$0xff] %vm202_vm4, %v494_v28  ;;  %2160 = vmatmul.msk.f32.vlgmr.msrb.gmra.mxu1 %vm202_vm4, %v494_v28 }
 0xe53   :  { %703 = vmatpush.msrb.mxu1 %v2672_v22 }
 0xe55   :  { %704 = vmatpush.msrb.mxu1 %v2675_v23 }
 0xe57   :  { %705 = vmatpush.msrb.mxu1 %v2678_v25 }
 0xe59   :  { %v607_v31 = vld [vmem:[#allocation3 + $0x28] sm:$0xff]  ;;  %706 = vmatpush.msrb.mxu1 %v2683_v29 }
 0xe5a   :  { %2163 = vmatmul.msk.f32.vlgmr.msra.gmra.mxu1 %vm202_vm4, %v602_v30  ;;  %2168 = vmatmul.msk.f32.gmra.mxu3 %vm202_vm4, %v607_v31 }
 0xe5b   :  { %801 = vmatpush.msra.mxu1 %v2672_v22 }
 0xe5d   :  { %802 = vmatpush.msra.mxu1 %v2675_v23 }
 0xe5f   :  { %803 = vmatpush.msra.mxu1 %v2678_v25 }
 0xe61   :  { %804 = vmatpush.msra.mxu1 %v2683_v29 }
 0xe62   :  { %2164 = vmatmul.msk.f32.gmra.mxu1 %vm202_vm4, %v603_v32 }
 0xe6a   :  { %2165 = vmatmul.msk.f32.gmra.mxu1 %vm202_vm4, %v604_v34 }
 0xe72   :  { %2166 = vmatmul.msk.f32.gmra.mxu1 %vm202_vm4, %v605_v36 }
 0xe7a   :  { %707 = vmatmul.f32.vlgmr.msrb.gmra.mxu1 %v2461_v14 }
 0xe7b   :  { %899 = vmatpush.msrb.mxu1 %v2672_v22 }
 0xe7d   :  { %900 = vmatpush.msrb.mxu1 %v2675_v23 }
 0xe7f   :  { %901 = vmatpush.msrb.mxu1 %v2678_v25 }
 0xe81   :  { %902 = vmatpush.msrb.mxu1 %v2683_v29 }
 0xecf   :  { %v517_v39 = vpop.f32.mrf.mxu1 }
 0xed0   :  { %v520_v40 = vadd.f32 %v517_v39, %v188_v38 }
 0xed2   :  { %2273 = vtanh.f32 %v520_v40 }
 0xed7   :  { %v658_v41 = vpop.f32.mrf.mxu1 }
 0xed8   :  { %v2274_v42 = vpop.eup %2273  ;;  %v659_v48 = vadd.f32 %v2715_v27, %v658_v41 }
 0xed9   :  { %v522_v43 = vmul.f32 %v2274_v42, %v2567_v33 }
 0xedb   :  { %v523_v44 = vadd.f32 %v522_v43, %v2569_v35 }
 0xedd   :  { %526 = vrot.lane.b32.xlu1 %v523_v44, %s2464_s19  ;;  %v524_v58 = vmul.f32 %v523_v44, %v2665_v17 }
 0xedf   :  { %v661_v45 = vpop.f32.mrf.mxu1 }
 0xee0   :  { %v662_v10 = vadd.f32 %v2715_v27, %v661_v45 }
 0xee7   :  { %v2708_v46 = vpop.f32.mrf.mxu1 }
 0xee8   :  { %v665_v34 = vadd.f32 %v2715_v27, %v2708_v46 }
 0xeef   :  { %v2710_v47 = vpop.f32.mrf.mxu1 }
 0xef7   :  { %v708_v49 = vpop.f32.mrf.mxu1 }
 0xef8   :  { %v711_v50 = vadd.f32 %v708_v49, %v659_v48 }
 0xefa   :  { %2275 = vtanh.f32 %v711_v50 }
 0xf00   :  { %v2276_v51 = vpop.eup %2275 }
 0xf01   :  { %v713_v52 = vmul.f32 %v2276_v51, %v2567_v33  ;;  %v668_v51 = vadd.f32 %v2715_v27, %v2710_v47 }
 0xf03   :  { %v714_v53 = vadd.f32 %v713_v52, %v2569_v35 }
 0xf05   :  { %717 = vrot.lane.b32.xlu2 %v714_v53, %s2464_s19  ;;  %v715_v62 = vmul.f32 0.0, %v714_v53 }
 0xf4f   :  { %v527_v54 = vpop.permute.xlu1 %526 }
 0xf50   :  { %v529_v55 = vmul.f32 %v527_v54, %v523_v44 }
 0xf52   :  { %531 = vrot.lane.b32.xlu0 %v529_v55, %s2465_s20 }
 0xf5f   :  { %v718_v56 = vpop.permute.xlu2 %717 }
 0xf60   :  { %v720_v57 = vmul.f32 %v718_v56, %v714_v53 }
 0xf62   :  { %722 = vrot.lane.b32.xlu1 %v720_v57, %s2465_s20 }
 0xfc4   :  { %v532_v59 = vpop.permute.xlu0 %531 }
 0xfc5   :  { %v2724_v60 = vadd.f32 %v532_v59, %v524_v58 }
 0xfc7   :  { %2277 = vtanh.f32 %v2724_v60 }
 0xfcd   :  { %v2278_v61 = vpop.eup %2277 }
 0xfce   :  { %537 = vrot.lane.b32.xlu2 %v2278_v61, %s2464_s19 }
 0xfd4   :  { %v723_v63 = vpop.permute.xlu1 %722 }
 0xfd5   :  { %v725_v0 = vadd.f32 %v723_v63, %v715_v62  ;;  %v670_v62 = vpop.f32.mrf.mxu3 }
 0xfd6   :  { %v671_v63 = vadd.f32 %v2715_v27, %v670_v62  ;;  %v2829_v62 = vld [vmem:[#allocation6 + $0x58] sm:$0xff] }
 0xfd7   :  { %2279 = vtanh.f32 %v725_v0  ;;  %1385 = vmatpush.msrb.mxu3 %v2829_v62 }
 0xfdd   :  { %v2280_v1 = vpop.eup %2279 }
 0xfde   :  { %728 = vrot.lane.b32.xlu0 %v2280_v1, %s2464_s19 }
0x1028   :  { %v538_v2 = vpop.permute.xlu2 %537 }
0x1029   :  { %v540_v3 = vmul.f32 %v538_v2, %v523_v44 }
0x102b   :  { %542 = vrot.lane.b32.xlu1 %v540_v3, %s2465_s20 }
0x1050   :  { %v729_v4 = vpop.permute.xlu0 %728 }
0x1051   :  { %v731_v5 = vmul.f32 %v729_v4, %v714_v53 }
0x1053   :  { %733 = vrot.lane.b32.xlu2 %v731_v5, %s2465_s20 }
0x109d   :  { %v543_v6 = vpop.permute.xlu1 %542 }
0x109e   :  { %545 = vst.msk [vmem:[#allocation3 + $0x30] sm:$0xff] %vm202_vm4, %v543_v6  ;;  %2161 = vmatmul.msk.f32.vlgmr.msrb.gmra.mxu2 %vm202_vm4, %v543_v6 }
0x109f   :  { %850 = vmatpush.msrb.mxu2 %v2672_v22 }
0x10a1   :  { %851 = vmatpush.msrb.mxu2 %v2675_v23 }
0x10a3   :  { %852 = vmatpush.msrb.mxu2 %v2678_v25 }
0x10a5   :  { %v608_v7 = vld [vmem:[#allocation3 + $0x30] sm:$0xff]  ;;  %853 = vmatpush.msrb.mxu2 %v2683_v29 }
0x10a6   :  { %2169 = vmatmul.msk.f32.gmra.mxu3 %vm202_vm4, %v608_v7 }
0x10ad   :  { %v734_v8 = vpop.permute.xlu2 %733 }
0x10ae   :  { %736 = vst.msk [vmem:[#allocation3] sm:$0xff] %vm202_vm4, %v734_v8  ;;  %2171 = vmatmul.msk.f32.vlgmr.msra.gmra.mxu2 %vm202_vm4, %v734_v8 }
0x10af   :  { %948 = vmatpush.msra.mxu2 %v2672_v22 }
0x10b1   :  { %949 = vmatpush.msra.mxu2 %v2675_v23 }
0x10b3   :  { %950 = vmatpush.msra.mxu2 %v2678_v25 }
0x10b5   :  { %951 = vmatpush.msra.mxu2 %v2683_v29 }
0x1121   :  { %v2744_v9 = vpop.f32.mrf.mxu2 }
0x1131   :  { %v757_v11 = vpop.f32.mrf.mxu2 }
0x1132   :  { %v760_v12 = vadd.f32 %v757_v11, %v662_v10 }
0x1134   :  { %2281 = vtanh.f32 %v760_v12 }
0x113a   :  { %v2282_v13 = vpop.eup %2281 }
0x113b   :  { %v762_v15 = vmul.f32 %v2282_v13, %v2567_v33 }
0x113d   :  { %v763_v16 = vadd.f32 %v762_v15, %v2569_v35 }
0x113f   :  { %766 = vrot.lane.b32.xlu0 %v763_v16, %s2464_s19  ;;  %v764_v19 = vmul.f32 %v763_v16, %v725_v0 }
0x11b1   :  { %v767_v17 = vpop.permute.xlu0 %766 }
0x11b2   :  { %v769_v18 = vmul.f32 %v767_v17, %v763_v16 }
0x11b4   :  { %771 = vrot.lane.b32.xlu1 %v769_v18, %s2465_s20 }
0x1226   :  { %v772_v20 = vpop.permute.xlu1 %771 }
0x1227   :  { %v774_v21 = vadd.f32 %v772_v20, %v764_v19 }
0x1229   :  { %2283 = vtanh.f32 %v774_v21 }
0x122f   :  { %v2284_v28 = vpop.eup %2283 }
0x1230   :  { %777 = vrot.lane.b32.xlu2 %v2284_v28, %s2464_s19 }
0x128a   :  { %v778_v30 = vpop.permute.xlu2 %777 }
0x128b   :  { %v780_v31 = vmul.f32 %v778_v30, %v763_v16  ;;  %v673_v16 = vpop.f32.mrf.mxu3 }
0x128c   :  { %v674_v17 = vadd.f32 %v2715_v27, %v673_v16 }
0x128d   :  { %782 = vrot.lane.b32.xlu0 %v780_v31, %s2465_s20 }
0x12ff   :  { %v783_v32 = vpop.permute.xlu0 %782 }
0x1300   :  { %785 = vst.msk [vmem:[#allocation3 + $0x8] sm:$0xff] %vm202_vm4, %v783_v32  ;;  %2172 = vmatmul.msk.f32.vlgmr.msra.gmra.mxu1 %vm202_vm4, %v783_v32 }
0x1301   :  { %997 = vmatpush.msra.mxu1 %v2672_v22 }
0x1303   :  { %998 = vmatpush.msra.mxu1 %v2675_v23 }
0x1305   :  { %999 = vmatpush.msra.mxu1 %v2678_v25 }
0x1307   :  { %1000 = vmatpush.msra.mxu1 %v2683_v29 }
0x137d   :  { %v806_v36 = vpop.f32.mrf.mxu1 }
0x137e   :  { %v809_v37 = vadd.f32 %v806_v36, %v665_v34 }
0x1380   :  { %2285 = vtanh.f32 %v809_v37 }
0x1386   :  { %v2286_v38 = vpop.eup %2285 }
0x1387   :  { %v811_v39 = vmul.f32 %v2286_v38, %v2567_v33 }
0x1389   :  { %v812_v40 = vadd.f32 %v811_v39, %v2569_v35 }
0x138b   :  { %815 = vrot.lane.b32.xlu1 %v812_v40, %s2464_s19  ;;  %v813_v43 = vmul.f32 %v812_v40, %v774_v21 }
0x13fd   :  { %v816_v41 = vpop.permute.xlu1 %815 }
0x13fe   :  { %v818_v42 = vmul.f32 %v816_v41, %v812_v40  ;;  %v2181_v41 = vld [vmem:[%s3186_s2 + $0x30] sm:$0xff] }
0x1400   :  { %820 = vrot.lane.b32.xlu2 %v818_v42, %s2465_s20  ;;  %v2180_v42 = vld [vmem:[%s3186_s2 + $0x28] sm:$0xff] }
0x145a   :  { %v821_v44 = vpop.permute.xlu2 %820 }
0x145b   :  { %v823_v45 = vadd.f32 %v821_v44, %v813_v43  ;;  %v2179_v43 = vld [vmem:[%s3186_s2 + $0x20] sm:$0xff] }
0x145d   :  { %2287 = vtanh.f32 %v823_v45 }
0x1463   :  { %v2288_v48 = vpop.eup %2287 }
0x1464   :  { %826 = vrot.lane.b32.xlu0 %v2288_v48, %s2464_s19  ;;  %v1088_v48 = vld [vmem:[#allocation3 + $0x8] sm:$0xff] }
0x14d6   :  { %v827_v46 = vpop.permute.xlu0 %826 }
0x14d7   :  { %v829_v49 = vmul.f32 %v827_v46, %v812_v40  ;;  %v2182_v40 = vld [vmem:[%s3186_s2 + $0x38] sm:$0xff] }
0x14d9   :  { %831 = vrot.lane.b32.xlu1 %v829_v49, %s2465_s20 }
0x154b   :  { %v832_v50 = vpop.permute.xlu1 %831 }
0x154c   :  { %834 = vst.msk [vmem:[#allocation3 + $0x10] sm:$0xff] %vm202_vm4, %v832_v50  ;;  %2173 = vmatmul.msk.f32.vlgmr.msrb.gmra.mxu2 %vm202_vm4, %v832_v50 }
0x154d   :  { %1046 = vmatpush.msrb.mxu2 %v2672_v22 }
0x154f   :  { %1047 = vmatpush.msrb.mxu2 %v2675_v23 }
0x1551   :  { %1048 = vmatpush.msrb.mxu2 %v2678_v25 }
0x1553   :  { %1049 = vmatpush.msrb.mxu2 %v2683_v29  ;;  %v1089_v46 = vld [vmem:[#allocation3 + $0x10] sm:$0xff] }
0x15cf   :  { %v855_v52 = vpop.f32.mrf.mxu2 }
0x15d0   :  { %v858_v53 = vadd.f32 %v855_v52, %v668_v51  ;;  %v676_v52 = vpop.f32.mrf.mxu3 }
0x15d2   :  { %2289 = vtanh.f32 %v858_v53  ;;  %v677_v53 = vadd.f32 %v2715_v27, %v676_v52 }
0x15d8   :  { %v2290_v54 = vpop.eup %2289 }
0x15d9   :  { %v860_v55 = vmul.f32 %v2290_v54, %v2567_v33 }
0x15db   :  { %v861_v56 = vadd.f32 %v860_v55, %v2569_v35 }
0x15dd   :  { %864 = vrot.lane.b32.xlu2 %v861_v56, %s2464_s19  ;;  %v862_v23 = vmul.f32 %v861_v56, %v823_v45  ;;  %v1087_v45 = vld [vmem:[#allocation3] sm:$0xff] }
0x1637   :  { %v865_v22 = vpop.permute.xlu2 %864 }
0x1638   :  { %v867_v57 = vmul.f32 %v865_v22, %v861_v56 }
0x163a   :  { %869 = vrot.lane.b32.xlu0 %v867_v57, %s2465_s20 }
0x16ac   :  { %v870_v25 = vpop.permute.xlu0 %869 }
0x16ad   :  { %v872_v29 = vadd.f32 %v870_v25, %v862_v23 }
0x16af   :  { %2291 = vtanh.f32 %v872_v29 }
0x16b5   :  { %v2292_v58 = vpop.eup %2291 }
0x16b6   :  { %875 = vrot.lane.b32.xlu1 %v2292_v58, %s2464_s19 }
0x1728   :  { %v876_v47 = vpop.permute.xlu1 %875 }
0x1729   :  { %v878_v59 = vmul.f32 %v876_v47, %v861_v56 }
0x172b   :  { %880 = vrot.lane.b32.xlu2 %v878_v59, %s2465_s20 }
0x1785   :  { %v881_v61 = vpop.permute.xlu2 %880 }
0x1786   :  { %883 = vst.msk [vmem:[#allocation3 + $0x18] sm:$0xff] %vm202_vm4, %v881_v61  ;;  %2174 = vmatmul.msk.f32.vlgmr.msrb.gmra.mxu1 %vm202_vm4, %v881_v61 }
0x1787   :  { %1139 = vmatpush.msrb.mxu1 %v2182_v40 }
0x1789   :  { %1140 = vmatpush.msrb.mxu1 %v2181_v41 }
0x178b   :  { %1141 = vmatpush.msrb.mxu1 %v2180_v42 }
0x178d   :  { %1142 = vmatpush.msrb.mxu1 %v2179_v43  ;;  %v1090_v49 = vld [vmem:[#allocation3 + $0x18] sm:$0xff] }
0x1803   :  { %v904_v0 = vpop.f32.mrf.mxu1 }
0x1804   :  { %v907_v1 = vadd.f32 %v904_v0, %v671_v63  ;;  %v2831_v63 = vld [vmem:[#allocation6 + $0x50] sm:$0xff]  ;;  %v2835_v0 = vld [vmem:[#allocation6 + $0x48] sm:$0xff] }
0x1805   :  { %1386 = vmatpush.msrb.mxu3 %v2831_v63 }
0x1806   :  { %2293 = vtanh.f32 %v907_v1  ;;  %v2839_v1 = vld [vmem:[#allocation6 + $0x40] sm:$0xff] }
0x1807   :  { %1387 = vmatpush.msrb.mxu3 %v2835_v0 }
0x1809   :  { %1388 = vmatpush.msrb.mxu3 %v2839_v1 }
0x180b   :  { %1532 = vmatpush.msra.mxu3 %v2829_v62 }
0x180c   :  { %v2294_v2 = vpop.eup %2293 }
0x180d   :  { %v909_v3 = vmul.f32 %v2294_v2, %v2567_v33  ;;  %1533 = vmatpush.msra.mxu3 %v2831_v63 }
0x180f   :  { %v910_v4 = vadd.f32 %v909_v3, %v2569_v35  ;;  %1534 = vmatpush.msra.mxu3 %v2835_v0 }
0x1811   :  { %913 = vrot.lane.b32.xlu0 %v910_v4, %s2464_s19  ;;  %v911_v7 = vmul.f32 %v910_v4, %v872_v29  ;;  %1535 = vmatpush.msra.mxu3 %v2839_v1 }
0x1883   :  { %v914_v5 = vpop.permute.xlu0 %913 }
0x1884   :  { %v916_v6 = vmul.f32 %v914_v5, %v910_v4  ;;  %v2866_v5 = vld [vmem:[%s3188_s4 + $0x2] ss:$0 sm:$0xff] }
0x1886   :  { %918 = vrot.lane.b32.xlu1 %v916_v6, %s2465_s20 }
0x18f8   :  { %v919_v8 = vpop.permute.xlu1 %918 }
0x18f9   :  { %v921_v10 = vadd.f32 %v919_v8, %v911_v7 }
0x18fb   :  { %2295 = vtanh.f32 %v921_v10 }
0x1901   :  { %v2296_v11 = vpop.eup %2295 }
0x1902   :  { %924 = vrot.lane.b32.xlu2 %v2296_v11, %s2464_s19 }
0x195c   :  { %v925_v12 = vpop.permute.xlu2 %924 }
0x195d   :  { %v927_v13 = vmul.f32 %v925_v12, %v910_v4 }
0x195f   :  { %929 = vrot.lane.b32.xlu0 %v927_v13, %s2465_s20 }
0x19d1   :  { %v930_v15 = vpop.permute.xlu0 %929 }
0x19d2   :  { %932 = vst.msk [vmem:[#allocation3 + $0x20] sm:$0xff] %vm202_vm4, %v930_v15  ;;  %2175 = vmatmul.msk.f32.vlgmr.msra.gmra.mxu2 %vm202_vm4, %v930_v15 }
0x19d3   :  { %1189 = vmatpush.msra.mxu2 %v2829_v62 }
0x19d5   :  { %1190 = vmatpush.msra.mxu2 %v2831_v63 }
0x19d7   :  { %1191 = vmatpush.msra.mxu2 %v2835_v0 }
0x19d9   :  { %v1091_v50 = vld [vmem:[#allocation3 + $0x20] sm:$0xff]  ;;  %1192 = vmatpush.msra.mxu2 %v2839_v1 }
0x1a55   :  { %v953_v18 = vpop.f32.mrf.mxu2 }
0x1a56   :  { %v956_v19 = vadd.f32 %v953_v18, %v674_v17 }
0x1a58   :  { %2297 = vtanh.f32 %v956_v19 }
0x1a5e   :  { %v2298_v20 = vpop.eup %2297 }
0x1a5f   :  { %v958_v21 = vmul.f32 %v2298_v20, %v2567_v33 }
0x1a61   :  { %v959_v28 = vadd.f32 %v958_v21, %v2569_v35 }
0x1a63   :  { %962 = vrot.lane.b32.xlu1 %v959_v28, %s2464_s19  ;;  %v960_v32 = vmul.f32 %v959_v28, %v921_v10 }
0x1ad5   :  { %v963_v30 = vpop.permute.xlu1 %962 }
0x1ad6   :  { %v965_v31 = vmul.f32 %v963_v30, %v959_v28 }
0x1ad8   :  { %967 = vrot.lane.b32.xlu2 %v965_v31, %s2465_s20 }
0x1b32   :  { %v968_v34 = vpop.permute.xlu2 %967 }
0x1b33   :  { %v970_v36 = vadd.f32 %v968_v34, %v960_v32 }
0x1b35   :  { %2299 = vtanh.f32 %v970_v36 }
0x1b3b   :  { %v2300_v37 = vpop.eup %2299 }
0x1b3c   :  { %973 = vrot.lane.b32.xlu0 %v2300_v37, %s2464_s19 }
0x1bae   :  { %v974_v38 = vpop.permute.xlu0 %973 }
0x1baf   :  { %v976_v39 = vmul.f32 %v974_v38, %v959_v28 }
0x1bb1   :  { %978 = vrot.lane.b32.xlu1 %v976_v39, %s2465_s20 }
0x1c23   :  { %v979_v44 = vpop.permute.xlu1 %978 }
0x1c24   :  { %981 = vst.msk [vmem:[#allocation3 + $0x28] sm:$0xff] %vm202_vm4, %v979_v44  ;;  %2176 = vmatmul.msk.f32.vlgmr.msra.gmra.mxu1 %vm202_vm4, %v979_v44 }
0x1c2b   :  { %v1092_v51 = vld [vmem:[#allocation3 + $0x28] sm:$0xff] }
0x1c2c   :  { %2183 = vmatmul.msk.f32.vlgmr.msrb.gmra.mxu1 %vm202_vm4, %v1087_v45 }
0x1c34   :  { %2184 = vmatmul.msk.f32.gmra.mxu1 %vm202_vm4, %v1088_v48 }
0x1c3c   :  { %2185 = vmatmul.msk.f32.gmra.mxu1 %vm202_vm4, %v1089_v46 }
0x1c44   :  { %2186 = vmatmul.msk.f32.gmra.mxu1 %vm202_vm4, %v1090_v49 }
0x1c4c   :  { %2187 = vmatmul.msk.f32.gmra.mxu1 %vm202_vm4, %v1091_v50 }
0x1c54   :  { %2188 = vmatmul.msk.f32.gmra.mxu1 %vm202_vm4, %v1092_v51 }
0x1ca1   :  { %v1002_v54 = vpop.f32.mrf.mxu1 }
0x1ca2   :  { %v1005_v55 = vadd.f32 %v1002_v54, %v677_v53 }
0x1ca4   :  { %2301 = vtanh.f32 %v1005_v55 }
0x1ca9   :  { %v1144_v6 = vpop.f32.mrf.mxu1 }
0x1caa   :  { %v2302_v56 = vpop.eup %2301  ;;  %v1145_v7 = vadd.f32 %v2866_v5, %v1144_v6 }
0x1cab   :  { %v1007_v22 = vmul.f32 %v2302_v56, %v2567_v33 }
0x1cad   :  { %v1008_v57 = vadd.f32 %v1007_v22, %v2569_v35  ;;  %v87_v22 = vld [vmem:[%s3184_s0 + $0x38] sm:$0xff] }
0x1caf   :  { %1011 = vrot.lane.b32.xlu2 %v1008_v57, %s2464_s19  ;;  %v1009_v29 = vmul.f32 %v1008_v57, %v970_v36 }
0x1cb1   :  { %v1147_v31 = vpop.f32.mrf.mxu1 }
0x1cb2   :  { %v1148_v32 = vadd.f32 %v2866_v5, %v1147_v31 }
0x1cb9   :  { %v1150_v50 = vpop.f32.mrf.mxu1 }
0x1cba   :  { %v1151_v51 = vadd.f32 %v2866_v5, %v1150_v50 }
0x1d09   :  { %v1012_v23 = vpop.permute.xlu2 %1011 }
0x1d0a   :  { %v1014_v25 = vmul.f32 %v1012_v23, %v1008_v57  ;;  %v2201_v23 = vld [vmem:[%s3186_s2 + $0x50] sm:$0xff] }
0x1d0c   :  { %1016 = vrot.lane.b32.xlu0 %v1014_v25, %s2465_s20  ;;  %v2200_v25 = vld [vmem:[%s3186_s2 + $0x48] sm:$0xff] }
0x1d7e   :  { %v1017_v58 = vpop.permute.xlu0 %1016 }
0x1d7f   :  { %v2824_v47 = vadd.f32 %v1017_v58, %v1009_v29  ;;  %v2199_v29 = vld [vmem:[%s3186_s2 + $0x40] sm:$0xff] }
0x1d81   :  { %2303 = vtanh.f32 %v2824_v47 }
0x1d87   :  { %v2304_v27 = vpop.eup %2303 }
0x1d88   :  { %1022 = vrot.lane.b32.xlu1 %v2304_v27, %s2464_s19 }
0x1dfa   :  { %v1023_v59 = vpop.permute.xlu1 %1022 }
0x1dfb   :  { %v1025_v61 = vmul.f32 %v1023_v59, %v1008_v57  ;;  %v2202_v57 = vld [vmem:[%s3186_s2 + $0x58] sm:$0xff] }
0x1dfc   :  { %1625 = vmatpush.msrb.mxu0 %v2202_v57 }
0x1dfd   :  { %1027 = vrot.lane.b32.xlu2 %v1025_v61, %s2465_s20 }
0x1dfe   :  { %1626 = vmatpush.msrb.mxu0 %v2201_v23 }
0x1e00   :  { %1627 = vmatpush.msrb.mxu0 %v2200_v25 }
0x1e02   :  { %1628 = vmatpush.msrb.mxu0 %v2199_v29 }
0x1e57   :  { %v1028_v2 = vpop.permute.xlu2 %1027 }
0x1e58   :  { %1030 = vst.msk [vmem:[#allocation3 + $0x30] sm:$0xff] %vm202_vm4, %v1028_v2  ;;  %2177 = vmatmul.msk.f32.vlgmr.msrb.gmra.mxu2 %vm202_vm4, %v1028_v2 }
0x1e59   :  { %1238 = vmatpush.msrb.mxu2 %v2829_v62 }
0x1e5b   :  { %1239 = vmatpush.msrb.mxu2 %v2831_v63 }
0x1e5d   :  { %1240 = vmatpush.msrb.mxu2 %v2835_v0 }
0x1e5f   :  { %v1093_v3 = vld [vmem:[#allocation3 + $0x30] sm:$0xff]  ;;  %1241 = vmatpush.msrb.mxu2 %v2839_v1 }
0x1e60   :  { %2189 = vmatmul.msk.f32.gmra.mxu1 %vm202_vm4, %v1093_v3  ;;  %1193 = vmatmul.f32.vlgmr.msra.gmra.mxu2 %v2461_v14 }
0x1e61   :  { %1287 = vmatpush.msra.mxu2 %v2829_v62 }
0x1e63   :  { %1288 = vmatpush.msra.mxu2 %v2831_v63 }
0x1e65   :  { %1289 = vmatpush.msra.mxu2 %v2835_v0 }
0x1e67   :  { %1290 = vmatpush.msra.mxu2 %v2839_v1 }
0x1edb   :  { %v2861_v4 = vpop.f32.mrf.mxu2 }
0x1ee3   :  { %v1194_v8 = vpop.f32.mrf.mxu2 }
0x1ee4   :  { %v1197_v10 = vadd.f32 %v1194_v8, %v1145_v7 }
0x1ee6   :  { %2305 = vtanh.f32 %v1197_v10 }
0x1eec   :  { %v2306_v11 = vpop.eup %2305 }
0x1eed   :  { %v1199_v12 = vmul.f32 %v2306_v11, %v2567_v33 }
0x1eef   :  { %v1200_v13 = vadd.f32 %v1199_v12, %v2569_v35 }
0x1ef1   :  { %1203 = vrot.lane.b32.xlu0 %v1200_v13, %s2464_s19  ;;  %v1201_v17 = vmul.f32 0.0, %v1200_v13 }
0x1f63   :  { %v1204_v15 = vpop.permute.xlu0 %1203 }
0x1f64   :  { %v1206_v16 = vmul.f32 %v1204_v15, %v1200_v13 }
0x1f66   :  { %1208 = vrot.lane.b32.xlu1 %v1206_v16, %s2465_s20 }
0x1fd8   :  { %v1209_v18 = vpop.permute.xlu1 %1208 }
0x1fd9   :  { %v1211_v19 = vadd.f32 %v1209_v18, %v1201_v17 }
0x1fdb   :  { %2307 = vtanh.f32 %v1211_v19 }
0x1fe1   :  { %v2308_v20 = vpop.eup %2307 }
0x1fe2   :  { %1214 = vrot.lane.b32.xlu2 %v2308_v20, %s2464_s19 }
0x203c   :  { %v1215_v21 = vpop.permute.xlu2 %1214 }
0x203d   :  { %v1217_v28 = vmul.f32 %v1215_v21, %v1200_v13  ;;  %v1153_v21 = vpop.f32.mrf.mxu1 }
0x203f   :  { %1219 = vrot.lane.b32.xlu0 %v1217_v28, %s2465_s20  ;;  %v1154_v28 = vadd.f32 %v2866_v5, %v1153_v21  ;;  %v2969_v21 = vld [vmem:[#allocation6 + $0x78] sm:$0xff] }
0x2040   :  { %1969 = vmatpush.msra.mxu1 %v2969_v21 }
0x20b1   :  { %v1220_v30 = vpop.permute.xlu0 %1219 }
0x20b2   :  { %1222 = vst.msk [vmem:[#allocation3] sm:$0xff] %vm202_vm4, %v1220_v30  ;;  %2191 = vmatmul.msk.f32.vlgmr.msrb.gmra.mxu2 %vm202_vm4, %v1220_v30 }
0x20b3   :  { %1336 = vmatpush.msrb.mxu2 %v2829_v62 }
0x20b5   :  { %1337 = vmatpush.msrb.mxu2 %v2831_v63 }
0x20b7   :  { %1338 = vmatpush.msrb.mxu2 %v2835_v0 }
0x20b9   :  { %1339 = vmatpush.msrb.mxu2 %v2839_v1  ;;  %v1573_v61 = vld [vmem:[#allocation3] sm:$0xff] }
0x2135   :  { %v1243_v34 = vpop.f32.mrf.mxu2 }
0x2136   :  { %v1246_v36 = vadd.f32 %v1243_v34, %v1148_v32 }
0x2138   :  { %2309 = vtanh.f32 %v1246_v36 }
0x213e   :  { %v2310_v37 = vpop.eup %2309 }
0x213f   :  { %v1248_v38 = vmul.f32 %v2310_v37, %v2567_v33 }
0x2141   :  { %v1249_v39 = vadd.f32 %v1248_v38, %v2569_v35 }
0x2143   :  { %1252 = vrot.lane.b32.xlu1 %v1249_v39, %s2464_s19  ;;  %v1250_v42 = vmul.f32 %v1249_v39, %v1211_v19 }
0x21b5   :  { %v1253_v40 = vpop.permute.xlu1 %1252 }
0x21b6   :  { %v1255_v41 = vmul.f32 %v1253_v40, %v1249_v39 }
0x21b8   :  { %1257 = vrot.lane.b32.xlu2 %v1255_v41, %s2465_s20 }
0x2212   :  { %v1258_v43 = vpop.permute.xlu2 %1257 }
0x2213   :  { %v1260_v44 = vadd.f32 %v1258_v43, %v1250_v42 }
0x2215   :  { %2311 = vtanh.f32 %v1260_v44 }
0x221b   :  { %v2312_v45 = vpop.eup %2311 }
0x221c   :  { %1263 = vrot.lane.b32.xlu0 %v2312_v45, %s2464_s19 }
0x228e   :  { %v1264_v48 = vpop.permute.xlu0 %1263 }
0x228f   :  { %v1266_v46 = vmul.f32 %v1264_v48, %v1249_v39 }
0x2291   :  { %1268 = vrot.lane.b32.xlu1 %v1266_v46, %s2465_s20 }
0x2303   :  { %v1269_v49 = vpop.permute.xlu1 %1268 }
0x2304   :  { %1271 = vst.msk [vmem:[#allocation3 + $0x8] sm:$0xff] %vm202_vm4, %v1269_v49  ;;  %2192 = vmatmul.msk.f32.vlgmr.msra.gmra.mxu2 %vm202_vm4, %v1269_v49 }
0x2305   :  { %1434 = vmatpush.msra.mxu2 %v2829_v62 }
0x2307   :  { %1435 = vmatpush.msra.mxu2 %v2831_v63 }
0x2309   :  { %1436 = vmatpush.msra.mxu2 %v2835_v0 }
0x230b   :  { %1437 = vmatpush.msra.mxu2 %v2839_v1  ;;  %v1574_v2 = vld [vmem:[#allocation3 + $0x8] sm:$0xff] }
0x2387   :  { %v1292_v52 = vpop.f32.mrf.mxu2 }
0x2388   :  { %v1295_v53 = vadd.f32 %v1292_v52, %v1151_v51  ;;  %v1156_v52 = vpop.f32.mrf.mxu1 }
0x238a   :  { %2313 = vtanh.f32 %v1295_v53  ;;  %v1157_v53 = vadd.f32 %v2866_v5, %v1156_v52 }
0x2390   :  { %v2314_v54 = vpop.eup %2313 }
0x2391   :  { %v1297_v55 = vmul.f32 %v2314_v54, %v2567_v33 }
0x2393   :  { %v1298_v56 = vadd.f32 %v1297_v55, %v2569_v35 }
0x2395   :  { %1301 = vrot.lane.b32.xlu2 %v1298_v56, %s2464_s19  ;;  %v1299_v3 = vmul.f32 %v1298_v56, %v1260_v44 }
0x239d   :  { %110 = vperm.xlu2 %2242, %v87_v22  }
0x23ef   :  { %v1302_v58 = vpop.permute.xlu2 %1301 }
0x23f0   :  { %v1304_v27 = vmul.f32 %v1302_v58, %v1298_v56 }
0x23f2   :  { %1306 = vrot.lane.b32.xlu0 %v1304_v27, %s2465_s20 }
0x23f7   :  { %v111_v59 = vpop.permute.xlu2 %110 }
0x23f8   :  { %vm119_vm11 = vcmp.eq.s32.totalorder %v2555_v24, %v111_v59  ;;  %v2377_v24 = vld [vmem:[%s3188_s4] ss:$0 sm:$0xff] }
0x23f9   :  { %2154 = vmatmul.msk.f32.gmra.mxu0 %vm119_vm11, %v2462_v26 }
0x2401   :  { %2203 = vmatmul.msk.f32.vlgmr.msrb.gmra.mxu0 %vm202_vm4, %v1573_v61 }
0x2409   :  { %2204 = vmatmul.msk.f32.gmra.mxu0 %vm202_vm4, %v1574_v2 }
0x2464   :  { %v1307_v6 = vpop.permute.xlu0 %1306 }
0x2465   :  { %v1309_v7 = vadd.f32 %v1307_v6, %v1299_v3 }
0x2467   :  { %2315 = vtanh.f32 %v1309_v7 }
0x246d   :  { %v2316_v8 = vpop.eup %2315 }
0x246e   :  { %1312 = vrot.lane.b32.xlu1 %v2316_v8, %s2464_s19 }
0x2476   :  { %v190_v10 = vpop.f32.mrf.mxu0 }
0x2477   :  { %v191_v11 = vadd.f32 %v2377_v24, %v190_v10 }
0x2479   :  { %v569_v26 = vadd.f32 %v2744_v9, %v191_v11 }
0x247b   :  { %2317 = vtanh.f32 %v569_v26 }
0x2481   :  { %v2318_v12 = vpop.eup %2317 }
0x2482   :  { %v571_v13 = vmul.f32 %v2318_v12, %v2567_v33 }
0x2484   :  { %v572_v15 = vadd.f32 %v571_v13, %v2569_v35 }
0x2486   :  { %575 = vrot.lane.b32.xlu1 %v572_v15, %s2464_s19  ;;  %v573_v36 = vmul.f32 %v572_v15, %v2724_v60 }
0x24e0   :  { %v1313_v16 = vpop.permute.xlu1 %1312 }
0x24e1   :  { %v1315_v17 = vmul.f32 %v1313_v16, %v1298_v56 }
0x24e3   :  { %1317 = vrot.lane.b32.xlu0 %v1315_v17, %s2465_s20 }
0x24f8   :  { %v576_v18 = vpop.permute.xlu1 %575 }
0x24f9   :  { %v578_v19 = vmul.f32 %v576_v18, %v572_v15 }
0x24fb   :  { %580 = vrot.lane.b32.xlu0 %v578_v19, %s2465_s20 }
0x2555   :  { %v1318_v20 = vpop.permute.xlu0 %1317 }
0x2556   :  { %1320 = vst.msk [vmem:[#allocation3 + $0x10] sm:$0xff] %vm202_vm4, %v1318_v20  ;;  %2193 = vmatmul.msk.f32.vlgmr.msrb.gmra.mxu2 %vm202_vm4, %v1318_v20 }
0x2557   :  { %1483 = vmatpush.msrb.mxu2 %v2829_v62 }
0x2559   :  { %1484 = vmatpush.msrb.mxu2 %v2831_v63 }
0x255b   :  { %1485 = vmatpush.msrb.mxu2 %v2835_v0 }
0x255d   :  { %v1575_v9 = vld [vmem:[#allocation3 + $0x10] sm:$0xff]  ;;  %1486 = vmatpush.msrb.mxu2 %v2839_v1 }
0x255e   :  { %2205 = vmatmul.msk.f32.gmra.mxu0 %vm202_vm4, %v1575_v9 }
0x256d   :  { %v581_v32 = vpop.permute.xlu0 %580 }
0x256e   :  { %v583_v63 = vadd.f32 %v581_v32, %v573_v36 }
0x25d9   :  { %v1341_v30 = vpop.f32.mrf.mxu2 }
0x25da   :  { %v1344_v31 = vadd.f32 %v1341_v30, %v1154_v28  ;;  %v2971_v28 = vld [vmem:[#allocation6 + $0x70] sm:$0xff]  ;;  %v2975_v30 = vld [vmem:[#allocation6 + $0x68] sm:$0xff] }
0x25db   :  { %1970 = vmatpush.msra.mxu1 %v2971_v28 }
0x25dc   :  { %2319 = vtanh.f32 %v1344_v31  ;;  %v2980_v31 = vld [vmem:[#allocation6 + $0x60] sm:$0xff] }
0x25dd   :  { %2321 = vtanh.f32 %v583_v63  ;;  %1971 = vmatpush.msra.mxu1 %v2975_v30 }
0x25df   :  { %1972 = vmatpush.msra.mxu1 %v2980_v31 }
0x25e2   :  { %v2320_v34 = vpop.eup %2319 }
0x25e3   :  { %v1346_v62 = vmul.f32 %v2320_v34, %v2567_v33  ;;  %v2322_v1 = vpop.eup %2321 }
0x25e5   :  { %v1347_v0 = vadd.f32 %v1346_v62, %v2569_v35 }
0x25e7   :  { %1350 = vrot.lane.b32.xlu2 %v1347_v0, %s2464_s19  ;;  %v1348_v60 = vmul.f32 %v1347_v0, %v1309_v7  ;;  %v1159_v7 = vpop.f32.mrf.mxu1 }
0x25e8   :  { %v1160_v8 = vadd.f32 %v2866_v5, %v1159_v7 }
0x25ef   :  { %586 = vrot.lane.b32.xlu2 %v2322_v1, %s2464_s19  ;;  %v1162_v36 = vpop.f32.mrf.mxu1  ;;  %v3005_v1 = vld [vmem:[%s3188_s4 + $0x3] ss:$0 sm:$0xff] }
0x25f0   :  { %v1163_v62 = vadd.f32 %v2866_v5, %v1162_v36 }
0x2641   :  { %v1351_v37 = vpop.permute.xlu2 %1350 }
0x2642   :  { %v1353_v38 = vmul.f32 %v1351_v37, %v1347_v0 }
0x2644   :  { %1355 = vrot.lane.b32.xlu1 %v1353_v38, %s2465_s20 }
0x2649   :  { %v587_v39 = vpop.permute.xlu2 %586 }
0x264a   :  { %v589_v40 = vmul.f32 %v587_v39, %v572_v15 }
0x264c   :  { %591 = vrot.lane.b32.xlu1 %v589_v40, %s2465_s20 }
0x26b6   :  { %v1356_v41 = vpop.permute.xlu1 %1355 }
0x26b7   :  { %v1358_v42 = vadd.f32 %v1356_v41, %v1348_v60 }
0x26b9   :  { %2323 = vtanh.f32 %v1358_v42 }
0x26be   :  { %v592_v43 = vpop.permute.xlu1 %591 }
0x26bf   :  { %v2324_v44 = vpop.eup %2323  ;;  %594 = vst.msk [vmem:[#allocation3 + $0x38] sm:$0xff] %vm202_vm4, %v592_v43 }
0x26c0   :  { %1361 = vrot.lane.b32.xlu0 %v2324_v44, %s2464_s19 }
0x26c6   :  { %v609_v45 = vld [vmem:[#allocation3 + $0x38] sm:$0xff] }
0x26c7   :  { %2170 = vmatmul.msk.f32.gmra.mxu3 %vm202_vm4, %v609_v45 }
0x2732   :  { %v1362_v48 = vpop.permute.xlu0 %1361 }
0x2733   :  { %v1364_v46 = vmul.f32 %v1362_v48, %v1347_v0 }
0x2735   :  { %1366 = vrot.lane.b32.xlu2 %v1364_v46, %s2465_s20 }
0x274a   :  { %v2950_v51 = vpop.f32.mrf.mxu3 }
0x278f   :  { %v1367_v49 = vpop.permute.xlu2 %1366 }
0x2790   :  { %1369 = vst.msk [vmem:[#allocation3 + $0x18] sm:$0xff] %vm202_vm4, %v1367_v49  ;;  %2194 = vmatmul.msk.f32.vlgmr.msrb.gmra.mxu3 %vm202_vm4, %v1367_v49 }
0x2791   :  { %1724 = vmatpush.msrb.mxu3 %v2969_v21 }
0x2793   :  { %1725 = vmatpush.msrb.mxu3 %v2971_v28 }
0x2795   :  { %1726 = vmatpush.msrb.mxu3 %v2975_v30 }
0x2797   :  { %v1576_v50 = vld [vmem:[#allocation3 + $0x18] sm:$0xff]  ;;  %1727 = vmatpush.msrb.mxu3 %v2980_v31 }
0x2798   :  { %2206 = vmatmul.msk.f32.gmra.mxu0 %vm202_vm4, %v1576_v50 }
0x2813   :  { %v1390_v54 = vpop.f32.mrf.mxu3 }
0x2814   :  { %v1393_v55 = vadd.f32 %v1390_v54, %v1157_v53 }
0x2816   :  { %2325 = vtanh.f32 %v1393_v55 }
0x281c   :  { %v2326_v56 = vpop.eup %2325 }
0x281d   :  { %v1395_v22 = vmul.f32 %v2326_v56, %v2567_v33 }
0x281f   :  { %v1396_v57 = vadd.f32 %v1395_v22, %v2569_v35 }
0x2821   :  { %1399 = vrot.lane.b32.xlu0 %v1396_v57, %s2464_s19  ;;  %v1397_v29 = vmul.f32 %v1396_v57, %v1358_v42 }
0x2893   :  { %v1400_v23 = vpop.permute.xlu0 %1399 }
0x2894   :  { %v1402_v25 = vmul.f32 %v1400_v23, %v1396_v57 }
0x2896   :  { %1404 = vrot.lane.b32.xlu1 %v1402_v25, %s2465_s20 }
0x2908   :  { %v1405_v58 = vpop.permute.xlu1 %1404 }
0x2909   :  { %v1407_v27 = vadd.f32 %v1405_v58, %v1397_v29 }
0x290b   :  { %2327 = vtanh.f32 %v1407_v27 }
0x2911   :  { %v2328_v59 = vpop.eup %2327 }
0x2912   :  { %1410 = vrot.lane.b32.xlu2 %v2328_v59, %s2464_s19 }
0x296c   :  { %v1411_v61 = vpop.permute.xlu2 %1410 }
0x296d   :  { %v1413_v2 = vmul.f32 %v1411_v61, %v1396_v57 }
0x296f   :  { %1415 = vrot.lane.b32.xlu0 %v1413_v2, %s2465_s20 }
0x29e1   :  { %v1416_v3 = vpop.permute.xlu0 %1415 }
0x29e2   :  { %1418 = vst.msk [vmem:[#allocation3 + $0x20] sm:$0xff] %vm202_vm4, %v1416_v3  ;;  %2195 = vmatmul.msk.f32.vlgmr.msra.gmra.mxu2 %vm202_vm4, %v1416_v3 }
0x29e3   :  { %1675 = vmatpush.msra.mxu2 %v2969_v21 }
0x29e5   :  { %1676 = vmatpush.msra.mxu2 %v2971_v28 }
0x29e7   :  { %1677 = vmatpush.msra.mxu2 %v2975_v30 }
0x29e9   :  { %v1577_v6 = vld [vmem:[#allocation3 + $0x20] sm:$0xff]  ;;  %1678 = vmatpush.msra.mxu2 %v2980_v31 }
0x29ea   :  { %2207 = vmatmul.msk.f32.gmra.mxu0 %vm202_vm4, %v1577_v6 }
0x2a65   :  { %v1439_v10 = vpop.f32.mrf.mxu2 }
0x2a66   :  { %v1442_v24 = vadd.f32 %v1439_v10, %v1160_v8 }
0x2a68   :  { %2329 = vtanh.f32 %v1442_v24 }
0x2a6e   :  { %v2330_v11 = vpop.eup %2329 }
0x2a6f   :  { %v1444_v26 = vmul.f32 %v2330_v11, %v2567_v33 }
0x2a71   :  { %v1445_v12 = vadd.f32 %v1444_v26, %v2569_v35 }
0x2a73   :  { %1448 = vrot.lane.b32.xlu1 %v1445_v12, %s2464_s19  ;;  %v1446_v16 = vmul.f32 %v1445_v12, %v1407_v27 }
0x2ae5   :  { %v1449_v13 = vpop.permute.xlu1 %1448 }
0x2ae6   :  { %v1451_v15 = vmul.f32 %v1449_v13, %v1445_v12 }
0x2ae8   :  { %1453 = vrot.lane.b32.xlu2 %v1451_v15, %s2465_s20 }
0x2b42   :  { %v1454_v17 = vpop.permute.xlu2 %1453 }
0x2b43   :  { %v1456_v18 = vadd.f32 %v1454_v17, %v1446_v16 }
0x2b45   :  { %2331 = vtanh.f32 %v1456_v18 }
0x2b4b   :  { %v2332_v19 = vpop.eup %2331 }
0x2b4c   :  { %1459 = vrot.lane.b32.xlu0 %v2332_v19, %s2464_s19 }
0x2bbe   :  { %v1460_v20 = vpop.permute.xlu0 %1459 }
0x2bbf   :  { %v1462_v9 = vmul.f32 %v1460_v20, %v1445_v12 }
0x2bc1   :  { %1464 = vrot.lane.b32.xlu1 %v1462_v9, %s2465_s20 }
0x2c33   :  { %v1465_v32 = vpop.permute.xlu1 %1464 }
0x2c34   :  { %1467 = vst.msk [vmem:[#allocation3 + $0x28] sm:$0xff] %vm202_vm4, %v1465_v32  ;;  %2196 = vmatmul.msk.f32.vlgmr.msrb.gmra.mxu2 %vm202_vm4, %v1465_v32 }
0x2c35   :  { %1773 = vmatpush.msrb.mxu2 %v2969_v21 }
0x2c37   :  { %1774 = vmatpush.msrb.mxu2 %v2971_v28 }
0x2c39   :  { %1775 = vmatpush.msrb.mxu2 %v2975_v30 }
0x2c3b   :  { %v1578_v34 = vld [vmem:[#allocation3 + $0x28] sm:$0xff]  ;;  %1776 = vmatpush.msrb.mxu2 %v2980_v31 }
0x2c3c   :  { %2208 = vmatmul.msk.f32.gmra.mxu0 %vm202_vm4, %v1578_v34  ;;  %1679 = vmatmul.f32.vlgmr.msra.gmra.mxu2 %v2461_v14  ;;  %v1630_v14 = vpop.f32.mrf.mxu0 }
0x2c3d   :  { %1871 = vmatpush.msra.mxu2 %v2969_v21  ;;  %v1631_v37 = vadd.f32 %v3005_v1, %v1630_v14 }
0x2c3f   :  { %1872 = vmatpush.msra.mxu2 %v2971_v28 }
0x2c41   :  { %1873 = vmatpush.msra.mxu2 %v2975_v30 }
0x2c43   :  { %1874 = vmatpush.msra.mxu2 %v2980_v31 }
0x2c44   :  { %v1633_v3 = vpop.f32.mrf.mxu0 }
0x2c45   :  { %v1634_v6 = vadd.f32 %v3005_v1, %v1633_v3  ;;  %v2378_v3 = vld [vmem:[%s3188_s4 + $0x1] ss:$0 sm:$0xff] }
0x2c4c   :  { %v1636_v9 = vpop.f32.mrf.mxu0 }
0x2c4d   :  { %v1637_v32 = vadd.f32 %v3005_v1, %v1636_v9  ;;  %v2061_v9 = vld [vmem:[#allocation8 + $0x8] sm:$0xff] }
0x2cb7   :  { %v1488_v63 = vpop.f32.mrf.mxu2 }
0x2cb8   :  { %v1491_v0 = vadd.f32 %v1488_v63, %v1163_v62 }
0x2cba   :  { %2333 = vtanh.f32 %v1491_v0 }
0x2cbf   :  { %v1680_v38 = vpop.f32.mrf.mxu2 }
0x2cc0   :  { %v2334_v39 = vpop.eup %2333  ;;  %v1683_v40 = vadd.f32 %v1680_v38, %v1631_v37 }
0x2cc1   :  { %v1493_v60 = vmul.f32 %v2334_v39, %v2567_v33 }
0x2cc2   :  { %2335 = vtanh.f32 %v1683_v40 }
0x2cc3   :  { %v1494_v41 = vadd.f32 %v1493_v60, %v2569_v35  ;;  %v1639_v60 = vpop.f32.mrf.mxu0 }
0x2cc5   :  { %1497 = vrot.lane.b32.xlu2 %v1494_v41, %s2464_s19  ;;  %v1495_v50 = vmul.f32 %v1494_v41, %v1456_v18 }
0x2cc8   :  { %v2336_v42 = vpop.eup %2335 }
0x2cc9   :  { %v1685_v43 = vmul.f32 %v2336_v42, %v2567_v33 }
0x2ccb   :  { %v1686_v44 = vadd.f32 %v1685_v43, %v2569_v35 }
0x2ccd   :  { %1689 = vrot.lane.b32.xlu0 %v1686_v44, %s2464_s19  ;;  %v1687_v54 = vmul.f32 0.0, %v1686_v44 }
0x2d1f   :  { %v1498_v45 = vpop.permute.xlu2 %1497 }
0x2d20   :  { %v1500_v48 = vmul.f32 %v1498_v45, %v1494_v41 }
0x2d22   :  { %1502 = vrot.lane.b32.xlu1 %v1500_v48, %s2465_s20 }
0x2d3f   :  { %v1690_v46 = vpop.permute.xlu0 %1689 }
0x2d40   :  { %v1692_v49 = vmul.f32 %v1690_v46, %v1686_v44 }
0x2d42   :  { %1694 = vrot.lane.b32.xlu2 %v1692_v49, %s2465_s20 }
0x2d94   :  { %v1503_v52 = vpop.permute.xlu1 %1502 }
0x2d95   :  { %v3016_v53 = vadd.f32 %v1503_v52, %v1495_v50 }
0x2d97   :  { %2337 = vtanh.f32 %v3016_v53 }
0x2d9c   :  { %v1695_v55 = vpop.permute.xlu2 %1694 }
0x2d9d   :  { %v2338_v56 = vpop.eup %2337  ;;  %v1697_v22 = vadd.f32 %v1695_v55, %v1687_v54 }
0x2d9e   :  { %1508 = vrot.lane.b32.xlu0 %v2338_v56, %s2464_s19 }
0x2d9f   :  { %2339 = vtanh.f32 %v1697_v22 }
0x2da5   :  { %v2340_v57 = vpop.eup %2339 }
0x2da6   :  { %1700 = vrot.lane.b32.xlu1 %v2340_v57, %s2464_s19 }
0x2e10   :  { %v1509_v23 = vpop.permute.xlu0 %1508 }
0x2e11   :  { %v1511_v25 = vmul.f32 %v1509_v23, %v1494_v41  ;;  %v1640_v41 = vadd.f32 %v3005_v1, %v1639_v60  ;;  %v1642_v23 = vpop.f32.mrf.mxu0 }
0x2e13   :  { %1513 = vrot.lane.b32.xlu2 %v1511_v25, %s2465_s20  ;;  %v1643_v25 = vadd.f32 %v3005_v1, %v1642_v23 }
0x2e18   :  { %v1701_v29 = vpop.permute.xlu1 %1700 }
0x2e19   :  { %v1703_v58 = vmul.f32 %v1701_v29, %v1686_v44 }
0x2e1b   :  { %1705 = vrot.lane.b32.xlu0 %v1703_v58, %s2465_s20 }
0x2e6d   :  { %v1514_v27 = vpop.permute.xlu2 %1513 }
0x2e6e   :  { %1516 = vst.msk [vmem:[#allocation3 + $0x30] sm:$0xff] %vm202_vm4, %v1514_v27  ;;  %2197 = vmatmul.msk.f32.vlgmr.msra.gmra.mxu3 %vm202_vm4, %v1514_v27 }
0x2e6f   :  { %1822 = vmatpush.msra.mxu3 %v2969_v21 }
0x2e71   :  { %1823 = vmatpush.msra.mxu3 %v2971_v28 }
0x2e73   :  { %1824 = vmatpush.msra.mxu3 %v2975_v30 }
0x2e75   :  { %v1579_v59 = vld [vmem:[#allocation3 + $0x30] sm:$0xff]  ;;  %1825 = vmatpush.msra.mxu3 %v2980_v31 }
0x2e76   :  { %2209 = vmatmul.msk.f32.gmra.mxu0 %vm202_vm4, %v1579_v59 }
0x2e8d   :  { %v1706_v61 = vpop.permute.xlu0 %1705 }
0x2e8e   :  { %1708 = vst.msk [vmem:[#allocation3] sm:$0xff] %vm202_vm4, %v1706_v61  ;;  %2211 = vmatmul.msk.f32.vlgmr.msrb.gmra.mxu3 %vm202_vm4, %v1706_v61 }
0x2e8f   :  { %1920 = vmatpush.msrb.mxu3 %v2969_v21 }
0x2e91   :  { %1921 = vmatpush.msrb.mxu3 %v2971_v28 }
0x2e93   :  { %1922 = vmatpush.msrb.mxu3 %v2975_v30 }
0x2e95   :  { %1923 = vmatpush.msrb.mxu3 %v2980_v31 }
0x2ef1   :  { %v3036_v2 = vpop.f32.mrf.mxu3 }
0x2f11   :  { %v1729_v7 = vpop.f32.mrf.mxu3 }
0x2f12   :  { %v1732_v8 = vadd.f32 %v1729_v7, %v1634_v6  ;;  %v680_v6 = vadd.f32 %v2378_v3, %v2950_v51 }
0x2f14   :  { %2341 = vtanh.f32 %v1732_v8  ;;  %v1054_v7 = vadd.f32 %v2861_v4, %v680_v6 }
0x2f1a   :  { %v2342_v10 = vpop.eup %2341 }
0x2f1b   :  { %v1734_v24 = vmul.f32 %v2342_v10, %v2567_v33 }
0x2f1d   :  { %v1735_v11 = vadd.f32 %v1734_v24, %v2569_v35 }
0x2f1f   :  { %1738 = vrot.lane.b32.xlu1 %v1735_v11, %s2464_s19  ;;  %v1736_v13 = vmul.f32 %v1735_v11, %v1697_v22 }
0x2f91   :  { %v1739_v26 = vpop.permute.xlu1 %1738 }
0x2f92   :  { %v1741_v12 = vmul.f32 %v1739_v26, %v1735_v11 }
0x2f94   :  { %1743 = vrot.lane.b32.xlu2 %v1741_v12, %s2465_s20 }
0x2fee   :  { %v1744_v15 = vpop.permute.xlu2 %1743 }
0x2fef   :  { %v1746_v16 = vadd.f32 %v1744_v15, %v1736_v13 }
0x2ff1   :  { %2343 = vtanh.f32 %v1746_v16 }
0x2ff7   :  { %v2344_v17 = vpop.eup %2343 }
0x2ff8   :  { %1749 = vrot.lane.b32.xlu0 %v2344_v17, %s2464_s19 }
0x306a   :  { %v1750_v18 = vpop.permute.xlu0 %1749 }
0x306b   :  { %v1752_v19 = vmul.f32 %v1750_v18, %v1735_v11 }
0x306d   :  { %1754 = vrot.lane.b32.xlu1 %v1752_v19, %s2465_s20  ;;  %v2063_v19 = vld [vmem:[#allocation8 + $0x18] sm:$0xff] }
0x30df   :  { %v1755_v20 = vpop.permute.xlu1 %1754 }
0x30e0   :  { %1757 = vst.msk [vmem:[#allocation3 + $0x8] sm:$0xff] %vm202_vm4, %v1755_v20  ;;  %2212 = vmatmul.msk.f32.vlgmr.msrb.gmra.mxu2 %vm202_vm4, %v1755_v20  ;;  %v2062_v20 = vld [vmem:[#allocation8 + $0x10] sm:$0xff] }
0x30e1   :  { %2018 = vmatpush.msrb.mxu2 %v2969_v21 }
0x30e3   :  { %2019 = vmatpush.msrb.mxu2 %v2971_v28 }
0x30e5   :  { %2020 = vmatpush.msrb.mxu2 %v2975_v30 }
0x30e7   :  { %2021 = vmatpush.msrb.mxu2 %v2980_v31 }
0x3163   :  { %v1778_v34 = vpop.f32.mrf.mxu2 }
0x3164   :  { %v1781_v36 = vadd.f32 %v1778_v34, %v1637_v32  ;;  %v2060_v32 = vld [vmem:[#allocation8] sm:$0xff] }
0x3166   :  { %2345 = vtanh.f32 %v1781_v36  ;;  %v2052_v36 = vld [vmem:[#allocation3] sm:$0xff] }
0x316c   :  { %v2346_v62 = vpop.eup %2345 }
0x316d   :  { %v1783_v63 = vmul.f32 %v2346_v62, %v2567_v33  ;;  %v2053_v62 = vld [vmem:[#allocation3 + $0x8] sm:$0xff] }
0x316f   :  { %v1784_v0 = vadd.f32 %v1783_v63, %v2569_v35 }
0x3171   :  { %1787 = vrot.lane.b32.xlu2 %v1784_v0, %s2464_s19  ;;  %v1785_v28 = vmul.f32 %v1784_v0, %v1746_v16 }
0x31cb   :  { %v1788_v21 = vpop.permute.xlu2 %1787 }
0x31cc   :  { %v1790_v14 = vmul.f32 %v1788_v21, %v1784_v0 }
0x31ce   :  { %1792 = vrot.lane.b32.xlu0 %v1790_v14, %s2465_s20  ;;  %v1645_v14 = vpop.f32.mrf.mxu0 }
0x3240   :  { %v1793_v30 = vpop.permute.xlu0 %1792 }
0x3241   :  { %v1795_v31 = vadd.f32 %v1793_v30, %v1785_v28  ;;  %v1646_v28 = vadd.f32 %v3005_v1, %v1645_v14 }
0x3243   :  { %2347 = vtanh.f32 %v1795_v31 }
0x3249   :  { %v2348_v37 = vpop.eup %2347 }
0x324a   :  { %1798 = vrot.lane.b32.xlu1 %v2348_v37, %s2464_s19  ;;  %v3103_v37 = vld [vmem:[%s3190_s6] ss:$0 sm:$0xff] }
0x32bc   :  { %v1799_v38 = vpop.permute.xlu1 %1798 }
0x32bd   :  { %v1801_v39 = vmul.f32 %v1799_v38, %v1784_v0 }
0x32bf   :  { %1803 = vrot.lane.b32.xlu2 %v1801_v39, %s2465_s20 }
0x3319   :  { %v1804_v40 = vpop.permute.xlu2 %1803 }
0x331a   :  { %1806 = vst.msk [vmem:[#allocation3 + $0x10] sm:$0xff] %vm202_vm4, %v1804_v40  ;;  %2213 = vmatmul.msk.f32.vlgmr.msra.gmra.mxu3 %vm202_vm4, %v1804_v40 }
0x331b   :  { %2104 = vmatpush.msra.mxu3 %v2063_v19 }
0x331d   :  { %2105 = vmatpush.msra.mxu3 %v2062_v20 }
0x331f   :  { %2106 = vmatpush.msra.mxu3 %v2061_v9 }
0x3321   :  { %2107 = vmatpush.msra.mxu3 %v2060_v32  ;;  %v2054_v63 = vld [vmem:[#allocation3 + $0x10] sm:$0xff] }
0x339d   :  { %v1827_v42 = vpop.f32.mrf.mxu3 }
0x339e   :  { %v1830_v43 = vadd.f32 %v1827_v42, %v1640_v41 }
0x33a0   :  { %2349 = vtanh.f32 %v1830_v43 }
0x33a6   :  { %v2350_v44 = vpop.eup %2349 }
0x33a7   :  { %v1832_v45 = vmul.f32 %v2350_v44, %v2567_v33 }
0x33a9   :  { %v1833_v48 = vadd.f32 %v1832_v45, %v2569_v35 }
0x33ab   :  { %1836 = vrot.lane.b32.xlu0 %v1833_v48, %s2464_s19  ;;  %v1834_v50 = vmul.f32 %v1833_v48, %v1795_v31 }
0x341d   :  { %v1837_v46 = vpop.permute.xlu0 %1836 }
0x341e   :  { %v1839_v49 = vmul.f32 %v1837_v46, %v1833_v48 }
0x3420   :  { %1841 = vrot.lane.b32.xlu1 %v1839_v49, %s2465_s20 }
0x3492   :  { %v1842_v52 = vpop.permute.xlu1 %1841 }
0x3493   :  { %v1844_v54 = vadd.f32 %v1842_v52, %v1834_v50 }
0x3495   :  { %2351 = vtanh.f32 %v1844_v54 }
0x349b   :  { %v2352_v55 = vpop.eup %2351 }
0x349c   :  { %1847 = vrot.lane.b32.xlu2 %v2352_v55, %s2464_s19 }
0x34f6   :  { %v1848_v56 = vpop.permute.xlu2 %1847 }
0x34f7   :  { %v1850_v22 = vmul.f32 %v1848_v56, %v1833_v48 }
0x34f9   :  { %1852 = vrot.lane.b32.xlu0 %v1850_v22, %s2465_s20 }
0x356b   :  { %v1853_v57 = vpop.permute.xlu0 %1852 }
0x356c   :  { %1855 = vst.msk [vmem:[#allocation3 + $0x18] sm:$0xff] %vm202_vm4, %v1853_v57  ;;  %2214 = vmatmul.msk.f32.vlgmr.msra.gmra.mxu2 %vm202_vm4, %v1853_v57 }
0x3573   :  { %v2055_v0 = vld [vmem:[#allocation3 + $0x18] sm:$0xff] }
0x35ef   :  { %v1876_v29 = vpop.f32.mrf.mxu2 }
0x35f0   :  { %v1879_v58 = vadd.f32 %v1876_v29, %v1643_v25 }
0x35f2   :  { %2353 = vtanh.f32 %v1879_v58 }
0x35f3   :  { %2355 = vtanh.f32 %v1054_v7 }
0x35f8   :  { %v2354_v27 = vpop.eup %2353 }
0x35f9   :  { %v1881_v59 = vmul.f32 %v2354_v27, %v2567_v33  ;;  %v2356_v24 = vpop.eup %2355 }
0x35fa   :  { %v1056_v11 = vmul.f32 %v2356_v24, %v2567_v33 }
0x35fb   :  { %v1882_v61 = vadd.f32 %v1881_v59, %v2569_v35 }
0x35fc   :  { %v3081_v26 = vadd.f32 %v1056_v11, %v2569_v35 }
0x35fd   :  { %1885 = vrot.lane.b32.xlu1 %v1882_v61, %s2464_s19  ;;  %v1883_v12 = vmul.f32 %v1882_v61, %v1844_v54 }
0x35fe   :  { %v1058_v60 = vmul.f32 %v3081_v26, %v2824_v47 }
0x366f   :  { %v1886_v8 = vpop.permute.xlu1 %1885 }
0x3670   :  { %v1888_v10 = vmul.f32 %v1886_v8, %v1882_v61 }
0x3672   :  { %1890 = vrot.lane.b32.xlu2 %v1888_v10, %s2465_s20 }
0x367a   :  { %1060 = vrot.lane.b32.xlu2 %v3081_v26, %s2464_s19 }
0x36cc   :  { %v1891_v13 = vpop.permute.xlu2 %1890 }
0x36cd   :  { %v3085_v15 = vadd.f32 %v1891_v13, %v1883_v12 }
0x36cf   :  { %2357 = vtanh.f32 %v3085_v15 }
0x36d4   :  { %v1061_v17 = vpop.permute.xlu2 %1060 }
0x36d5   :  { %v2358_v4 = vpop.eup %2357  ;;  %v1063_v18 = vmul.f32 %v1061_v17, %v3081_v26 }
0x36d6   :  { %1896 = vrot.lane.b32.xlu0 %v2358_v4, %s2464_s19 }
0x3748   :  { %v1897_v51 = vpop.permute.xlu0 %1896 }
0x3749   :  { %v1899_v16 = vmul.f32 %v1897_v51, %v1882_v61 }
0x374b   :  { %1901 = vrot.lane.b32.xlu1 %v1899_v16, %s2465_s20 }
0x3753   :  { %1065 = vrot.lane.b32.xlu1 %v1063_v18, %s2465_s20 }
0x37bd   :  { %v1902_v34 = vpop.permute.xlu1 %1901 }
0x37be   :  { %1904 = vst.msk [vmem:[#allocation3 + $0x20] sm:$0xff] %vm202_vm4, %v1902_v34  ;;  %2215 = vmatmul.msk.f32.vlgmr.msrb.gmra.mxu3 %vm202_vm4, %v1902_v34 }
0x37c5   :  { %v2056_v21 = vld [vmem:[#allocation3 + $0x20] sm:$0xff]  ;;  %v1066_v38 = vpop.permute.xlu1 %1065 }
0x37c6   :  { %2218 = vmatmul.msk.f32.vlgmr.msra.gmra.mxu3 %vm202_vm4, %v2052_v36  ;;  %v1068_v43 = vadd.f32 %v1066_v38, %v1058_v60 }
0x37ce   :  { %2219 = vmatmul.msk.f32.gmra.mxu3 %vm202_vm4, %v2053_v62 }
0x37d6   :  { %2220 = vmatmul.msk.f32.gmra.mxu3 %vm202_vm4, %v2054_v63 }
0x37de   :  { %2221 = vmatmul.msk.f32.gmra.mxu3 %vm202_vm4, %v2055_v0 }
0x37e6   :  { %2222 = vmatmul.msk.f32.gmra.mxu3 %vm202_vm4, %v2056_v21 }
0x3841   :  { %v1925_v30 = vpop.f32.mrf.mxu3 }
0x3842   :  { %v1928_v31 = vadd.f32 %v1925_v30, %v1646_v28 }
0x3844   :  { %2359 = vtanh.f32 %v1928_v31 }
0x3845   :  { %2361 = vtanh.f32 %v1068_v43 }
0x3849   :  { %v2109_v39 = vpop.f32.mrf.mxu3 }
0x384a   :  { %v2360_v40 = vpop.eup %2359  ;;  %v2110_v41 = vadd.f32 %v3103_v37, %v2109_v39 }
0x384b   :  { %v1930_v42 = vmul.f32 %v2360_v40, %v2567_v33  ;;  %v2362_v47 = vpop.eup %2361 }
0x384c   :  { %2133 = vst [vmem:[%s3191_s7] sm:$0xff] %v2110_v41 }
0x384d   :  { %v1931_v44 = vadd.f32 %v1930_v42, %v2569_v35 }
0x384f   :  { %1934 = vrot.lane.b32.xlu0 %v1931_v44, %s2464_s19  ;;  %v1932_v25 = vmul.f32 %v1931_v44, %v3085_v15 }
0x3851   :  { %v2112_v45 = vpop.f32.mrf.mxu3 }
0x3852   :  { %v2113_v48 = vadd.f32 %v3103_v37, %v2112_v45 }
0x3854   :  { %2134 = vst [vmem:[%s3191_s7 + $0x8] sm:$0xff] %v2113_v48 }
0x3857   :  { %1071 = vrot.lane.b32.xlu0 %v2362_v47, %s2464_s19 }
0x3859   :  { %v2115_v46 = vpop.f32.mrf.mxu3 }
0x385a   :  { %v2116_v49 = vadd.f32 %v3103_v37, %v2115_v46 }
0x385c   :  { %2135 = vst [vmem:[%s3191_s7 + $0x10] sm:$0xff] %v2116_v49 }
0x3861   :  { %v2118_v50 = vpop.f32.mrf.mxu3 }
0x3862   :  { %v2119_v52 = vadd.f32 %v3103_v37, %v2118_v50 }
0x3864   :  { %2136 = vst [vmem:[%s3191_s7 + $0x18] sm:$0xff] %v2119_v52 }
0x3869   :  { %v2121_v54 = vpop.f32.mrf.mxu3 }
0x386a   :  { %v2122_v55 = vadd.f32 %v3103_v37, %v2121_v54 }
0x386c   :  { %2137 = vst [vmem:[%s3191_s7 + $0x20] sm:$0xff] %v2122_v55 }
0x38c1   :  { %v1935_v56 = vpop.permute.xlu0 %1934 }
0x38c2   :  { %v1937_v22 = vmul.f32 %v1935_v56, %v1931_v44 }
0x38c4   :  { %1939 = vrot.lane.b32.xlu2 %v1937_v22, %s2465_s20 }
0x38c9   :  { %v1072_v57 = vpop.permute.xlu0 %1071 }
0x38ca   :  { %v1074_v23 = vmul.f32 %v1072_v57, %v3081_v26 }
0x38cc   :  { %1076 = vrot.lane.b32.xlu2 %v1074_v23, %s2465_s20 }
0x391e   :  { %v1940_v29 = vpop.permute.xlu2 %1939 }
0x391f   :  { %v1942_v58 = vadd.f32 %v1940_v29, %v1932_v25 }
0x3921   :  { %2363 = vtanh.f32 %v1942_v58 }
0x3926   :  { %v1077_v27 = vpop.permute.xlu2 %1076 }
0x3927   :  { %v2364_v59 = vpop.eup %2363  ;;  %1079 = vst.msk [vmem:[#allocation3 + $0x38] sm:$0xff] %vm202_vm4, %v1077_v27 }
0x3928   :  { %1945 = vrot.lane.b32.xlu1 %v2364_v59, %s2464_s19 }
0x392e   :  { %v1094_v61 = vld [vmem:[#allocation3 + $0x38] sm:$0xff] }
0x392f   :  { %2190 = vmatmul.msk.f32.gmra.mxu1 %vm202_vm4, %v1094_v61 }
0x399a   :  { %v1946_v3 = vpop.permute.xlu1 %1945 }
0x399b   :  { %v1948_v6 = vmul.f32 %v1946_v3, %v1931_v44 }
0x399d   :  { %1950 = vrot.lane.b32.xlu0 %v1948_v6, %s2465_s20 }
0x39ac   :  { %v1165_v7 = vpop.f32.mrf.mxu1 }
0x39ad   :  { %v1166_v8 = vadd.f32 %v2866_v5, %v1165_v7 }
0x39af   :  { %v1540_v10 = vadd.f32 %v3036_v2, %v1166_v8  ;;  %v1648_v2 = vpop.f32.mrf.mxu0 }
0x39b0   :  { %v1649_v4 = vadd.f32 %v3005_v1, %v1648_v2 }
0x39b1   :  { %2365 = vtanh.f32 %v1540_v10 }
0x39b7   :  { %v2366_v24 = vpop.eup %2365 }
0x39b8   :  { %v1542_v11 = vmul.f32 %v2366_v24, %v2567_v33 }
0x39ba   :  { %v1543_v26 = vadd.f32 %v1542_v11, %v2569_v35 }
0x39bc   :  { %1546 = vrot.lane.b32.xlu1 %v1543_v26, %s2464_s19  ;;  %v1544_v32 = vmul.f32 %v1543_v26, %v3016_v53 }
0x3a0f   :  { %v1951_v12 = vpop.permute.xlu0 %1950 }
0x3a10   :  { %1953 = vst.msk [vmem:[#allocation3 + $0x28] sm:$0xff] %vm202_vm4, %v1951_v12  ;;  %2216 = vmatmul.msk.f32.vlgmr.msra.gmra.mxu1 %vm202_vm4, %v1951_v12 }
0x3a17   :  { %v2057_v13 = vld [vmem:[#allocation3 + $0x28] sm:$0xff] }
0x3a18   :  { %2223 = vmatmul.msk.f32.gmra.mxu3 %vm202_vm4, %v2057_v13 }
0x3a2e   :  { %v1547_v15 = vpop.permute.xlu1 %1546 }
0x3a2f   :  { %v1549_v5 = vmul.f32 %v1547_v15, %v1543_v26 }
0x3a31   :  { %1551 = vrot.lane.b32.xlu0 %v1549_v5, %s2465_s20 }
0x3a8d   :  { %v1974_v51 = vpop.f32.mrf.mxu1 }
0x3a8e   :  { %v1977_v16 = vadd.f32 %v1974_v51, %v1649_v4 }
0x3a90   :  { %2367 = vtanh.f32 %v1977_v16 }
0x3a96   :  { %v2368_v17 = vpop.eup %2367 }
0x3a97   :  { %v1979_v18 = vmul.f32 %v2368_v17, %v2567_v33 }
0x3a99   :  { %v1980_v19 = vadd.f32 %v1979_v18, %v2569_v35 }
0x3a9b   :  { %1983 = vrot.lane.b32.xlu2 %v1980_v19, %s2464_s19  ;;  %v2124_v20 = vpop.f32.mrf.mxu3  ;;  %v1981_v28 = vmul.f32 %v1980_v19, %v1942_v58 }
0x3a9c   :  { %v2125_v9 = vadd.f32 %v3103_v37, %v2124_v20 }
0x3a9e   :  { %2138 = vst [vmem:[%s3191_s7 + $0x28] sm:$0xff] %v2125_v9 }
0x3aa3   :  { %v1552_v34 = vpop.permute.xlu0 %1551 }
0x3aa4   :  { %v1554_v36 = vadd.f32 %v1552_v34, %v1544_v32 }
0x3aa6   :  { %2369 = vtanh.f32 %v1554_v36 }
0x3aac   :  { %v2370_v62 = vpop.eup %2369 }
0x3aad   :  { %1557 = vrot.lane.b32.xlu2 %v2370_v62, %s2464_s19 }
0x3af5   :  { %v1984_v63 = vpop.permute.xlu2 %1983 }
0x3af6   :  { %v1986_v0 = vmul.f32 %v1984_v63, %v1980_v19 }
0x3af8   :  { %1988 = vrot.lane.b32.xlu1 %v1986_v0, %s2465_s20 }
0x3b07   :  { %v1558_v21 = vpop.permute.xlu2 %1557 }
0x3b08   :  { %v1560_v14 = vmul.f32 %v1558_v21, %v1543_v26 }
0x3b0a   :  { %1562 = vrot.lane.b32.xlu1 %v1560_v14, %s2465_s20 }
0x3b6a   :  { %v1989_v30 = vpop.permute.xlu1 %1988 }
0x3b6b   :  { %v1991_v31 = vadd.f32 %v1989_v30, %v1981_v28 }
0x3b6d   :  { %2371 = vtanh.f32 %v1991_v31 }
0x3b73   :  { %v2372_v38 = vpop.eup %2371 }
0x3b74   :  { %1994 = vrot.lane.b32.xlu0 %v2372_v38, %s2464_s19 }
0x3b7c   :  { %v1563_v53 = vpop.permute.xlu1 %1562 }
0x3b7d   :  { %1565 = vst.msk [vmem:[#allocation3 + $0x38] sm:$0xff] %vm202_vm4, %v1563_v53 }
0x3b84   :  { %v1580_v39 = vld [vmem:[#allocation3 + $0x38] sm:$0xff] }
0x3b85   :  { %2210 = vmatmul.msk.f32.gmra.mxu0 %vm202_vm4, %v1580_v39 }
0x3be6   :  { %v1995_v40 = vpop.permute.xlu0 %1994 }
0x3be7   :  { %v1997_v60 = vmul.f32 %v1995_v40, %v1980_v19 }
0x3be9   :  { %1999 = vrot.lane.b32.xlu2 %v1997_v60, %s2465_s20 }
0x3c02   :  { %v1651_v43 = vpop.f32.mrf.mxu0 }
0x3c03   :  { %v1652_v44 = vadd.f32 %v3005_v1, %v1651_v43 }
0x3c43   :  { %v2000_v41 = vpop.permute.xlu2 %1999 }
0x3c44   :  { %2002 = vst.msk [vmem:[#allocation3 + $0x30] sm:$0xff] %vm202_vm4, %v2000_v41  ;;  %2217 = vmatmul.msk.f32.vlgmr.msrb.gmra.mxu2 %vm202_vm4, %v2000_v41 }
0x3c4b   :  { %v2058_v42 = vld [vmem:[#allocation3 + $0x30] sm:$0xff] }
0x3c4c   :  { %2224 = vmatmul.msk.f32.gmra.mxu3 %vm202_vm4, %v2058_v42 }
0x3cc7   :  { %v2023_v45 = vpop.f32.mrf.mxu2 }
0x3cc8   :  { %v2026_v48 = vadd.f32 %v2023_v45, %v1652_v44 }
0x3cca   :  { %2373 = vtanh.f32 %v2026_v48 }
0x3ccf   :  { %v2127_v47 = vpop.f32.mrf.mxu3 }
0x3cd0   :  { %v2374_v46 = vpop.eup %2373  ;;  %v2128_v49 = vadd.f32 %v3103_v37, %v2127_v47 }
0x3cd1   :  { %v2028_v50 = vmul.f32 %v2374_v46, %v2567_v33 }
0x3cd2   :  { %2139 = vst [vmem:[%s3191_s7 + $0x30] sm:$0xff] %v2128_v49 }
0x3cd3   :  { %v2029_v52 = vadd.f32 %v2028_v50, %v2569_v35 }
0x3cd5   :  { %2032 = vrot.lane.b32.xlu0 %v2029_v52, %s2464_s19  ;;  %v2030_v1 = vmul.f32 %v2029_v52, %v1991_v31 }
0x3d47   :  { %v2033_v54 = vpop.permute.xlu0 %2032 }
0x3d48   :  { %v2035_v55 = vmul.f32 %v2033_v54, %v2029_v52 }
0x3d4a   :  { %2037 = vrot.lane.b32.xlu1 %v2035_v55, %s2465_s20 }
0x3dbc   :  { %v2038_v56 = vpop.permute.xlu1 %2037 }
0x3dbd   :  { %v2040_v22 = vadd.f32 %v2038_v56, %v2030_v1 }
0x3dbf   :  { %2375 = vtanh.f32 %v2040_v22 }
0x3dc5   :  { %v2376_v57 = vpop.eup %2375 }
0x3dc6   :  { %2043 = vrot.lane.b32.xlu2 %v2376_v57, %s2464_s19 }
0x3e20   :  { %v2044_v33 = vpop.permute.xlu2 %2043 }
0x3e21   :  { %v2046_v23 = vmul.f32 %v2044_v33, %v2029_v52 }
0x3e23   :  { %2048 = vrot.lane.b32.xlu0 %v2046_v23, %s2465_s20 }
0x3e95   :  { %v2049_v25 = vpop.permute.xlu0 %2048 }
0x3e96   :  { %2051 = vst.msk [vmem:[#allocation3 + $0x38] sm:$0xff] %vm202_vm4, %v2049_v25 }
0x3e9d   :  { %v2059_v35 = vld [vmem:[#allocation3 + $0x38] sm:$0xff] }
0x3e9e   :  { %2225 = vmatmul.msk.f32.gmra.mxu3 %vm202_vm4, %v2059_v35 }
0x3f21   :  { %v2130_v29 = vpop.f32.mrf.mxu3 }
0x3f22   :  { %v2131_v58 = vadd.f32 %v3103_v37, %v2130_v29 }
0x3f24   :  { %2140 = vst [vmem:[%s3191_s7 + $0x38] sm:$0xff] %v2131_v58 }
0x3f25   :  { %2145 = vsyncpa [#allocation5], 1 }
0x3f26   :  { %2146 = vsyncpa [#allocation7], 1 }

</bundles_post_ra>
